<compile_context>
chip_gen: v7x
topology: tpu7x:2x2x1
jax: 0.10.0
libtpu: 0.0.40
codegen_flags: <defaults>
</compile_context>

<pallas_src>
import functools

import jax
import jax.numpy as jnp
from jax.experimental import pallas as pl
from jax.experimental.pallas import tpu as pltpu

# ----------------------------- hyper-params (small test sizes) ----------------
NUM_BOXES = 4          # opt.num_boxes  (P)  -- NOTE: spatial message divides by P-1
NUM_CLASSES = 10       # opt.num_classes
NUM_FRAMES = 8         # opt.num_frames (T) -> backbone halves time to T/2
IMG_FEATURE_DIM = 256  # opt.img_feature_dim (2*img_feature_dim must equal 512)
COORD_DIM = 32         # opt.coord_feature_dim (D)
NR_NONLOCAL = 3

CLS_PAD = ((NUM_CLASSES + 127) // 128) * 128   # lane-dense classifier output width
VMEM_LIMIT = 32 * 1024 * 1024                  # fits the scoped budget on v5e/v6e/v7x


# ======= Kernel 1: fused backbone-stub + spatial mean + 1x1 conv (hoisted) ====
def _backbone_pool_kernel(x_ref, w1_ref, b1_ref, w2_ref, b2_ref, o_ref, acc_ref,
                          *, inv_hw):
    """Per (batch*time) group: out = (mean_hw relu(x@W1+b1)) @ W2 + b2.

    The 2048->512 conv is linear, so it commutes with the spatial mean; we only
    accumulate the pooled 2048-wide feature across spatial tiles and project it
    once in the finalize step.
    """
    s = pl.program_id(1)

    @pl.when(s == 0)
    def _init():
        acc_ref[...] = jnp.zeros_like(acc_ref)

    x = x_ref[0]                                                       # [TS, 3] bf16
    # i3D-stub projection (3->2048) + ReLU.  bf16 MXU inputs, f32 accumulate,
    # f32 epilogue (v5e VPU has no bf16).
    h = jnp.dot(x, w1_ref[...], preferred_element_type=jnp.float32) + b1_ref[...]
    h = jnp.maximum(h, 0.0)                                            # [TS, 2048]
    acc_ref[...] += jnp.sum(h, axis=0, keepdims=True)                  # pooled 2048-d

    @pl.when(s == pl.num_programs(1) - 1)
    def _fin():
        # spatial mean, then Conv3d(2048,512,1x1x1) applied ONCE per (b,t).
        pooled = (acc_ref[...] * inv_hw).astype(jnp.bfloat16)          # [1, 2048]
        o_ref[0] = (jnp.dot(pooled, w2_ref[...],
                            preferred_element_type=jnp.float32) + b2_ref[...])


def backbone_pool(x_bt, w1, b1, w2, b2):
    """x_bt:[BT, HW, 3] bf16 -> pooled [BT, 512] f32."""
    BT, HW, C = x_bt.shape
    TS = HW                                   # single tile for tiny HW (demo: 4)
    for cand in (256, 128, 64, 32, 16, 8):    # (8,.)-aligned spatial tiles when possible
        if HW % cand == 0:
            TS = cand
            break
    S = HW // TS
    out = pl.pallas_call(
        functools.partial(_backbone_pool_kernel, inv_hw=1.0 / HW),
        out_shape=jax.ShapeDtypeStruct((BT, 1, 512), jnp.float32),
        grid=(BT, S),
        in_specs=[
            pl.BlockSpec((1, TS, C), lambda bt, s: (bt, s, 0)),
            pl.BlockSpec(w1.shape, lambda bt, s: (0, 0)),
            pl.BlockSpec(b1.shape, lambda bt, s: (0, 0)),
            pl.BlockSpec(w2.shape, lambda bt, s: (0, 0)),
            pl.BlockSpec(b2.shape, lambda bt, s: (0, 0)),
        ],
        out_specs=pl.BlockSpec((1, 1, 512), lambda bt, s: (bt, 0, 0)),
        scratch_shapes=[pltpu.VMEM((1, 2048), jnp.float32)],
        compiler_params=pltpu.CompilerParams(
            dimension_semantics=("parallel", "arbitrary"),
            vmem_limit_bytes=VMEM_LIMIT),
    )(x_bt, w1, b1, w2, b2)
    return out[:, 0, :]


# ========= Kernel 2: coord branch + 3x nonlocal + box mean + classifier =======
def _coord_nl_cls_kernel(
        coords_ref, onehot_ref, gf_ref, embed_ref,
        ctf0w_ref, ctf0t_ref, ctf1w_ref, ctf1t_ref,
        ccfwa_ref, ccfwb_ref, ccft_ref, msp_ref,
        snf0wa_ref, snf0wb_ref, snf0t_ref, snf1w_ref, snf1t_ref,
        sel_ref, bff0w_ref, bff0t_ref, bff1w_ref, bff1t_ref,
        nlwt_ref, nlbt_ref, nlwp_ref, nlbp_ref, nlwg_ref, nlbg_ref,
        nlwo_ref, nlbo_ref, nlsnl_ref, nltnl_ref, nlwc_ref, nlsc_ref, nltc_ref,
        cls0wg_ref, cls0wc_ref, cls0b_ref, cls1w_ref, cls1b_ref,
        cls2w_ref, cls2b_ref, o_ref, *, P, T2, D, n_nl):
    """Whole coordinate / nonlocal / classifier path for a single video."""
    f32 = jnp.float32
    dot = functools.partial(jnp.dot, preferred_element_type=f32)

    x4 = coords_ref[0]                             # [P*T2, 4]  (rows p-major, t-minor)
    oh = onehot_ref[0]                             # [P*T2, 3]

    # c_coord_to_feature: (Linear+BN+ReLU) x2, BN folded into W/shift.
    h = jnp.maximum(dot(x4, ctf0w_ref[...]) + ctf0t_ref[...], 0.0)     # [N, D/2]
    h = jnp.maximum(dot(h, ctf1w_ref[...]) + ctf1t_ref[...], 0.0)      # [N, D]
    # Embedding(3, D/2, padding_idx=0) as a one-hot matmul (row 0 is zero).
    emb = dot(oh, embed_ref[...])                                      # [N, D/2]
    # c_coord_category_fusion on concat([h, emb]) -> split matmul (no lane concat).
    bf = jnp.maximum(dot(h, ccfwa_ref[...]) + dot(emb, ccfwb_ref[...])
                     + ccft_ref[...], 0.0)                             # [N, D]
    # spatial message: (sum over boxes - self)/(P-1) per frame, as one mixing matmul.
    msg = dot(msp_ref[...], bf)                                        # [N, D]
    # c_spatial_node_fusion on concat([bf, msg]) -> split matmul.
    bs = jnp.maximum(dot(bf, snf0wa_ref[...]) + dot(msg, snf0wb_ref[...])
                     + snf0t_ref[...], 0.0)
    bs = jnp.maximum(dot(bs, snf1w_ref[...]) + snf1t_ref[...], 0.0)    # [N, D]
    # c_box_feature_fusion: per-box T2*D flatten expressed as sum_t sel_t@bs@W0_t.
    acc = jnp.zeros((P, D), f32)
    for t in range(T2):                                                # static unroll
        rows_t = dot(sel_ref[t], bs)                                   # [P, D] = bs[p*T2+t]
        acc = acc + dot(rows_t, bff0w_ref[t])
    bn = jnp.maximum(acc + bff0t_ref[...], 0.0)
    bn = jnp.maximum(dot(bn, bff1w_ref[...]) + bff1t_ref[...], 0.0)    # [P, D]

    # 3 x (Nonlocal(softmax) + Conv1d(k=1, no bias) + BN + ReLU), unrolled.
    # The dim_inner**-0.5 softmax scale is pre-folded into the theta weights.
    xnl = bn
    for i in range(n_nl):
        theta = dot(xnl, nlwt_ref[i]) + nlbt_ref[i]                    # [P, Di] (pre-scaled)
        phi = dot(xnl, nlwp_ref[i]) + nlbp_ref[i]
        g = dot(xnl, nlwg_ref[i]) + nlbg_ref[i]
        aff = jax.lax.dot_general(theta, phi, (((1,), (1,)), ((), ())),
                                  preferred_element_type=f32)          # [P, P]
        aff = aff - jnp.max(aff, axis=-1, keepdims=True)
        e = jnp.exp(aff)
        denom = jnp.sum(e, axis=-1, keepdims=True)
        attn = e * pl.reciprocal(denom, approx=True)                   # softmax over keys
        tg = dot(attn, g)                                              # [P, Di]
        pnl = dot(tg, nlwo_ref[i]) + nlbo_ref[i]                       # [P, D]
        pnl = pnl * nlsnl_ref[i] + nltnl_ref[i]                        # Nonlocal out BN
        y = xnl + pnl                                                  # residual
        z = dot(y, nlwc_ref[i])                                        # Conv1d k=1, no bias
        xnl = jnp.maximum(z * nlsc_ref[i] + nltc_ref[i], 0.0)          # BN + ReLU

    coord_ft = jnp.mean(xnl, axis=0, keepdims=True)                    # mean over boxes [1, D]

    # classifier on concat([_gf, coord_ft]) -> split matmul; output padded to 128 lanes.
    gf = gf_ref[0]                                                     # [1, 512]
    hc = jnp.maximum(dot(gf, cls0wg_ref[...]) + dot(coord_ft, cls0wc_ref[...])
                     + cls0b_ref[...], 0.0)
    hc = jnp.maximum(dot(hc, cls1w_ref[...]) + cls1b_ref[...], 0.0)
    logits = dot(hc, cls2w_ref[...]) + cls2b_ref[...]                  # [1, CLS_PAD]
    o_ref[0] = logits


def coord_nl_classifier(coords, onehot, gf, msp, sel, params):
    b = coords.shape[0]
    D = COORD_DIM
    nl = params['nl']
    const_args = (
        params['cat_embed'],
        params['ctf0_w'], params['ctf0_t'], params['ctf1_w'], params['ctf1_t'],
        params['ccf_wa'], params['ccf_wb'], params['ccf_t'],
        msp,
        params['snf0_wa'], params['snf0_wb'], params['snf0_t'],
        params['snf1_w'], params['snf1_t'],
        sel, params['bff0_w3'], params['bff0_t'], params['bff1_w'], params['bff1_t'],
        nl['wt'], nl['bt'], nl['wp'], nl['bp'], nl['wg'], nl['bg'],
        nl['wo'], nl['bo'], nl['snl'], nl['tnl'], nl['wc'], nl['sc'], nl['tc'],
        params['cls0_wg'], params['cls0_wc'], params['cls0_b'],
        params['cls1_w'], params['cls1_b'],
        params['cls2_w'], params['cls2_b'],
    )

    def _batch_spec(shape):
        tail = (0,) * (len(shape) - 1)
        return pl.BlockSpec((1,) + tuple(shape[1:]), lambda v, _t=tail: (v,) + _t)

    def _const_spec(a):
        zeros = (0,) * a.ndim
        return pl.BlockSpec(a.shape, lambda v, _z=zeros: _z)

    in_specs = [_batch_spec(coords.shape), _batch_spec(onehot.shape), _batch_spec(gf.shape)]
    in_specs += [_const_spec(a) for a in const_args]

    return pl.pallas_call(
        functools.partial(_coord_nl_cls_kernel, P=NUM_BOXES, T2=NUM_FRAMES // 2,
                          D=D, n_nl=NR_NONLOCAL),
        out_shape=jax.ShapeDtypeStruct((b, 1, CLS_PAD), jnp.float32),
        grid=(b,),
        in_specs=in_specs,
        out_specs=pl.BlockSpec((1, 1, CLS_PAD), lambda v: (v, 0, 0)),
        compiler_params=pltpu.CompilerParams(
            dimension_semantics=("parallel",),
            vmem_limit_bytes=VMEM_LIMIT),
    )(coords, onehot, gf, *const_args)


# ============================ parameter construction ==========================
def _bn_affine(key, dim, eps=1e-5):
    k1, k2, k3, k4 = jax.random.split(key, 4)
    gamma = 1.0 + 0.1 * jax.random.normal(k1, (dim,))
    beta = 0.1 * jax.random.normal(k2, (dim,))
    mean = 0.1 * jax.random.normal(k3, (dim,))
    var = 0.5 + 0.5 * jnp.abs(jax.random.normal(k4, (dim,)))
    s = gamma / jnp.sqrt(var + eps)
    t = beta - mean * s
    return s.astype(jnp.float32), t.astype(jnp.float32)


def _linear(key, in_dim, out_dim, scale=0.05):
    k1, k2 = jax.random.split(key)
    w = scale * jax.random.normal(k1, (out_dim, in_dim))      # torch layout [out, in]
    b = scale * jax.random.normal(k2, (out_dim,))
    return w.T.astype(jnp.float32), b.astype(jnp.float32)     # stored as [in, out]


def _linear_bn(key, in_dim, out_dim, scale=0.05):
    """Linear(no bias) + BatchNorm1d (eval) folded into W' and shift."""
    k1, k2 = jax.random.split(key)
    w = scale * jax.random.normal(k1, (out_dim, in_dim))
    s, t = _bn_affine(k2, out_dim)
    wf = (w * s[:, None]).T.astype(jnp.float32)
    return wf, t


def _nonlocal_params(key, D, Di):
    ks = jax.random.split(key, 7)
    wt, bt = _linear(ks[0], D, Di)
    # Fold the softmax scale (dim_inner**-0.5) into theta host-side: the kernel
    # then does zero extra VPU work for it.
    scale = float(Di) ** -0.5
    wt = wt * scale
    bt = bt * scale
    wp, bp = _linear(ks[1], D, Di)
    wg, bg = _linear(ks[2], D, Di)
    wo, bo = _linear(ks[3], Di, D)
    snl, tnl = _bn_affine(ks[4], D)
    wc = (0.05 * jax.random.normal(ks[5], (D, D))).T.astype(jnp.float32)
    sc, tc = _bn_affine(ks[6], D)
    return dict(wt=wt, bt=bt.reshape(1, Di), wp=wp, bp=bp.reshape(1, Di),
                wg=wg, bg=bg.reshape(1, Di), wo=wo, bo=bo.reshape(1, D),
                snl=snl.reshape(1, D), tnl=tnl.reshape(1, D),
                wc=wc, sc=sc.reshape(1, D), tc=tc.reshape(1, D))


def init_params(key):
    D = COORD_DIM
    Dh = D // 2
    T2 = NUM_FRAMES // 2
    keys = jax.random.split(key, 16)
    p = {}
    # TODO(synk): i3D backbone weights replaced with a deterministic stub projection.
    w, b = _linear(keys[0], 3, 2048)
    p['i3d_w'], p['i3d_b'] = w, b.reshape(1, 2048)
    # Conv3d(2048, 512, kernel=1) == per-position linear with bias
    w, b = _linear(keys[1], 2048, 512)
    p['conv_w'], p['conv_b'] = w, b.reshape(1, 512)
    # Embedding(3, D//2, padding_idx=0)
    emb = 0.1 * jax.random.normal(keys[2], (3, Dh)).astype(jnp.float32)
    p['cat_embed'] = emb.at[0].set(0.0)
    # c_coord_to_feature
    w, t = _linear_bn(keys[3], 4, Dh);  p['ctf0_w'], p['ctf0_t'] = w, t.reshape(1, Dh)
    w, t = _linear_bn(keys[4], Dh, D);  p['ctf1_w'], p['ctf1_t'] = w, t.reshape(1, D)
    # c_coord_category_fusion (input = concat([bf(D), emb(D/2)])) — split weight
    w, t = _linear_bn(keys[5], D + Dh, D)
    p['ccf_wa'], p['ccf_wb'], p['ccf_t'] = w[:D], w[D:], t.reshape(1, D)
    # c_spatial_node_fusion (input = concat([bf(D), msg(D)])) — split weight
    w, t = _linear_bn(keys[6], 2 * D, D)
    p['snf0_wa'], p['snf0_wb'], p['snf0_t'] = w[:D], w[D:], t.reshape(1, D)
    w, t = _linear_bn(keys[7], D, D);   p['snf1_w'], p['snf1_t'] = w, t.reshape(1, D)
    # c_box_feature_fusion (input = T2*D per box) — reshape weight to [T2, D, D]
    w, t = _linear_bn(keys[8], T2 * D, D)
    p['bff0_w3'], p['bff0_t'] = w.reshape(T2, D, D), t.reshape(1, D)
    w, t = _linear_bn(keys[9], D, D);   p['bff1_w'], p['bff1_t'] = w, t.reshape(1, D)
    # c_nonlocal_fusion: 3 layers, parameters stacked on a leading axis
    nl_list = [_nonlocal_params(k, D, Dh) for k in jax.random.split(keys[10], NR_NONLOCAL)]
    p['nl'] = {k: jnp.stack([layer[k] for layer in nl_list]) for k in nl_list[0]}
    # classifier (concat order in forward: [_gf(512), coord_ft(D)]) — split weight
    w, b = _linear(keys[13], D + 2 * IMG_FEATURE_DIM, D)
    p['cls0_wg'], p['cls0_wc'] = w[:2 * IMG_FEATURE_DIM], w[2 * IMG_FEATURE_DIM:]
    p['cls0_b'] = b.reshape(1, D)
    w, b = _linear(keys[14], D, 512);   p['cls1_w'], p['cls1_b'] = w, b.reshape(1, 512)
    w, b = _linear(keys[15], 512, NUM_CLASSES)
    p['cls2_w'] = jnp.pad(w, ((0, 0), (0, CLS_PAD - NUM_CLASSES)))   # lane-dense pad
    p['cls2_b'] = jnp.pad(b, ((0, CLS_PAD - NUM_CLASSES),)).reshape(1, CLS_PAD)
    return p


# ============================ forward pass ====================================
def forward(params, global_img_input, box_categories, box_input, video_label=None,
            is_inference=False):
    del video_label, is_inference          # dropout is never applied in the torch forward
    b = global_img_input.shape[0]
    T2 = NUM_FRAMES // 2
    P = NUM_BOXES
    Nv = P * T2

    # ---------------- i3D stub + fused Conv3d(2048->512,1x1x1) + spatial mean --
    # TODO(synk): real i3D (ResNet3D) backbone not reproducible here (external Net).
    x = global_img_input                                        # [b, 3, T, H, W]
    _, C, T, H, W = x.shape
    tsub, ssub = 2, 16
    x = x.reshape(b, C, T // tsub, tsub, H // ssub, ssub, W // ssub, ssub).mean(axis=(3, 5, 7))
    Hs, Ws = H // ssub, W // ssub
    x_bt = jnp.transpose(x, (0, 2, 3, 4, 1)).reshape(b * T2, Hs * Ws, C).astype(jnp.bfloat16)

    pooled = backbone_pool(
        x_bt,
        params['i3d_w'].astype(jnp.bfloat16), params['i3d_b'],
        params['conv_w'].astype(jnp.bfloat16), params['conv_b'])        # [b*T2, 512]
    pooled = pooled.reshape(b, T2, 512)
    # Replicate torch's `.mean(-1).mean(-1).view(b, T2, 512).mean(1)`: the raw .view()
    # on a contiguous [b, 512, T2] tensor deliberately scrambles channel/time — keep it.
    pooled_cf = jnp.transpose(pooled, (0, 2, 1))                        # [b, 512, T2]
    _gf = pooled_cf.reshape(b, T2, 2 * IMG_FEATURE_DIM).mean(axis=1)    # [b, 512]

    # ---------------- coordinate / nonlocal / classifier (one fused kernel) ----
    coords = jnp.transpose(box_input, (0, 2, 1, 3)).reshape(b, Nv, 4)
    cats = jnp.transpose(box_categories.astype(jnp.int32), (0, 2, 1)).reshape(b, Nv)
    onehot = jax.nn.one_hot(cats, 3, dtype=jnp.float32)                 # embedding as matmul

    # Constant mixing / selection matrices (replace in-kernel reshapes with matmuls).
    t_of = jnp.arange(Nv) % T2
    # NOTE: requires P > 1 (divide by P-1), as in the reference model.
    msp = ((t_of[:, None] == t_of[None, :]).astype(jnp.float32)
           - jnp.eye(Nv, dtype=jnp.float32)) / float(P - 1)             # [Nv, Nv]
    tgt = jnp.arange(P)[None, :, None] * T2 + jnp.arange(T2)[:, None, None]
    sel = (jnp.arange(Nv)[None, None, :] == tgt).astype(jnp.float32)    # [T2, P, Nv]

    logits = coord_nl_classifier(coords, onehot,
                                 _gf.reshape(b, 1, 2 * IMG_FEATURE_DIM),
                                 msp, sel, params)                      # [b, 1, CLS_PAD]
    return logits[:, 0, :NUM_CLASSES]


# ============================ driver ==========================================
if __name__ == "__main__":
    key = jax.random.PRNGKey(0)
    k_params, k_img, k_box, k_cat = jax.random.split(key, 4)

    params = init_params(k_params)

    B = 2
    global_img_input = jax.random.normal(
        k_img, (B, 3, NUM_FRAMES, 32, 32), dtype=jnp.float32)
    box_input = jax.random.uniform(
        k_box, (B, NUM_FRAMES // 2, NUM_BOXES, 4), dtype=jnp.float32)
    box_categories = jax.random.randint(
        k_cat, (B, NUM_FRAMES // 2, NUM_BOXES), 0, 3)
    video_label = jnp.zeros((B,), dtype=jnp.int32)

    out = jax.jit(forward)(params, global_img_input, box_categories, box_input, video_label)
    out = jax.block_until_ready(out)
    assert out.shape == (B, NUM_CLASSES), out.shape
    print("KERNEL_OK")
</pallas_src>

<mosaic_0001>
module attributes {stable_mosaic.version = 11 : i64} {
  func.func @_backbone_pool_kernel(%arg0: i32, %arg1: i32, %arg2: memref<1x4x3xbf16, #tpu.memory_space<vmem>>, %arg3: memref<3x2048xbf16, #tpu.memory_space<vmem>>, %arg4: memref<1x2048xf32, #tpu.memory_space<vmem>>, %arg5: memref<2048x512xbf16, #tpu.memory_space<vmem>>, %arg6: memref<1x512xf32, #tpu.memory_space<vmem>>, %arg7: memref<1x1x512xf32, #tpu.memory_space<vmem>>, %arg8: memref<1x2048xf32, #tpu.memory_space<vmem>>) attributes {dimension_semantics = [#tpu.dimension_semantics<parallel>, #tpu.dimension_semantics<arbitrary>], iteration_bounds = array<i64: 8, 1>, scalar_prefetch = 0 : i64, scratch_operands = 1 : i64, tpu.core_type = #tpu.core_type<tc>, window_params = [{transform_indices = @transform_0, window_bounds = array<i64: 1, 4, 3>}, {pipeline_mode = #tpu.pipeline_mode<synchronous>, transform_indices = @transform_1, window_bounds = array<i64: 3, 2048>}, {pipeline_mode = #tpu.pipeline_mode<synchronous>, transform_indices = @transform_2, window_bounds = array<i64: 1, 2048>}, {pipeline_mode = #tpu.pipeline_mode<synchronous>, transform_indices = @transform_3, window_bounds = array<i64: 2048, 512>}, {pipeline_mode = #tpu.pipeline_mode<synchronous>, transform_indices = @transform_4, window_bounds = array<i64: 1, 512>}, {transform_indices = @transform_5, window_bounds = array<i64: 1, 1, 512>}]} {
    %c0_i32 = arith.constant 0 : i32
    %0 = arith.cmpi eq, %arg1, %c0_i32 : i32
    %1 = arith.extui %0 : i1 to i32
    %c0_i32_0 = arith.constant 0 : i32
    %2 = arith.cmpi ne, %1, %c0_i32_0 : i32
    scf.if %2 {
      %cst_15 = arith.constant 0.000000e+00 : f32
      %20 = vector.broadcast %cst_15 : f32 to vector<1x2048xf32>
      %c0_16 = arith.constant 0 : index
      %c0_17 = arith.constant 0 : index
      %21 = vector.load %arg8[%c0_16, %c0_17] : memref<1x2048xf32, #tpu.memory_space<vmem>>, vector<1x2048xf32>
      tpu.vector_store %arg8[%c0_16, %c0_17], %20 {strides = array<i32>} : memref<1x2048xf32, #tpu.memory_space<vmem>>, vector<1x2048xf32>,
    } else {
    }
    %c0 = arith.constant 0 : index
    %c0_1 = arith.constant 0 : index
    %c0_2 = arith.constant 0 : index
    %3 = vector.load %arg2[%c0, %c0_1, %c0_2] : memref<1x4x3xbf16, #tpu.memory_space<vmem>>, vector<1x4x3xbf16>
    %4 = vector.shape_cast %3 : vector<1x4x3xbf16> to vector<4x3xbf16>
    %c0_3 = arith.constant 0 : index
    %c0_4 = arith.constant 0 : index
    %5 = vector.load %arg3[%c0_3, %c0_4] : memref<3x2048xbf16, #tpu.memory_space<vmem>>, vector<3x2048xbf16>
    %cst = arith.constant dense<0.000000e+00> : vector<4x2048xf32>
    %6 = tpu.matmul %4, %5, %cst {dimension_numbers = #tpu.dot_dimension_numbers<[1], [0], [0], [1], [0, 0, 1, 1], [], []>} : vector<4x3xbf16>, vector<3x2048xbf16>, vector<4x2048xf32> -> vector<4x2048xf32>
    %c0_5 = arith.constant 0 : index
    %c0_6 = arith.constant 0 : index
    %7 = vector.load %arg4[%c0_5, %c0_6] : memref<1x2048xf32, #tpu.memory_space<vmem>>, vector<1x2048xf32>
    %8 = vector.broadcast %7 : vector<1x2048xf32> to vector<4x2048xf32>
    %9 = arith.addf %6, %8 : vector<4x2048xf32>
    %cst_7 = arith.constant 0.000000e+00 : f32
    %10 = vector.broadcast %cst_7 : f32 to vector<4x2048xf32>
    %11 = arith.maximumf %9, %10 : vector<4x2048xf32>
    %c0_8 = arith.constant 0 : index
    %c0_9 = arith.constant 0 : index
    %12 = vector.load %arg8[%c0_8, %c0_9] : memref<1x2048xf32, #tpu.memory_space<vmem>>, vector<1x2048xf32>
    %cst_10 = arith.constant dense<0.000000e+00> : vector<2048xf32>
    %13 = vector.multi_reduction <add>, %11, %cst_10 [0] : vector<4x2048xf32> to vector<2048xf32>
    %14 = vector.shape_cast %13 : vector<2048xf32> to vector<1x2048xf32>
    %15 = arith.addf %12, %14 : vector<1x2048xf32>
    %c0_11 = arith.constant 0 : index
    %c0_12 = arith.constant 0 : index
    %16 = vector.load %arg8[%c0_11, %c0_12] : memref<1x2048xf32, #tpu.memory_space<vmem>>, vector<1x2048xf32>
    tpu.vector_store %arg8[%c0_11, %c0_12], %15 {strides = array<i32>} : memref<1x2048xf32, #tpu.memory_space<vmem>>, vector<1x2048xf32>,
    %c0_i32_13 = arith.constant 0 : i32
    %17 = arith.cmpi eq, %arg1, %c0_i32_13 : i32
    %18 = arith.extui %17 : i1 to i32
    %c0_i32_14 = arith.constant 0 : i32
    %19 = arith.cmpi ne, %18, %c0_i32_14 : i32
    scf.if %19 {
      %c0_15 = arith.constant 0 : index
      %c0_16 = arith.constant 0 : index
      %20 = vector.load %arg8[%c0_15, %c0_16] : memref<1x2048xf32, #tpu.memory_space<vmem>>, vector<1x2048xf32>
      %cst_17 = arith.constant 2.500000e-01 : f32
      %21 = vector.broadcast %cst_17 : f32 to vector<1x2048xf32>
      %22 = arith.mulf %20, %21 : vector<1x2048xf32>
      %23 = arith.truncf %22 : vector<1x2048xf32> to vector<1x2048xbf16>
      %c0_18 = arith.constant 0 : index
      %c0_19 = arith.constant 0 : index
      %24 = vector.load %arg5[%c0_18, %c0_19] : memref<2048x512xbf16, #tpu.memory_space<vmem>>, vector<2048x512xbf16>
      %cst_20 = arith.constant dense<0.000000e+00> : vector<1x512xf32>
      %25 = tpu.matmul %23, %24, %cst_20 {dimension_numbers = #tpu.dot_dimension_numbers<[1], [0], [0], [1], [0, 0, 1, 1], [], []>} : vector<1x2048xbf16>, vector<2048x512xbf16>, vector<1x512xf32> -> vector<1x512xf32>
      %c0_21 = arith.constant 0 : index
      %c0_22 = arith.constant 0 : index
      %26 = vector.load %arg6[%c0_21, %c0_22] : memref<1x512xf32, #tpu.memory_space<vmem>>, vector<1x512xf32>
      %27 = arith.addf %25, %26 : vector<1x512xf32>
      %c0_23 = arith.constant 0 : index
      %c0_24 = arith.constant 0 : index
      %c0_25 = arith.constant 0 : index
      %28 = vector.load %arg7[%c0_23, %c0_24, %c0_25] : memref<1x1x512xf32, #tpu.memory_space<vmem>>, vector<1x1x512xf32>
      %29 = vector.shape_cast %28 : vector<1x1x512xf32> to vector<1x512xf32>
      %30 = vector.shape_cast %27 : vector<1x512xf32> to vector<1x1x512xf32>
      tpu.vector_store %arg7[%c0_23, %c0_24, %c0_25], %30 {strides = array<i32>} : memref<1x1x512xf32, #tpu.memory_space<vmem>>, vector<1x1x512xf32>,
    } else {
    }
    return
  }
  func.func @transform_0(%arg0: i32, %arg1: i32) -> (i32, i32, i32) {
    %c0_i32 = arith.constant 0 : i32
    %c0_i32_0 = arith.constant 0 : i32
    return %arg0, %arg1, %c0_i32 : i32, i32, i32
  }
  func.func @transform_1(%arg0: i32, %arg1: i32) -> (i32, i32) {
    %c0_i32 = arith.constant 0 : i32
    %c0_i32_0 = arith.constant 0 : i32
    %c0_i32_1 = arith.constant 0 : i32
    return %c0_i32, %c0_i32_0 : i32, i32
  }
  func.func @transform_2(%arg0: i32, %arg1: i32) -> (i32, i32) {
    %c0_i32 = arith.constant 0 : i32
    %c0_i32_0 = arith.constant 0 : i32
    %c0_i32_1 = arith.constant 0 : i32
    return %c0_i32, %c0_i32_0 : i32, i32
  }
  func.func @transform_3(%arg0: i32, %arg1: i32) -> (i32, i32) {
    %c0_i32 = arith.constant 0 : i32
    %c0_i32_0 = arith.constant 0 : i32
    %c0_i32_1 = arith.constant 0 : i32
    return %c0_i32, %c0_i32_0 : i32, i32
  }
  func.func @transform_4(%arg0: i32, %arg1: i32) -> (i32, i32) {
    %c0_i32 = arith.constant 0 : i32
    %c0_i32_0 = arith.constant 0 : i32
    %c0_i32_1 = arith.constant 0 : i32
    return %c0_i32, %c0_i32_0 : i32, i32
  }
  func.func @transform_5(%arg0: i32, %arg1: i32) -> (i32, i32, i32) {
    %c0_i32 = arith.constant 0 : i32
    %c0_i32_0 = arith.constant 0 : i32
    %c0_i32_1 = arith.constant 0 : i32
    return %arg0, %c0_i32, %c0_i32_0 : i32, i32, i32
  }
}

module attributes {stable_mosaic.version = 11 : i64} {
  func.func @_coord_nl_cls_kernel(%arg0: i32, %arg1: memref<1x16x4xf32, #tpu.memory_space<vmem>>, %arg2: memref<1x16x3xf32, #tpu.memory_space<vmem>>, %arg3: memref<1x1x512xf32, #tpu.memory_space<vmem>>, %arg4: memref<3x16xf32, #tpu.memory_space<vmem>>, %arg5: memref<4x16xf32, #tpu.memory_space<vmem>>, %arg6: memref<1x16xf32, #tpu.memory_space<vmem>>, %arg7: memref<16x32xf32, #tpu.memory_space<vmem>>, %arg8: memref<1x32xf32, #tpu.memory_space<vmem>>, %arg9: memref<32x32xf32, #tpu.memory_space<vmem>>, %arg10: memref<16x32xf32, #tpu.memory_space<vmem>>, %arg11: memref<1x32xf32, #tpu.memory_space<vmem>>, %arg12: memref<16x16xf32, #tpu.memory_space<vmem>>, %arg13: memref<32x32xf32, #tpu.memory_space<vmem>>, %arg14: memref<32x32xf32, #tpu.memory_space<vmem>>, %arg15: memref<1x32xf32, #tpu.memory_space<vmem>>, %arg16: memref<32x32xf32, #tpu.memory_space<vmem>>, %arg17: memref<1x32xf32, #tpu.memory_space<vmem>>, %arg18: memref<4x4x16xf32, #tpu.memory_space<vmem>>, %arg19: memref<4x32x32xf32, #tpu.memory_space<vmem>>, %arg20: memref<1x32xf32, #tpu.memory_space<vmem>>, %arg21: memref<32x32xf32, #tpu.memory_space<vmem>>, %arg22: memref<1x32xf32, #tpu.memory_space<vmem>>, %arg23: memref<3x32x16xf32, #tpu.memory_space<vmem>>, %arg24: memref<3x1x16xf32, #tpu.memory_space<vmem>>, %arg25: memref<3x32x16xf32, #tpu.memory_space<vmem>>, %arg26: memref<3x1x16xf32, #tpu.memory_space<vmem>>, %arg27: memref<3x32x16xf32, #tpu.memory_space<vmem>>, %arg28: memref<3x1x16xf32, #tpu.memory_space<vmem>>, %arg29: memref<3x16x32xf32, #tpu.memory_space<vmem>>, %arg30: memref<3x1x32xf32, #tpu.memory_space<vmem>>, %arg31: memref<3x1x32xf32, #tpu.memory_space<vmem>>, %arg32: memref<3x1x32xf32, #tpu.memory_space<vmem>>, %arg33: memref<3x32x32xf32, #tpu.memory_space<vmem>>, %arg34: memref<3x1x32xf32, #tpu.memory_space<vmem>>, %arg35: memref<3x1x32xf32, #tpu.memory_space<vmem>>, %arg36: memref<512x32xf32, #tpu.memory_space<vmem>>, %arg37: memref<32x32xf32, #tpu.memory_space<vmem>>, %arg38: memref<1x32xf32, #tpu.memory_space<vmem>>, %arg39: memref<32x512xf32, #tpu.memory_space<vmem>>, %arg40: memref<1x512xf32, #tpu.memory_space<vmem>>, %arg41: memref<512x128xf32, #tpu.memory_space<vmem>>, %arg42: memref<1x128xf32, #tpu.memory_space<vmem>>, %arg43: memref<1x1x128xf32, #tpu.memory_space<vmem>>) attributes {dimension_semantics = [#tpu.dimension_semantics<parallel>], iteration_bounds = array<i64: 2>, scalar_prefetch = 0 : i64, scratch_operands = 0 : i64, tpu.core_type = #tpu.core_type<tc>, window_params = [{transform_indices = @transform_0, window_bounds = array<i64: 1, 16, 4>}, {transform_indices = @transform_1, window_bounds = array<i64: 1, 16, 3>}, {transform_indices = @transform_2, window_bounds = array<i64: 1, 1, 512>}, {pipeline_mode = #tpu.pipeline_mode<synchronous>, transform_indices = @transform_3, window_bounds = array<i64: 3, 16>}, {pipeline_mode = #tpu.pipeline_mode<synchronous>, transform_indices = @transform_4, window_bounds = array<i64: 4, 16>}, {pipeline_mode = #tpu.pipeline_mode<synchronous>, transform_indices = @transform_5, window_bounds = array<i64: 1, 16>}, {pipeline_mode = #tpu.pipeline_mode<synchronous>, transform_indices = @transform_6, window_bounds = array<i64: 16, 32>}, {pipeline_mode = #tpu.pipeline_mode<synchronous>, transform_indices = @transform_7, window_bounds = array<i64: 1, 32>}, {pipeline_mode = #tpu.pipeline_mode<synchronous>, transform_indices = @transform_8, window_bounds = array<i64: 32, 32>}, {pipeline_mode = #tpu.pipeline_mode<synchronous>, transform_indices = @transform_9, window_bounds = array<i64: 16, 32>}, {pipeline_mode = #tpu.pipeline_mode<synchronous>, transform_indices = @transform_10, window_bounds = array<i64: 1, 32>}, {pipeline_mode = #tpu.pipeline_mode<synchronous>, transform_indices = @transform_11, window_bounds = array<i64: 16, 16>}, {pipeline_mode = #tpu.pipeline_mode<synchronous>, transform_indices = @transform_12, window_bounds = array<i64: 32, 32>}, {pipeline_mode = #tpu.pipeline_mode<synchronous>, transform_indices = @transform_13, window_bounds = array<i64: 32, 32>}, {pipeline_mode = #tpu.pipeline_mode<synchronous>, transform_indices = @transform_14, window_bounds = array<i64: 1, 32>}, {pipeline_mode = #tpu.pipeline_mode<synchronous>, transform_indices = @transform_15, window_bounds = array<i64: 32, 32>}, {pipeline_mode = #tpu.pipeline_mode<synchronous>, transform_indices = @transform_16, window_bounds = array<i64: 1, 32>}, {pipeline_mode = #tpu.pipeline_mode<synchronous>, transform_indices = @transform_17, window_bounds = array<i64: 4, 4, 16>}, {pipeline_mode = #tpu.pipeline_mode<synchronous>, transform_indices = @transform_18, window_bounds = array<i64: 4, 32, 32>}, {pipeline_mode = #tpu.pipeline_mode<synchronous>, transform_indices = @transform_19, window_bounds = array<i64: 1, 32>}, {pipeline_mode = #tpu.pipeline_mode<synchronous>, transform_indices = @transform_20, window_bounds = array<i64: 32, 32>}, {pipeline_mode = #tpu.pipeline_mode<synchronous>, transform_indices = @transform_21, window_bounds = array<i64: 1, 32>}, {pipeline_mode = #tpu.pipeline_mode<synchronous>, transform_indices = @transform_22, window_bounds = array<i64: 3, 32, 16>}, {pipeline_mode = #tpu.pipeline_mode<synchronous>, transform_indices = @transform_23, window_bounds = array<i64: 3, 1, 16>}, {pipeline_mode = #tpu.pipeline_mode<synchronous>, transform_indices = @transform_24, window_bounds = array<i64: 3, 32, 16>}, {pipeline_mode = #tpu.pipeline_mode<synchronous>, transform_indices = @transform_25, window_bounds = array<i64: 3, 1, 16>}, {pipeline_mode = #tpu.pipeline_mode<synchronous>, transform_indices = @transform_26, window_bounds = array<i64: 3, 32, 16>}, {pipeline_mode = #tpu.pipeline_mode<synchronous>, transform_indices = @transform_27, window_bounds = array<i64: 3, 1, 16>}, {pipeline_mode = #tpu.pipeline_mode<synchronous>, transform_indices = @transform_28, window_bounds = array<i64: 3, 16, 32>}, {pipeline_mode = #tpu.pipeline_mode<synchronous>, transform_indices = @transform_29, window_bounds = array<i64: 3, 1, 32>}, {pipeline_mode = #tpu.pipeline_mode<synchronous>, transform_indices = @transform_30, window_bounds = array<i64: 3, 1, 32>}, {pipeline_mode = #tpu.pipeline_mode<synchronous>, transform_indices = @transform_31, window_bounds = array<i64: 3, 1, 32>}, {pipeline_mode = #tpu.pipeline_mode<synchronous>, transform_indices = @transform_32, window_bounds = array<i64: 3, 32, 32>}, {pipeline_mode = #tpu.pipeline_mode<synchronous>, transform_indices = @transform_33, window_bounds = array<i64: 3, 1, 32>}, {pipeline_mode = #tpu.pipeline_mode<synchronous>, transform_indices = @transform_34, window_bounds = array<i64: 3, 1, 32>}, {pipeline_mode = #tpu.pipeline_mode<synchronous>, transform_indices = @transform_35, window_bounds = array<i64: 512, 32>}, {pipeline_mode = #tpu.pipeline_mode<synchronous>, transform_indices = @transform_36, window_bounds = array<i64: 32, 32>}, {pipeline_mode = #tpu.pipeline_mode<synchronous>, transform_indices = @transform_37, window_bounds = array<i64: 1, 32>}, {pipeline_mode = #tpu.pipeline_mode<synchronous>, transform_indices = @transform_38, window_bounds = array<i64: 32, 512>}, {pipeline_mode = #tpu.pipeline_mode<synchronous>, transform_indices = @transform_39, window_bounds = array<i64: 1, 512>}, {pipeline_mode = #tpu.pipeline_mode<synchronous>, transform_indices = @transform_40, window_bounds = array<i64: 512, 128>}, {pipeline_mode = #tpu.pipeline_mode<synchronous>, transform_indices = @transform_41, window_bounds = array<i64: 1, 128>}, {transform_indices = @transform_42, window_bounds = array<i64: 1, 1, 128>}]} {
    %c0 = arith.constant 0 : index
    %c0_0 = arith.constant 0 : index
    %c0_1 = arith.constant 0 : index
    %0 = vector.load %arg1[%c0, %c0_0, %c0_1] : memref<1x16x4xf32, #tpu.memory_space<vmem>>, vector<1x16x4xf32>
    %1 = vector.shape_cast %0 : vector<1x16x4xf32> to vector<16x4xf32>
    %c0_2 = arith.constant 0 : index
    %c0_3 = arith.constant 0 : index
    %c0_4 = arith.constant 0 : index
    %2 = vector.load %arg2[%c0_2, %c0_3, %c0_4] : memref<1x16x3xf32, #tpu.memory_space<vmem>>, vector<1x16x3xf32>
    %3 = vector.shape_cast %2 : vector<1x16x3xf32> to vector<16x3xf32>
    %c0_5 = arith.constant 0 : index
    %c0_6 = arith.constant 0 : index
    %4 = vector.load %arg5[%c0_5, %c0_6] : memref<4x16xf32, #tpu.memory_space<vmem>>, vector<4x16xf32>
    %cst = arith.constant dense<0.000000e+00> : vector<16x16xf32>
    %5 = tpu.matmul %1, %4, %cst {dimension_numbers = #tpu.dot_dimension_numbers<[1], [0], [0], [1], [0, 0, 1, 1], [], []>} : vector<16x4xf32>, vector<4x16xf32>, vector<16x16xf32> -> vector<16x16xf32>
    %c0_7 = arith.constant 0 : index
    %c0_8 = arith.constant 0 : index
    %6 = vector.load %arg6[%c0_7, %c0_8] : memref<1x16xf32, #tpu.memory_space<vmem>>, vector<1x16xf32>
    %7 = vector.broadcast %6 : vector<1x16xf32> to vector<16x16xf32>
    %8 = arith.addf %5, %7 : vector<16x16xf32>
    %cst_9 = arith.constant 0.000000e+00 : f32
    %9 = vector.broadcast %cst_9 : f32 to vector<16x16xf32>
    %10 = arith.maximumf %8, %9 : vector<16x16xf32>
    %c0_10 = arith.constant 0 : index
    %c0_11 = arith.constant 0 : index
    %11 = vector.load %arg7[%c0_10, %c0_11] : memref<16x32xf32, #tpu.memory_space<vmem>>, vector<16x32xf32>
    %cst_12 = arith.constant dense<0.000000e+00> : vector<16x32xf32>
    %12 = tpu.matmul %10, %11, %cst_12 {dimension_numbers = #tpu.dot_dimension_numbers<[1], [0], [0], [1], [0, 0, 1, 1], [], []>} : vector<16x16xf32>, vector<16x32xf32>, vector<16x32xf32> -> vector<16x32xf32>
    %c0_13 = arith.constant 0 : index
    %c0_14 = arith.constant 0 : index
    %13 = vector.load %arg8[%c0_13, %c0_14] : memref<1x32xf32, #tpu.memory_space<vmem>>, vector<1x32xf32>
    %14 = vector.broadcast %13 : vector<1x32xf32> to vector<16x32xf32>
    %15 = arith.addf %12, %14 : vector<16x32xf32>
    %cst_15 = arith.constant 0.000000e+00 : f32
    %16 = vector.broadcast %cst_15 : f32 to vector<16x32xf32>
    %17 = arith.maximumf %15, %16 : vector<16x32xf32>
    %c0_16 = arith.constant 0 : index
    %c0_17 = arith.constant 0 : index
    %18 = vector.load %arg4[%c0_16, %c0_17] : memref<3x16xf32, #tpu.memory_space<vmem>>, vector<3x16xf32>
    %cst_18 = arith.constant dense<0.000000e+00> : vector<16x16xf32>
    %19 = tpu.matmul %3, %18, %cst_18 {dimension_numbers = #tpu.dot_dimension_numbers<[1], [0], [0], [1], [0, 0, 1, 1], [], []>} : vector<16x3xf32>, vector<3x16xf32>, vector<16x16xf32> -> vector<16x16xf32>
    %c0_19 = arith.constant 0 : index
    %c0_20 = arith.constant 0 : index
    %20 = vector.load %arg9[%c0_19, %c0_20] : memref<32x32xf32, #tpu.memory_space<vmem>>, vector<32x32xf32>
    %cst_21 = arith.constant dense<0.000000e+00> : vector<16x32xf32>
    %21 = tpu.matmul %17, %20, %cst_21 {dimension_numbers = #tpu.dot_dimension_numbers<[1], [0], [0], [1], [0, 0, 1, 1], [], []>} : vector<16x32xf32>, vector<32x32xf32>, vector<16x32xf32> -> vector<16x32xf32>
    %c0_22 = arith.constant 0 : index
    %c0_23 = arith.constant 0 : index
    %22 = vector.load %arg10[%c0_22, %c0_23] : memref<16x32xf32, #tpu.memory_space<vmem>>, vector<16x32xf32>
    %cst_24 = arith.constant dense<0.000000e+00> : vector<16x32xf32>
    %23 = tpu.matmul %19, %22, %cst_24 {dimension_numbers = #tpu.dot_dimension_numbers<[1], [0], [0], [1], [0, 0, 1, 1], [], []>} : vector<16x16xf32>, vector<16x32xf32>, vector<16x32xf32> -> vector<16x32xf32>
    %24 = arith.addf %21, %23 : vector<16x32xf32>
    %c0_25 = arith.constant 0 : index
    %c0_26 = arith.constant 0 : index
    %25 = vector.load %arg11[%c0_25, %c0_26] : memref<1x32xf32, #tpu.memory_space<vmem>>, vector<1x32xf32>
    %26 = vector.broadcast %25 : vector<1x32xf32> to vector<16x32xf32>
    %27 = arith.addf %24, %26 : vector<16x32xf32>
    %cst_27 = arith.constant 0.000000e+00 : f32
    %28 = vector.broadcast %cst_27 : f32 to vector<16x32xf32>
    %29 = arith.maximumf %27, %28 : vector<16x32xf32>
    %c0_28 = arith.constant 0 : index
    %c0_29 = arith.constant 0 : index
    %30 = vector.load %arg12[%c0_28, %c0_29] : memref<16x16xf32, #tpu.memory_space<vmem>>, vector<16x16xf32>
    %cst_30 = arith.constant dense<0.000000e+00> : vector<16x32xf32>
    %31 = tpu.matmul %30, %29, %cst_30 {dimension_numbers = #tpu.dot_dimension_numbers<[1], [0], [0], [1], [0, 0, 1, 1], [], []>} : vector<16x16xf32>, vector<16x32xf32>, vector<16x32xf32> -> vector<16x32xf32>
    %c0_31 = arith.constant 0 : index
    %c0_32 = arith.constant 0 : index
    %32 = vector.load %arg13[%c0_31, %c0_32] : memref<32x32xf32, #tpu.memory_space<vmem>>, vector<32x32xf32>
    %cst_33 = arith.constant dense<0.000000e+00> : vector<16x32xf32>
    %33 = tpu.matmul %29, %32, %cst_33 {dimension_numbers = #tpu.dot_dimension_numbers<[1], [0], [0], [1], [0, 0, 1, 1], [], []>} : vector<16x32xf32>, vector<32x32xf32>, vector<16x32xf32> -> vector<16x32xf32>
    %c0_34 = arith.constant 0 : index
    %c0_35 = arith.constant 0 : index
    %34 = vector.load %arg14[%c0_34, %c0_35] : memref<32x32xf32, #tpu.memory_space<vmem>>, vector<32x32xf32>
    %cst_36 = arith.constant dense<0.000000e+00> : vector<16x32xf32>
    %35 = tpu.matmul %31, %34, %cst_36 {dimension_numbers = #tpu.dot_dimension_numbers<[1], [0], [0], [1], [0, 0, 1, 1], [], []>} : vector<16x32xf32>, vector<32x32xf32>, vector<16x32xf32> -> vector<16x32xf32>
    %36 = arith.addf %33, %35 : vector<16x32xf32>
    %c0_37 = arith.constant 0 : index
    %c0_38 = arith.constant 0 : index
    %37 = vector.load %arg15[%c0_37, %c0_38] : memref<1x32xf32, #tpu.memory_space<vmem>>, vector<1x32xf32>
    %38 = vector.broadcast %37 : vector<1x32xf32> to vector<16x32xf32>
    %39 = arith.addf %36, %38 : vector<16x32xf32>
    %cst_39 = arith.constant 0.000000e+00 : f32
    %40 = vector.broadcast %cst_39 : f32 to vector<16x32xf32>
    %41 = arith.maximumf %39, %40 : vector<16x32xf32>
    %c0_40 = arith.constant 0 : index
    %c0_41 = arith.constant 0 : index
    %42 = vector.load %arg16[%c0_40, %c0_41] : memref<32x32xf32, #tpu.memory_space<vmem>>, vector<32x32xf32>
    %cst_42 = arith.constant dense<0.000000e+00> : vector<16x32xf32>
    %43 = tpu.matmul %41, %42, %cst_42 {dimension_numbers = #tpu.dot_dimension_numbers<[1], [0], [0], [1], [0, 0, 1, 1], [], []>} : vector<16x32xf32>, vector<32x32xf32>, vector<16x32xf32> -> vector<16x32xf32>
    %c0_43 = arith.constant 0 : index
    %c0_44 = arith.constant 0 : index
    %44 = vector.load %arg17[%c0_43, %c0_44] : memref<1x32xf32, #tpu.memory_space<vmem>>, vector<1x32xf32>
    %45 = vector.broadcast %44 : vector<1x32xf32> to vector<16x32xf32>
    %46 = arith.addf %43, %45 : vector<16x32xf32>
    %cst_45 = arith.constant 0.000000e+00 : f32
    %47 = vector.broadcast %cst_45 : f32 to vector<16x32xf32>
    %48 = arith.maximumf %46, %47 : vector<16x32xf32>
    %cst_46 = arith.constant 0.000000e+00 : f32
    %49 = vector.broadcast %cst_46 : f32 to vector<4x32xf32>
    %c0_47 = arith.constant 0 : index
    %c0_48 = arith.constant 0 : index
    %c0_49 = arith.constant 0 : index
    %50 = vector.load %arg18[%c0_47, %c0_48, %c0_49] : memref<4x4x16xf32, #tpu.memory_space<vmem>>, vector<1x4x16xf32>
    %51 = vector.shape_cast %50 : vector<1x4x16xf32> to vector<4x16xf32>
    %cst_50 = arith.constant dense<0.000000e+00> : vector<4x32xf32>
    %52 = tpu.matmul %51, %48, %cst_50 {dimension_numbers = #tpu.dot_dimension_numbers<[1], [0], [0], [1], [0, 0, 1, 1], [], []>} : vector<4x16xf32>, vector<16x32xf32>, vector<4x32xf32> -> vector<4x32xf32>
    %c0_51 = arith.constant 0 : index
    %c0_52 = arith.constant 0 : index
    %c0_53 = arith.constant 0 : index
    %53 = vector.load %arg19[%c0_51, %c0_52, %c0_53] : memref<4x32x32xf32, #tpu.memory_space<vmem>>, vector<1x32x32xf32>
    %54 = vector.shape_cast %53 : vector<1x32x32xf32> to vector<32x32xf32>
    %cst_54 = arith.constant dense<0.000000e+00> : vector<4x32xf32>
    %55 = tpu.matmul %52, %54, %cst_54 {dimension_numbers = #tpu.dot_dimension_numbers<[1], [0], [0], [1], [0, 0, 1, 1], [], []>} : vector<4x32xf32>, vector<32x32xf32>, vector<4x32xf32> -> vector<4x32xf32>
    %56 = arith.addf %49, %55 : vector<4x32xf32>
    %c1 = arith.constant 1 : index
    %c0_55 = arith.constant 0 : index
    %c0_56 = arith.constant 0 : index
    %57 = vector.load %arg18[%c1, %c0_55, %c0_56] : memref<4x4x16xf32, #tpu.memory_space<vmem>>, vector<1x4x16xf32>
    %58 = vector.shape_cast %57 : vector<1x4x16xf32> to vector<4x16xf32>
    %cst_57 = arith.constant dense<0.000000e+00> : vector<4x32xf32>
    %59 = tpu.matmul %58, %48, %cst_57 {dimension_numbers = #tpu.dot_dimension_numbers<[1], [0], [0], [1], [0, 0, 1, 1], [], []>} : vector<4x16xf32>, vector<16x32xf32>, vector<4x32xf32> -> vector<4x32xf32>
    %c1_58 = arith.constant 1 : index
    %c0_59 = arith.constant 0 : index
    %c0_60 = arith.constant 0 : index
    %60 = vector.load %arg19[%c1_58, %c0_59, %c0_60] : memref<4x32x32xf32, #tpu.memory_space<vmem>>, vector<1x32x32xf32>
    %61 = vector.shape_cast %60 : vector<1x32x32xf32> to vector<32x32xf32>
    %cst_61 = arith.constant dense<0.000000e+00> : vector<4x32xf32>
    %62 = tpu.matmul %59, %61, %cst_61 {dimension_numbers = #tpu.dot_dimension_numbers<[1], [0], [0], [1], [0, 0, 1, 1], [], []>} : vector<4x32xf32>, vector<32x32xf32>, vector<4x32xf32> -> vector<4x32xf32>
    %63 = arith.addf %56, %62 : vector<4x32xf32>
    %c2 = arith.constant 2 : index
    %c0_62 = arith.constant 0 : index
    %c0_63 = arith.constant 0 : index
    %64 = vector.load %arg18[%c2, %c0_62, %c0_63] : memref<4x4x16xf32, #tpu.memory_space<vmem>>, vector<1x4x16xf32>
    %65 = vector.shape_cast %64 : vector<1x4x16xf32> to vector<4x16xf32>
    %cst_64 = arith.constant dense<0.000000e+00> : vector<4x32xf32>
    %66 = tpu.matmul %65, %48, %cst_64 {dimension_numbers = #tpu.dot_dimension_numbers<[1], [0], [0], [1], [0, 0, 1, 1], [], []>} : vector<4x16xf32>, vector<16x32xf32>, vector<4x32xf32> -> vector<4x32xf32>
    %c2_65 = arith.constant 2 : index
    %c0_66 = arith.constant 0 : index
    %c0_67 = arith.constant 0 : index
    %67 = vector.load %arg19[%c2_65, %c0_66, %c0_67] : memref<4x32x32xf32, #tpu.memory_space<vmem>>, vector<1x32x32xf32>
    %68 = vector.shape_cast %67 : vector<1x32x32xf32> to vector<32x32xf32>
    %cst_68 = arith.constant dense<0.000000e+00> : vector<4x32xf32>
    %69 = tpu.matmul %66, %68, %cst_68 {dimension_numbers = #tpu.dot_dimension_numbers<[1], [0], [0], [1], [0, 0, 1, 1], [], []>} : vector<4x32xf32>, vector<32x32xf32>, vector<4x32xf32> -> vector<4x32xf32>
    %70 = arith.addf %63, %69 : vector<4x32xf32>
    %c3 = arith.constant 3 : index
    %c0_69 = arith.constant 0 : index
    %c0_70 = arith.constant 0 : index
    %71 = vector.load %arg18[%c3, %c0_69, %c0_70] : memref<4x4x16xf32, #tpu.memory_space<vmem>>, vector<1x4x16xf32>
    %72 = vector.shape_cast %71 : vector<1x4x16xf32> to vector<4x16xf32>
    %cst_71 = arith.constant dense<0.000000e+00> : vector<4x32xf32>
    %73 = tpu.matmul %72, %48, %cst_71 {dimension_numbers = #tpu.dot_dimension_numbers<[1], [0], [0], [1], [0, 0, 1, 1], [], []>} : vector<4x16xf32>, vector<16x32xf32>, vector<4x32xf32> -> vector<4x32xf32>
    %c3_72 = arith.constant 3 : index
    %c0_73 = arith.constant 0 : index
    %c0_74 = arith.constant 0 : index
    %74 = vector.load %arg19[%c3_72, %c0_73, %c0_74] : memref<4x32x32xf32, #tpu.memory_space<vmem>>, vector<1x32x32xf32>
    %75 = vector.shape_cast %74 : vector<1x32x32xf32> to vector<32x32xf32>
    %cst_75 = arith.constant dense<0.000000e+00> : vector<4x32xf32>
    %76 = tpu.matmul %73, %75, %cst_75 {dimension_numbers = #tpu.dot_dimension_numbers<[1], [0], [0], [1], [0, 0, 1, 1], [], []>} : vector<4x32xf32>, vector<32x32xf32>, vector<4x32xf32> -> vector<4x32xf32>
    %77 = arith.addf %70, %76 : vector<4x32xf32>
    %c0_76 = arith.constant 0 : index
    %c0_77 = arith.constant 0 : index
    %78 = vector.load %arg20[%c0_76, %c0_77] : memref<1x32xf32, #tpu.memory_space<vmem>>, vector<1x32xf32>
    %79 = vector.broadcast %78 : vector<1x32xf32> to vector<4x32xf32>
    %80 = arith.addf %77, %79 : vector<4x32xf32>
    %cst_78 = arith.constant 0.000000e+00 : f32
    %81 = vector.broadcast %cst_78 : f32 to vector<4x32xf32>
    %82 = arith.maximumf %80, %81 : vector<4x32xf32>
    %c0_79 = arith.constant 0 : index
    %c0_80 = arith.constant 0 : index
    %83 = vector.load %arg21[%c0_79, %c0_80] : memref<32x32xf32, #tpu.memory_space<vmem>>, vector<32x32xf32>
    %cst_81 = arith.constant dense<0.000000e+00> : vector<4x32xf32>
    %84 = tpu.matmul %82, %83, %cst_81 {dimension_numbers = #tpu.dot_dimension_numbers<[1], [0], [0], [1], [0, 0, 1, 1], [], []>} : vector<4x32xf32>, vector<32x32xf32>, vector<4x32xf32> -> vector<4x32xf32>
    %c0_82 = arith.constant 0 : index
    %c0_83 = arith.constant 0 : index
    %85 = vector.load %arg22[%c0_82, %c0_83] : memref<1x32xf32, #tpu.memory_space<vmem>>, vector<1x32xf32>
    %86 = vector.broadcast %85 : vector<1x32xf32> to vector<4x32xf32>
    %87 = arith.addf %84, %86 : vector<4x32xf32>
    %cst_84 = arith.constant 0.000000e+00 : f32
    %88 = vector.broadcast %cst_84 : f32 to vector<4x32xf32>
    %89 = arith.maximumf %87, %88 : vector<4x32xf32>
    %c0_85 = arith.constant 0 : index
    %c0_86 = arith.constant 0 : index
    %c0_87 = arith.constant 0 : index
    %90 = vector.load %arg23[%c0_85, %c0_86, %c0_87] : memref<3x32x16xf32, #tpu.memory_space<vmem>>, vector<1x32x16xf32>
    %91 = vector.shape_cast %90 : vector<1x32x16xf32> to vector<32x16xf32>
    %cst_88 = arith.constant dense<0.000000e+00> : vector<4x16xf32>
    %92 = tpu.matmul %89, %91, %cst_88 {dimension_numbers = #tpu.dot_dimension_numbers<[1], [0], [0], [1], [0, 0, 1, 1], [], []>} : vector<4x32xf32>, vector<32x16xf32>, vector<4x16xf32> -> vector<4x16xf32>
    %c0_89 = arith.constant 0 : index
    %c0_90 = arith.constant 0 : index
    %c0_91 = arith.constant 0 : index
    %93 = vector.load %arg24[%c0_89, %c0_90, %c0_91] : memref<3x1x16xf32, #tpu.memory_space<vmem>>, vector<1x1x16xf32>
    %94 = vector.shape_cast %93 : vector<1x1x16xf32> to vector<1x16xf32>
    %95 = vector.broadcast %94 : vector<1x16xf32> to vector<4x16xf32>
    %96 = arith.addf %92, %95 : vector<4x16xf32>
    %c0_92 = arith.constant 0 : index
    %c0_93 = arith.constant 0 : index
    %c0_94 = arith.constant 0 : index
    %97 = vector.load %arg25[%c0_92, %c0_93, %c0_94] : memref<3x32x16xf32, #tpu.memory_space<vmem>>, vector<1x32x16xf32>
    %98 = vector.shape_cast %97 : vector<1x32x16xf32> to vector<32x16xf32>
    %cst_95 = arith.constant dense<0.000000e+00> : vector<4x16xf32>
    %99 = tpu.matmul %89, %98, %cst_95 {dimension_numbers = #tpu.dot_dimension_numbers<[1], [0], [0], [1], [0, 0, 1, 1], [], []>} : vector<4x32xf32>, vector<32x16xf32>, vector<4x16xf32> -> vector<4x16xf32>
    %c0_96 = arith.constant 0 : index
    %c0_97 = arith.constant 0 : index
    %c0_98 = arith.constant 0 : index
    %100 = vector.load %arg26[%c0_96, %c0_97, %c0_98] : memref<3x1x16xf32, #tpu.memory_space<vmem>>, vector<1x1x16xf32>
    %101 = vector.shape_cast %100 : vector<1x1x16xf32> to vector<1x16xf32>
    %102 = vector.broadcast %101 : vector<1x16xf32> to vector<4x16xf32>
    %103 = arith.addf %99, %102 : vector<4x16xf32>
    %c0_99 = arith.constant 0 : index
    %c0_100 = arith.constant 0 : index
    %c0_101 = arith.constant 0 : index
    %104 = vector.load %arg27[%c0_99, %c0_100, %c0_101] : memref<3x32x16xf32, #tpu.memory_space<vmem>>, vector<1x32x16xf32>
    %105 = vector.shape_cast %104 : vector<1x32x16xf32> to vector<32x16xf32>
    %cst_102 = arith.constant dense<0.000000e+00> : vector<4x16xf32>
    %106 = tpu.matmul %89, %105, %cst_102 {dimension_numbers = #tpu.dot_dimension_numbers<[1], [0], [0], [1], [0, 0, 1, 1], [], []>} : vector<4x32xf32>, vector<32x16xf32>, vector<4x16xf32> -> vector<4x16xf32>
    %c0_103 = arith.constant 0 : index
    %c0_104 = arith.constant 0 : index
    %c0_105 = arith.constant 0 : index
    %107 = vector.load %arg28[%c0_103, %c0_104, %c0_105] : memref<3x1x16xf32, #tpu.memory_space<vmem>>, vector<1x1x16xf32>
    %108 = vector.shape_cast %107 : vector<1x1x16xf32> to vector<1x16xf32>
    %109 = vector.broadcast %108 : vector<1x16xf32> to vector<4x16xf32>
    %110 = arith.addf %106, %109 : vector<4x16xf32>
    %cst_106 = arith.constant dense<0.000000e+00> : vector<4x4xf32>
    %111 = tpu.matmul %96, %103, %cst_106 {dimension_numbers = #tpu.dot_dimension_numbers<[1], [1], [0], [0], [0, 0, 1, 0], [], []>} : vector<4x16xf32>, vector<4x16xf32>, vector<4x4xf32> -> vector<4x4xf32>
    %cst_107 = arith.constant dense<0xFF800000> : vector<4xf32>
    %112 = vector.multi_reduction <maximumf>, %111, %cst_107 [1] : vector<4x4xf32> to vector<4xf32>
    %113 = vector.shape_cast %112 : vector<4xf32> to vector<4x1xf32>
    %114 = vector.broadcast %113 : vector<4x1xf32> to vector<4x4xf32>
    %115 = arith.subf %111, %114 : vector<4x4xf32>
    %116 = math.exp %115 : vector<4x4xf32>
    %cst_108 = arith.constant dense<0.000000e+00> : vector<4xf32>
    %117 = vector.multi_reduction <add>, %116, %cst_108 [1] : vector<4x4xf32> to vector<4xf32>
    %118 = vector.shape_cast %117 : vector<4xf32> to vector<4x1xf32>
    %119 = tpu.reciprocal %118 {approx = true} : vector<4x1xf32> -> vector<4x1xf32>
    %120 = vector.broadcast %119 : vector<4x1xf32> to vector<4x4xf32>
    %121 = arith.mulf %116, %120 : vector<4x4xf32>
    %cst_109 = arith.constant dense<0.000000e+00> : vector<4x16xf32>
    %122 = tpu.matmul %121, %110, %cst_109 {dimension_numbers = #tpu.dot_dimension_numbers<[1], [0], [0], [1], [0, 0, 1, 1], [], []>} : vector<4x4xf32>, vector<4x16xf32>, vector<4x16xf32> -> vector<4x16xf32>
    %c0_110 = arith.constant 0 : index
    %c0_111 = arith.constant 0 : index
    %c0_112 = arith.constant 0 : index
    %123 = vector.load %arg29[%c0_110, %c0_111, %c0_112] : memref<3x16x32xf32, #tpu.memory_space<vmem>>, vector<1x16x32xf32>
    %124 = vector.shape_cast %123 : vector<1x16x32xf32> to vector<16x32xf32>
    %cst_113 = arith.constant dense<0.000000e+00> : vector<4x32xf32>
    %125 = tpu.matmul %122, %124, %cst_113 {dimension_numbers = #tpu.dot_dimension_numbers<[1], [0], [0], [1], [0, 0, 1, 1], [], []>} : vector<4x16xf32>, vector<16x32xf32>, vector<4x32xf32> -> vector<4x32xf32>
    %c0_114 = arith.constant 0 : index
    %c0_115 = arith.constant 0 : index
    %c0_116 = arith.constant 0 : index
    %126 = vector.load %arg30[%c0_114, %c0_115, %c0_116] : memref<3x1x32xf32, #tpu.memory_space<vmem>>, vector<1x1x32xf32>
    %127 = vector.shape_cast %126 : vector<1x1x32xf32> to vector<1x32xf32>
    %128 = vector.broadcast %127 : vector<1x32xf32> to vector<4x32xf32>
    %129 = arith.addf %125, %128 : vector<4x32xf32>
    %c0_117 = arith.constant 0 : index
    %c0_118 = arith.constant 0 : index
    %c0_119 = arith.constant 0 : index
    %130 = vector.load %arg31[%c0_117, %c0_118, %c0_119] : memref<3x1x32xf32, #tpu.memory_space<vmem>>, vector<1x1x32xf32>
    %131 = vector.shape_cast %130 : vector<1x1x32xf32> to vector<1x32xf32>
    %132 = vector.broadcast %131 : vector<1x32xf32> to vector<4x32xf32>
    %133 = arith.mulf %129, %132 : vector<4x32xf32>
    %c0_120 = arith.constant 0 : index
    %c0_121 = arith.constant 0 : index
    %c0_122 = arith.constant 0 : index
    %134 = vector.load %arg32[%c0_120, %c0_121, %c0_122] : memref<3x1x32xf32, #tpu.memory_space<vmem>>, vector<1x1x32xf32>
    %135 = vector.shape_cast %134 : vector<1x1x32xf32> to vector<1x32xf32>
    %136 = vector.broadcast %135 : vector<1x32xf32> to vector<4x32xf32>
    %137 = arith.addf %133, %136 : vector<4x32xf32>
    %138 = arith.addf %89, %137 : vector<4x32xf32>
    %c0_123 = arith.constant 0 : index
    %c0_124 = arith.constant 0 : index
    %c0_125 = arith.constant 0 : index
    %139 = vector.load %arg33[%c0_123, %c0_124, %c0_125] : memref<3x32x32xf32, #tpu.memory_space<vmem>>, vector<1x32x32xf32>
    %140 = vector.shape_cast %139 : vector<1x32x32xf32> to vector<32x32xf32>
    %cst_126 = arith.constant dense<0.000000e+00> : vector<4x32xf32>
    %141 = tpu.matmul %138, %140, %cst_126 {dimension_numbers = #tpu.dot_dimension_numbers<[1], [0], [0], [1], [0, 0, 1, 1], [], []>} : vector<4x32xf32>, vector<32x32xf32>, vector<4x32xf32> -> vector<4x32xf32>
    %c0_127 = arith.constant 0 : index
    %c0_128 = arith.constant 0 : index
    %c0_129 = arith.constant 0 : index
    %142 = vector.load %arg34[%c0_127, %c0_128, %c0_129] : memref<3x1x32xf32, #tpu.memory_space<vmem>>, vector<1x1x32xf32>
    %143 = vector.shape_cast %142 : vector<1x1x32xf32> to vector<1x32xf32>
    %144 = vector.broadcast %143 : vector<1x32xf32> to vector<4x32xf32>
    %145 = arith.mulf %141, %144 : vector<4x32xf32>
    %c0_130 = arith.constant 0 : index
    %c0_131 = arith.constant 0 : index
    %c0_132 = arith.constant 0 : index
    %146 = vector.load %arg35[%c0_130, %c0_131, %c0_132] : memref<3x1x32xf32, #tpu.memory_space<vmem>>, vector<1x1x32xf32>
    %147 = vector.shape_cast %146 : vector<1x1x32xf32> to vector<1x32xf32>
    %148 = vector.broadcast %147 : vector<1x32xf32> to vector<4x32xf32>
    %149 = arith.addf %145, %148 : vector<4x32xf32>
    %cst_133 = arith.constant 0.000000e+00 : f32
    %150 = vector.broadcast %cst_133 : f32 to vector<4x32xf32>
    %151 = arith.maximumf %149, %150 : vector<4x32xf32>
    %c1_134 = arith.constant 1 : index
    %c0_135 = arith.constant 0 : index
    %c0_136 = arith.constant 0 : index
    %152 = vector.load %arg23[%c1_134, %c0_135, %c0_136] : memref<3x32x16xf32, #tpu.memory_space<vmem>>, vector<1x32x16xf32>
    %153 = vector.shape_cast %152 : vector<1x32x16xf32> to vector<32x16xf32>
    %cst_137 = arith.constant dense<0.000000e+00> : vector<4x16xf32>
    %154 = tpu.matmul %151, %153, %cst_137 {dimension_numbers = #tpu.dot_dimension_numbers<[1], [0], [0], [1], [0, 0, 1, 1], [], []>} : vector<4x32xf32>, vector<32x16xf32>, vector<4x16xf32> -> vector<4x16xf32>
    %c1_138 = arith.constant 1 : index
    %c0_139 = arith.constant 0 : index
    %c0_140 = arith.constant 0 : index
    %155 = vector.load %arg24[%c1_138, %c0_139, %c0_140] : memref<3x1x16xf32, #tpu.memory_space<vmem>>, vector<1x1x16xf32>
    %156 = vector.shape_cast %155 : vector<1x1x16xf32> to vector<1x16xf32>
    %157 = vector.broadcast %156 : vector<1x16xf32> to vector<4x16xf32>
    %158 = arith.addf %154, %157 : vector<4x16xf32>
    %c1_141 = arith.constant 1 : index
    %c0_142 = arith.constant 0 : index
    %c0_143 = arith.constant 0 : index
    %159 = vector.load %arg25[%c1_141, %c0_142, %c0_143] : memref<3x32x16xf32, #tpu.memory_space<vmem>>, vector<1x32x16xf32>
    %160 = vector.shape_cast %159 : vector<1x32x16xf32> to vector<32x16xf32>
    %cst_144 = arith.constant dense<0.000000e+00> : vector<4x16xf32>
    %161 = tpu.matmul %151, %160, %cst_144 {dimension_numbers = #tpu.dot_dimension_numbers<[1], [0], [0], [1], [0, 0, 1, 1], [], []>} : vector<4x32xf32>, vector<32x16xf32>, vector<4x16xf32> -> vector<4x16xf32>
    %c1_145 = arith.constant 1 : index
    %c0_146 = arith.constant 0 : index
    %c0_147 = arith.constant 0 : index
    %162 = vector.load %arg26[%c1_145, %c0_146, %c0_147] : memref<3x1x16xf32, #tpu.memory_space<vmem>>, vector<1x1x16xf32>
    %163 = vector.shape_cast %162 : vector<1x1x16xf32> to vector<1x16xf32>
    %164 = vector.broadcast %163 : vector<1x16xf32> to vector<4x16xf32>
    %165 = arith.addf %161, %164 : vector<4x16xf32>
    %c1_148 = arith.constant 1 : index
    %c0_149 = arith.constant 0 : index
    %c0_150 = arith.constant 0 : index
    %166 = vector.load %arg27[%c1_148, %c0_149, %c0_150] : memref<3x32x16xf32, #tpu.memory_space<vmem>>, vector<1x32x16xf32>
    %167 = vector.shape_cast %166 : vector<1x32x16xf32> to vector<32x16xf32>
    %cst_151 = arith.constant dense<0.000000e+00> : vector<4x16xf32>
    %168 = tpu.matmul %151, %167, %cst_151 {dimension_numbers = #tpu.dot_dimension_numbers<[1], [0], [0], [1], [0, 0, 1, 1], [], []>} : vector<4x32xf32>, vector<32x16xf32>, vector<4x16xf32> -> vector<4x16xf32>
    %c1_152 = arith.constant 1 : index
    %c0_153 = arith.constant 0 : index
    %c0_154 = arith.constant 0 : index
    %169 = vector.load %arg28[%c1_152, %c0_153, %c0_154] : memref<3x1x16xf32, #tpu.memory_space<vmem>>, vector<1x1x16xf32>
    %170 = vector.shape_cast %169 : vector<1x1x16xf32> to vector<1x16xf32>
    %171 = vector.broadcast %170 : vector<1x16xf32> to vector<4x16xf32>
    %172 = arith.addf %168, %171 : vector<4x16xf32>
    %cst_155 = arith.constant dense<0.000000e+00> : vector<4x4xf32>
    %173 = tpu.matmul %158, %165, %cst_155 {dimension_numbers = #tpu.dot_dimension_numbers<[1], [1], [0], [0], [0, 0, 1, 0], [], []>} : vector<4x16xf32>, vector<4x16xf32>, vector<4x4xf32> -> vector<4x4xf32>
    %cst_156 = arith.constant dense<0xFF800000> : vector<4xf32>
    %174 = vector.multi_reduction <maximumf>, %173, %cst_156 [1] : vector<4x4xf32> to vector<4xf32>
    %175 = vector.shape_cast %174 : vector<4xf32> to vector<4x1xf32>
    %176 = vector.broadcast %175 : vector<4x1xf32> to vector<4x4xf32>
    %177 = arith.subf %173, %176 : vector<4x4xf32>
    %178 = math.exp %177 : vector<4x4xf32>
    %cst_157 = arith.constant dense<0.000000e+00> : vector<4xf32>
    %179 = vector.multi_reduction <add>, %178, %cst_157 [1] : vector<4x4xf32> to vector<4xf32>
    %180 = vector.shape_cast %179 : vector<4xf32> to vector<4x1xf32>
    %181 = tpu.reciprocal %180 {approx = true} : vector<4x1xf32> -> vector<4x1xf32>
    %182 = vector.broadcast %181 : vector<4x1xf32> to vector<4x4xf32>
    %183 = arith.mulf %178, %182 : vector<4x4xf32>
    %cst_158 = arith.constant dense<0.000000e+00> : vector<4x16xf32>
    %184 = tpu.matmul %183, %172, %cst_158 {dimension_numbers = #tpu.dot_dimension_numbers<[1], [0], [0], [1], [0, 0, 1, 1], [], []>} : vector<4x4xf32>, vector<4x16xf32>, vector<4x16xf32> -> vector<4x16xf32>
    %c1_159 = arith.constant 1 : index
    %c0_160 = arith.constant 0 : index
    %c0_161 = arith.constant 0 : index
    %185 = vector.load %arg29[%c1_159, %c0_160, %c0_161] : memref<3x16x32xf32, #tpu.memory_space<vmem>>, vector<1x16x32xf32>
    %186 = vector.shape_cast %185 : vector<1x16x32xf32> to vector<16x32xf32>
    %cst_162 = arith.constant dense<0.000000e+00> : vector<4x32xf32>
    %187 = tpu.matmul %184, %186, %cst_162 {dimension_numbers = #tpu.dot_dimension_numbers<[1], [0], [0], [1], [0, 0, 1, 1], [], []>} : vector<4x16xf32>, vector<16x32xf32>, vector<4x32xf32> -> vector<4x32xf32>
    %c1_163 = arith.constant 1 : index
    %c0_164 = arith.constant 0 : index
    %c0_165 = arith.constant 0 : index
    %188 = vector.load %arg30[%c1_163, %c0_164, %c0_165] : memref<3x1x32xf32, #tpu.memory_space<vmem>>, vector<1x1x32xf32>
    %189 = vector.shape_cast %188 : vector<1x1x32xf32> to vector<1x32xf32>
    %190 = vector.broadcast %189 : vector<1x32xf32> to vector<4x32xf32>
    %191 = arith.addf %187, %190 : vector<4x32xf32>
    %c1_166 = arith.constant 1 : index
    %c0_167 = arith.constant 0 : index
    %c0_168 = arith.constant 0 : index
    %192 = vector.load %arg31[%c1_166, %c0_167, %c0_168] : memref<3x1x32xf32, #tpu.memory_space<vmem>>, vector<1x1x32xf32>
    %193 = vector.shape_cast %192 : vector<1x1x32xf32> to vector<1x32xf32>
    %194 = vector.broadcast %193 : vector<1x32xf32> to vector<4x32xf32>
    %195 = arith.mulf %191, %194 : vector<4x32xf32>
    %c1_169 = arith.constant 1 : index
    %c0_170 = arith.constant 0 : index
    %c0_171 = arith.constant 0 : index
    %196 = vector.load %arg32[%c1_169, %c0_170, %c0_171] : memref<3x1x32xf32, #tpu.memory_space<vmem>>, vector<1x1x32xf32>
    %197 = vector.shape_cast %196 : vector<1x1x32xf32> to vector<1x32xf32>
    %198 = vector.broadcast %197 : vector<1x32xf32> to vector<4x32xf32>
    %199 = arith.addf %195, %198 : vector<4x32xf32>
    %200 = arith.addf %151, %199 : vector<4x32xf32>
    %c1_172 = arith.constant 1 : index
    %c0_173 = arith.constant 0 : index
    %c0_174 = arith.constant 0 : index
    %201 = vector.load %arg33[%c1_172, %c0_173, %c0_174] : memref<3x32x32xf32, #tpu.memory_space<vmem>>, vector<1x32x32xf32>
    %202 = vector.shape_cast %201 : vector<1x32x32xf32> to vector<32x32xf32>
    %cst_175 = arith.constant dense<0.000000e+00> : vector<4x32xf32>
    %203 = tpu.matmul %200, %202, %cst_175 {dimension_numbers = #tpu.dot_dimension_numbers<[1], [0], [0], [1], [0, 0, 1, 1], [], []>} : vector<4x32xf32>, vector<32x32xf32>, vector<4x32xf32> -> vector<4x32xf32>
    %c1_176 = arith.constant 1 : index
    %c0_177 = arith.constant 0 : index
    %c0_178 = arith.constant 0 : index
    %204 = vector.load %arg34[%c1_176, %c0_177, %c0_178] : memref<3x1x32xf32, #tpu.memory_space<vmem>>, vector<1x1x32xf32>
    %205 = vector.shape_cast %204 : vector<1x1x32xf32> to vector<1x32xf32>
    %206 = vector.broadcast %205 : vector<1x32xf32> to vector<4x32xf32>
    %207 = arith.mulf %203, %206 : vector<4x32xf32>
    %c1_179 = arith.constant 1 : index
    %c0_180 = arith.constant 0 : index
    %c0_181 = arith.constant 0 : index
    %208 = vector.load %arg35[%c1_179, %c0_180, %c0_181] : memref<3x1x32xf32, #tpu.memory_space<vmem>>, vector<1x1x32xf32>
    %209 = vector.shape_cast %208 : vector<1x1x32xf32> to vector<1x32xf32>
    %210 = vector.broadcast %209 : vector<1x32xf32> to vector<4x32xf32>
    %211 = arith.addf %207, %210 : vector<4x32xf32>
    %cst_182 = arith.constant 0.000000e+00 : f32
    %212 = vector.broadcast %cst_182 : f32 to vector<4x32xf32>
    %213 = arith.maximumf %211, %212 : vector<4x32xf32>
    %c2_183 = arith.constant 2 : index
    %c0_184 = arith.constant 0 : index
    %c0_185 = arith.constant 0 : index
    %214 = vector.load %arg23[%c2_183, %c0_184, %c0_185] : memref<3x32x16xf32, #tpu.memory_space<vmem>>, vector<1x32x16xf32>
    %215 = vector.shape_cast %214 : vector<1x32x16xf32> to vector<32x16xf32>
    %cst_186 = arith.constant dense<0.000000e+00> : vector<4x16xf32>
    %216 = tpu.matmul %213, %215, %cst_186 {dimension_numbers = #tpu.dot_dimension_numbers<[1], [0], [0], [1], [0, 0, 1, 1], [], []>} : vector<4x32xf32>, vector<32x16xf32>, vector<4x16xf32> -> vector<4x16xf32>
    %c2_187 = arith.constant 2 : index
    %c0_188 = arith.constant 0 : index
    %c0_189 = arith.constant 0 : index
    %217 = vector.load %arg24[%c2_187, %c0_188, %c0_189] : memref<3x1x16xf32, #tpu.memory_space<vmem>>, vector<1x1x16xf32>
    %218 = vector.shape_cast %217 : vector<1x1x16xf32> to vector<1x16xf32>
    %219 = vector.broadcast %218 : vector<1x16xf32> to vector<4x16xf32>
    %220 = arith.addf %216, %219 : vector<4x16xf32>
    %c2_190 = arith.constant 2 : index
    %c0_191 = arith.constant 0 : index
    %c0_192 = arith.constant 0 : index
    %221 = vector.load %arg25[%c2_190, %c0_191, %c0_192] : memref<3x32x16xf32, #tpu.memory_space<vmem>>, vector<1x32x16xf32>
    %222 = vector.shape_cast %221 : vector<1x32x16xf32> to vector<32x16xf32>
    %cst_193 = arith.constant dense<0.000000e+00> : vector<4x16xf32>
    %223 = tpu.matmul %213, %222, %cst_193 {dimension_numbers = #tpu.dot_dimension_numbers<[1], [0], [0], [1], [0, 0, 1, 1], [], []>} : vector<4x32xf32>, vector<32x16xf32>, vector<4x16xf32> -> vector<4x16xf32>
    %c2_194 = arith.constant 2 : index
    %c0_195 = arith.constant 0 : index
    %c0_196 = arith.constant 0 : index
    %224 = vector.load %arg26[%c2_194, %c0_195, %c0_196] : memref<3x1x16xf32, #tpu.memory_space<vmem>>, vector<1x1x16xf32>
    %225 = vector.shape_cast %224 : vector<1x1x16xf32> to vector<1x16xf32>
    %226 = vector.broadcast %225 : vector<1x16xf32> to vector<4x16xf32>
    %227 = arith.addf %223, %226 : vector<4x16xf32>
    %c2_197 = arith.constant 2 : index
    %c0_198 = arith.constant 0 : index
    %c0_199 = arith.constant 0 : index
    %228 = vector.load %arg27[%c2_197, %c0_198, %c0_199] : memref<3x32x16xf32, #tpu.memory_space<vmem>>, vector<1x32x16xf32>
    %229 = vector.shape_cast %228 : vector<1x32x16xf32> to vector<32x16xf32>
    %cst_200 = arith.constant dense<0.000000e+00> : vector<4x16xf32>
    %230 = tpu.matmul %213, %229, %cst_200 {dimension_numbers = #tpu.dot_dimension_numbers<[1], [0], [0], [1], [0, 0, 1, 1], [], []>} : vector<4x32xf32>, vector<32x16xf32>, vector<4x16xf32> -> vector<4x16xf32>
    %c2_201 = arith.constant 2 : index
    %c0_202 = arith.constant 0 : index
    %c0_203 = arith.constant 0 : index
    %231 = vector.load %arg28[%c2_201, %c0_202, %c0_203] : memref<3x1x16xf32, #tpu.memory_space<vmem>>, vector<1x1x16xf32>
    %232 = vector.shape_cast %231 : vector<1x1x16xf32> to vector<1x16xf32>
    %233 = vector.broadcast %232 : vector<1x16xf32> to vector<4x16xf32>
    %234 = arith.addf %230, %233 : vector<4x16xf32>
    %cst_204 = arith.constant dense<0.000000e+00> : vector<4x4xf32>
    %235 = tpu.matmul %220, %227, %cst_204 {dimension_numbers = #tpu.dot_dimension_numbers<[1], [1], [0], [0], [0, 0, 1, 0], [], []>} : vector<4x16xf32>, vector<4x16xf32>, vector<4x4xf32> -> vector<4x4xf32>
    %cst_205 = arith.constant dense<0xFF800000> : vector<4xf32>
    %236 = vector.multi_reduction <maximumf>, %235, %cst_205 [1] : vector<4x4xf32> to vector<4xf32>
    %237 = vector.shape_cast %236 : vector<4xf32> to vector<4x1xf32>
    %238 = vector.broadcast %237 : vector<4x1xf32> to vector<4x4xf32>
    %239 = arith.subf %235, %238 : vector<4x4xf32>
    %240 = math.exp %239 : vector<4x4xf32>
    %cst_206 = arith.constant dense<0.000000e+00> : vector<4xf32>
    %241 = vector.multi_reduction <add>, %240, %cst_206 [1] : vector<4x4xf32> to vector<4xf32>
    %242 = vector.shape_cast %241 : vector<4xf32> to vector<4x1xf32>
    %243 = tpu.reciprocal %242 {approx = true} : vector<4x1xf32> -> vector<4x1xf32>
    %244 = vector.broadcast %243 : vector<4x1xf32> to vector<4x4xf32>
    %245 = arith.mulf %240, %244 : vector<4x4xf32>
    %cst_207 = arith.constant dense<0.000000e+00> : vector<4x16xf32>
    %246 = tpu.matmul %245, %234, %cst_207 {dimension_numbers = #tpu.dot_dimension_numbers<[1], [0], [0], [1], [0, 0, 1, 1], [], []>} : vector<4x4xf32>, vector<4x16xf32>, vector<4x16xf32> -> vector<4x16xf32>
    %c2_208 = arith.constant 2 : index
    %c0_209 = arith.constant 0 : index
    %c0_210 = arith.constant 0 : index
    %247 = vector.load %arg29[%c2_208, %c0_209, %c0_210] : memref<3x16x32xf32, #tpu.memory_space<vmem>>, vector<1x16x32xf32>
    %248 = vector.shape_cast %247 : vector<1x16x32xf32> to vector<16x32xf32>
    %cst_211 = arith.constant dense<0.000000e+00> : vector<4x32xf32>
    %249 = tpu.matmul %246, %248, %cst_211 {dimension_numbers = #tpu.dot_dimension_numbers<[1], [0], [0], [1], [0, 0, 1, 1], [], []>} : vector<4x16xf32>, vector<16x32xf32>, vector<4x32xf32> -> vector<4x32xf32>
    %c2_212 = arith.constant 2 : index
    %c0_213 = arith.constant 0 : index
    %c0_214 = arith.constant 0 : index
    %250 = vector.load %arg30[%c2_212, %c0_213, %c0_214] : memref<3x1x32xf32, #tpu.memory_space<vmem>>, vector<1x1x32xf32>
    %251 = vector.shape_cast %250 : vector<1x1x32xf32> to vector<1x32xf32>
    %252 = vector.broadcast %251 : vector<1x32xf32> to vector<4x32xf32>
    %253 = arith.addf %249, %252 : vector<4x32xf32>
    %c2_215 = arith.constant 2 : index
    %c0_216 = arith.constant 0 : index
    %c0_217 = arith.constant 0 : index
    %254 = vector.load %arg31[%c2_215, %c0_216, %c0_217] : memref<3x1x32xf32, #tpu.memory_space<vmem>>, vector<1x1x32xf32>
    %255 = vector.shape_cast %254 : vector<1x1x32xf32> to vector<1x32xf32>
    %256 = vector.broadcast %255 : vector<1x32xf32> to vector<4x32xf32>
    %257 = arith.mulf %253, %256 : vector<4x32xf32>
    %c2_218 = arith.constant 2 : index
    %c0_219 = arith.constant 0 : index
    %c0_220 = arith.constant 0 : index
    %258 = vector.load %arg32[%c2_218, %c0_219, %c0_220] : memref<3x1x32xf32, #tpu.memory_space<vmem>>, vector<1x1x32xf32>
    %259 = vector.shape_cast %258 : vector<1x1x32xf32> to vector<1x32xf32>
    %260 = vector.broadcast %259 : vector<1x32xf32> to vector<4x32xf32>
    %261 = arith.addf %257, %260 : vector<4x32xf32>
    %262 = arith.addf %213, %261 : vector<4x32xf32>
    %c2_221 = arith.constant 2 : index
    %c0_222 = arith.constant 0 : index
    %c0_223 = arith.constant 0 : index
    %263 = vector.load %arg33[%c2_221, %c0_222, %c0_223] : memref<3x32x32xf32, #tpu.memory_space<vmem>>, vector<1x32x32xf32>
    %264 = vector.shape_cast %263 : vector<1x32x32xf32> to vector<32x32xf32>
    %cst_224 = arith.constant dense<0.000000e+00> : vector<4x32xf32>
    %265 = tpu.matmul %262, %264, %cst_224 {dimension_numbers = #tpu.dot_dimension_numbers<[1], [0], [0], [1], [0, 0, 1, 1], [], []>} : vector<4x32xf32>, vector<32x32xf32>, vector<4x32xf32> -> vector<4x32xf32>
    %c2_225 = arith.constant 2 : index
    %c0_226 = arith.constant 0 : index
    %c0_227 = arith.constant 0 : index
    %266 = vector.load %arg34[%c2_225, %c0_226, %c0_227] : memref<3x1x32xf32, #tpu.memory_space<vmem>>, vector<1x1x32xf32>
    %267 = vector.shape_cast %266 : vector<1x1x32xf32> to vector<1x32xf32>
    %268 = vector.broadcast %267 : vector<1x32xf32> to vector<4x32xf32>
    %269 = arith.mulf %265, %268 : vector<4x32xf32>
    %c2_228 = arith.constant 2 : index
    %c0_229 = arith.constant 0 : index
    %c0_230 = arith.constant 0 : index
    %270 = vector.load %arg35[%c2_228, %c0_229, %c0_230] : memref<3x1x32xf32, #tpu.memory_space<vmem>>, vector<1x1x32xf32>
    %271 = vector.shape_cast %270 : vector<1x1x32xf32> to vector<1x32xf32>
    %272 = vector.broadcast %271 : vector<1x32xf32> to vector<4x32xf32>
    %273 = arith.addf %269, %272 : vector<4x32xf32>
    %cst_231 = arith.constant 0.000000e+00 : f32
    %274 = vector.broadcast %cst_231 : f32 to vector<4x32xf32>
    %275 = arith.maximumf %273, %274 : vector<4x32xf32>
    %cst_232 = arith.constant dense<0.000000e+00> : vector<32xf32>
    %276 = vector.multi_reduction <add>, %275, %cst_232 [0] : vector<4x32xf32> to vector<32xf32>
    %277 = vector.shape_cast %276 : vector<32xf32> to vector<1x32xf32>
    %cst_233 = arith.constant 4.000000e+00 : f32
    %278 = vector.broadcast %cst_233 : f32 to vector<1x32xf32>
    %279 = arith.divf %277, %278 : vector<1x32xf32>
    %c0_234 = arith.constant 0 : index
    %c0_235 = arith.constant 0 : index
    %c0_236 = arith.constant 0 : index
    %280 = vector.load %arg3[%c0_234, %c0_235, %c0_236] : memref<1x1x512xf32, #tpu.memory_space<vmem>>, vector<1x1x512xf32>
    %281 = vector.shape_cast %280 : vector<1x1x512xf32> to vector<1x512xf32>
    %c0_237 = arith.constant 0 : index
    %c0_238 = arith.constant 0 : index
    %282 = vector.load %arg36[%c0_237, %c0_238] : memref<512x32xf32, #tpu.memory_space<vmem>>, vector<512x32xf32>
    %cst_239 = arith.constant dense<0.000000e+00> : vector<1x32xf32>
    %283 = tpu.matmul %281, %282, %cst_239 {dimension_numbers = #tpu.dot_dimension_numbers<[1], [0], [0], [1], [0, 0, 1, 1], [], []>} : vector<1x512xf32>, vector<512x32xf32>, vector<1x32xf32> -> vector<1x32xf32>
    %c0_240 = arith.constant 0 : index
    %c0_241 = arith.constant 0 : index
    %284 = vector.load %arg37[%c0_240, %c0_241] : memref<32x32xf32, #tpu.memory_space<vmem>>, vector<32x32xf32>
    %cst_242 = arith.constant dense<0.000000e+00> : vector<1x32xf32>
    %285 = tpu.matmul %279, %284, %cst_242 {dimension_numbers = #tpu.dot_dimension_numbers<[1], [0], [0], [1], [0, 0, 1, 1], [], []>} : vector<1x32xf32>, vector<32x32xf32>, vector<1x32xf32> -> vector<1x32xf32>
    %286 = arith.addf %283, %285 : vector<1x32xf32>
    %c0_243 = arith.constant 0 : index
    %c0_244 = arith.constant 0 : index
    %287 = vector.load %arg38[%c0_243, %c0_244] : memref<1x32xf32, #tpu.memory_space<vmem>>, vector<1x32xf32>
    %288 = arith.addf %286, %287 : vector<1x32xf32>
    %cst_245 = arith.constant 0.000000e+00 : f32
    %289 = vector.broadcast %cst_245 : f32 to vector<1x32xf32>
    %290 = arith.maximumf %288, %289 : vector<1x32xf32>
    %c0_246 = arith.constant 0 : index
    %c0_247 = arith.constant 0 : index
    %291 = vector.load %arg39[%c0_246, %c0_247] : memref<32x512xf32, #tpu.memory_space<vmem>>, vector<32x512xf32>
    %cst_248 = arith.constant dense<0.000000e+00> : vector<1x512xf32>
    %292 = tpu.matmul %290, %291, %cst_248 {dimension_numbers = #tpu.dot_dimension_numbers<[1], [0], [0], [1], [0, 0, 1, 1], [], []>} : vector<1x32xf32>, vector<32x512xf32>, vector<1x512xf32> -> vector<1x512xf32>
    %c0_249 = arith.constant 0 : index
    %c0_250 = arith.constant 0 : index
    %293 = vector.load %arg40[%c0_249, %c0_250] : memref<1x512xf32, #tpu.memory_space<vmem>>, vector<1x512xf32>
    %294 = arith.addf %292, %293 : vector<1x512xf32>
    %cst_251 = arith.constant 0.000000e+00 : f32
    %295 = vector.broadcast %cst_251 : f32 to vector<1x512xf32>
    %296 = arith.maximumf %294, %295 : vector<1x512xf32>
    %c0_252 = arith.constant 0 : index
    %c0_253 = arith.constant 0 : index
    %297 = vector.load %arg41[%c0_252, %c0_253] : memref<512x128xf32, #tpu.memory_space<vmem>>, vector<512x128xf32>
    %cst_254 = arith.constant dense<0.000000e+00> : vector<1x128xf32>
    %298 = tpu.matmul %296, %297, %cst_254 {dimension_numbers = #tpu.dot_dimension_numbers<[1], [0], [0], [1], [0, 0, 1, 1], [], []>} : vector<1x512xf32>, vector<512x128xf32>, vector<1x128xf32> -> vector<1x128xf32>
    %c0_255 = arith.constant 0 : index
    %c0_256 = arith.constant 0 : index
    %299 = vector.load %arg42[%c0_255, %c0_256] : memref<1x128xf32, #tpu.memory_space<vmem>>, vector<1x128xf32>
    %300 = arith.addf %298, %299 : vector<1x128xf32>
    %c0_257 = arith.constant 0 : index
    %c0_258 = arith.constant 0 : index
    %c0_259 = arith.constant 0 : index
    %301 = vector.load %arg43[%c0_257, %c0_258, %c0_259] : memref<1x1x128xf32, #tpu.memory_space<vmem>>, vector<1x1x128xf32>
    %302 = vector.shape_cast %301 : vector<1x1x128xf32> to vector<1x128xf32>
    %303 = vector.shape_cast %300 : vector<1x128xf32> to vector<1x1x128xf32>
    tpu.vector_store %arg43[%c0_257, %c0_258, %c0_259], %303 {strides = array<i32>} : memref<1x1x128xf32, #tpu.memory_space<vmem>>, vector<1x1x128xf32>,
    return
  }
  func.func @transform_0(%arg0: i32) -> (i32, i32, i32) {
    %c0_i32 = arith.constant 0 : i32
    %c0_i32_0 = arith.constant 0 : i32
    %c0_i32_1 = arith.constant 0 : i32
    return %arg0, %c0_i32, %c0_i32_0 : i32, i32, i32
  }
  func.func @transform_1(%arg0: i32) -> (i32, i32, i32) {
    %c0_i32 = arith.constant 0 : i32
    %c0_i32_0 = arith.constant 0 : i32
    %c0_i32_1 = arith.constant 0 : i32
    return %arg0, %c0_i32, %c0_i32_0 : i32, i32, i32
  }
  func.func @transform_2(%arg0: i32) -> (i32, i32, i32) {
    %c0_i32 = arith.constant 0 : i32
    %c0_i32_0 = arith.constant 0 : i32
    %c0_i32_1 = arith.constant 0 : i32
    return %arg0, %c0_i32, %c0_i32_0 : i32, i32, i32
  }
  func.func @transform_3(%arg0: i32) -> (i32, i32) {
    %c0_i32 = arith.constant 0 : i32
    %c0_i32_0 = arith.constant 0 : i32
    %c0_i32_1 = arith.constant 0 : i32
    return %c0_i32, %c0_i32_0 : i32, i32
  }
  func.func @transform_4(%arg0: i32) -> (i32, i32) {
    %c0_i32 = arith.constant 0 : i32
    %c0_i32_0 = arith.constant 0 : i32
    %c0_i32_1 = arith.constant 0 : i32
    return %c0_i32, %c0_i32_0 : i32, i32
  }
  func.func @transform_5(%arg0: i32) -> (i32, i32) {
    %c0_i32 = arith.constant 0 : i32
    %c0_i32_0 = arith.constant 0 : i32
    %c0_i32_1 = arith.constant 0 : i32
    return %c0_i32, %c0_i32_0 : i32, i32
  }
  func.func @transform_6(%arg0: i32) -> (i32, i32) {
    %c0_i32 = arith.constant 0 : i32
    %c0_i32_0 = arith.constant 0 : i32
    %c0_i32_1 = arith.constant 0 : i32
    return %c0_i32, %c0_i32_0 : i32, i32
  }
  func.func @transform_7(%arg0: i32) -> (i32, i32) {
    %c0_i32 = arith.constant 0 : i32
    %c0_i32_0 = arith.constant 0 : i32
    %c0_i32_1 = arith.constant 0 : i32
    return %c0_i32, %c0_i32_0 : i32, i32
  }
  func.func @transform_8(%arg0: i32) -> (i32, i32) {
    %c0_i32 = arith.constant 0 : i32
    %c0_i32_0 = arith.constant 0 : i32
    %c0_i32_1 = arith.constant 0 : i32
    return %c0_i32, %c0_i32_0 : i32, i32
  }
  func.func @transform_9(%arg0: i32) -> (i32, i32) {
    %c0_i32 = arith.constant 0 : i32
    %c0_i32_0 = arith.constant 0 : i32
    %c0_i32_1 = arith.constant 0 : i32
    return %c0_i32, %c0_i32_0 : i32, i32
  }
  func.func @transform_10(%arg0: i32) -> (i32, i32) {
    %c0_i32 = arith.constant 0 : i32
    %c0_i32_0 = arith.constant 0 : i32
    %c0_i32_1 = arith.constant 0 : i32
    return %c0_i32, %c0_i32_0 : i32, i32
  }
  func.func @transform_11(%arg0: i32) -> (i32, i32) {
    %c0_i32 = arith.constant 0 : i32
    %c0_i32_0 = arith.constant 0 : i32
    %c0_i32_1 = arith.constant 0 : i32
    return %c0_i32, %c0_i32_0 : i32, i32
  }
  func.func @transform_12(%arg0: i32) -> (i32, i32) {
    %c0_i32 = arith.constant 0 : i32
    %c0_i32_0 = arith.constant 0 : i32
    %c0_i32_1 = arith.constant 0 : i32
    return %c0_i32, %c0_i32_0 : i32, i32
  }
  func.func @transform_13(%arg0: i32) -> (i32, i32) {
    %c0_i32 = arith.constant 0 : i32
    %c0_i32_0 = arith.constant 0 : i32
    %c0_i32_1 = arith.constant 0 : i32
    return %c0_i32, %c0_i32_0 : i32, i32
  }
  func.func @transform_14(%arg0: i32) -> (i32, i32) {
    %c0_i32 = arith.constant 0 : i32
    %c0_i32_0 = arith.constant 0 : i32
    %c0_i32_1 = arith.constant 0 : i32
    return %c0_i32, %c0_i32_0 : i32, i32
  }
  func.func @transform_15(%arg0: i32) -> (i32, i32) {
    %c0_i32 = arith.constant 0 : i32
    %c0_i32_0 = arith.constant 0 : i32
    %c0_i32_1 = arith.constant 0 : i32
    return %c0_i32, %c0_i32_0 : i32, i32
  }
  func.func @transform_16(%arg0: i32) -> (i32, i32) {
    %c0_i32 = arith.constant 0 : i32
    %c0_i32_0 = arith.constant 0 : i32
    %c0_i32_1 = arith.constant 0 : i32
    return %c0_i32, %c0_i32_0 : i32, i32
  }
  func.func @transform_17(%arg0: i32) -> (i32, i32, i32) {
    %c0_i32 = arith.constant 0 : i32
    %c0_i32_0 = arith.constant 0 : i32
    %c0_i32_1 = arith.constant 0 : i32
    %c0_i32_2 = arith.constant 0 : i32
    return %c0_i32, %c0_i32_0, %c0_i32_1 : i32, i32, i32
  }
  func.func @transform_18(%arg0: i32) -> (i32, i32, i32) {
    %c0_i32 = arith.constant 0 : i32
    %c0_i32_0 = arith.constant 0 : i32
    %c0_i32_1 = arith.constant 0 : i32
    %c0_i32_2 = arith.constant 0 : i32
    return %c0_i32, %c0_i32_0, %c0_i32_1 : i32, i32, i32
  }
  func.func @transform_19(%arg0: i32) -> (i32, i32) {
    %c0_i32 = arith.constant 0 : i32
    %c0_i32_0 = arith.constant 0 : i32
    %c0_i32_1 = arith.constant 0 : i32
    return %c0_i32, %c0_i32_0 : i32, i32
  }
  func.func @transform_20(%arg0: i32) -> (i32, i32) {
    %c0_i32 = arith.constant 0 : i32
    %c0_i32_0 = arith.constant 0 : i32
    %c0_i32_1 = arith.constant 0 : i32
    return %c0_i32, %c0_i32_0 : i32, i32
  }
  func.func @transform_21(%arg0: i32) -> (i32, i32) {
    %c0_i32 = arith.constant 0 : i32
    %c0_i32_0 = arith.constant 0 : i32
    %c0_i32_1 = arith.constant 0 : i32
    return %c0_i32, %c0_i32_0 : i32, i32
  }
  func.func @transform_22(%arg0: i32) -> (i32, i32, i32) {
    %c0_i32 = arith.constant 0 : i32
    %c0_i32_0 = arith.constant 0 : i32
    %c0_i32_1 = arith.constant 0 : i32
    %c0_i32_2 = arith.constant 0 : i32
    return %c0_i32, %c0_i32_0, %c0_i32_1 : i32, i32, i32
  }
  func.func @transform_23(%arg0: i32) -> (i32, i32, i32) {
    %c0_i32 = arith.constant 0 : i32
    %c0_i32_0 = arith.constant 0 : i32
    %c0_i32_1 = arith.constant 0 : i32
    %c0_i32_2 = arith.constant 0 : i32
    return %c0_i32, %c0_i32_0, %c0_i32_1 : i32, i32, i32
  }
  func.func @transform_24(%arg0: i32) -> (i32, i32, i32) {
    %c0_i32 = arith.constant 0 : i32
    %c0_i32_0 = arith.constant 0 : i32
    %c0_i32_1 = arith.constant 0 : i32
    %c0_i32_2 = arith.constant 0 : i32
    return %c0_i32, %c0_i32_0, %c0_i32_1 : i32, i32, i32
  }
  func.func @transform_25(%arg0: i32) -> (i32, i32, i32) {
    %c0_i32 = arith.constant 0 : i32
    %c0_i32_0 = arith.constant 0 : i32
    %c0_i32_1 = arith.constant 0 : i32
    %c0_i32_2 = arith.constant 0 : i32
    return %c0_i32, %c0_i32_0, %c0_i32_1 : i32, i32, i32
  }
  func.func @transform_26(%arg0: i32) -> (i32, i32, i32) {
    %c0_i32 = arith.constant 0 : i32
    %c0_i32_0 = arith.constant 0 : i32
    %c0_i32_1 = arith.constant 0 : i32
    %c0_i32_2 = arith.constant 0 : i32
    return %c0_i32, %c0_i32_0, %c0_i32_1 : i32, i32, i32
  }
  func.func @transform_27(%arg0: i32) -> (i32, i32, i32) {
    %c0_i32 = arith.constant 0 : i32
    %c0_i32_0 = arith.constant 0 : i32
    %c0_i32_1 = arith.constant 0 : i32
    %c0_i32_2 = arith.constant 0 : i32
    return %c0_i32, %c0_i32_0, %c0_i32_1 : i32, i32, i32
  }
  func.func @transform_28(%arg0: i32) -> (i32, i32, i32) {
    %c0_i32 = arith.constant 0 : i32
    %c0_i32_0 = arith.constant 0 : i32
    %c0_i32_1 = arith.constant 0 : i32
    %c0_i32_2 = arith.constant 0 : i32
    return %c0_i32, %c0_i32_0, %c0_i32_1 : i32, i32, i32
  }
  func.func @transform_29(%arg0: i32) -> (i32, i32, i32) {
    %c0_i32 = arith.constant 0 : i32
    %c0_i32_0 = arith.constant 0 : i32
    %c0_i32_1 = arith.constant 0 : i32
    %c0_i32_2 = arith.constant 0 : i32
    return %c0_i32, %c0_i32_0, %c0_i32_1 : i32, i32, i32
  }
  func.func @transform_30(%arg0: i32) -> (i32, i32, i32) {
    %c0_i32 = arith.constant 0 : i32
    %c0_i32_0 = arith.constant 0 : i32
    %c0_i32_1 = arith.constant 0 : i32
    %c0_i32_2 = arith.constant 0 : i32
    return %c0_i32, %c0_i32_0, %c0_i32_1 : i32, i32, i32
  }
  func.func @transform_31(%arg0: i32) -> (i32, i32, i32) {
    %c0_i32 = arith.constant 0 : i32
    %c0_i32_0 = arith.constant 0 : i32
    %c0_i32_1 = arith.constant 0 : i32
    %c0_i32_2 = arith.constant 0 : i32
    return %c0_i32, %c0_i32_0, %c0_i32_1 : i32, i32, i32
  }
  func.func @transform_32(%arg0: i32) -> (i32, i32, i32) {
    %c0_i32 = arith.constant 0 : i32
    %c0_i32_0 = arith.constant 0 : i32
    %c0_i32_1 = arith.constant 0 : i32
    %c0_i32_2 = arith.constant 0 : i32
    return %c0_i32, %c0_i32_0, %c0_i32_1 : i32, i32, i32
  }
  func.func @transform_33(%arg0: i32) -> (i32, i32, i32) {
    %c0_i32 = arith.constant 0 : i32
    %c0_i32_0 = arith.constant 0 : i32
    %c0_i32_1 = arith.constant 0 : i32
    %c0_i32_2 = arith.constant 0 : i32
    return %c0_i32, %c0_i32_0, %c0_i32_1 : i32, i32, i32
  }
  func.func @transform_34(%arg0: i32) -> (i32, i32, i32) {
    %c0_i32 = arith.constant 0 : i32
    %c0_i32_0 = arith.constant 0 : i32
    %c0_i32_1 = arith.constant 0 : i32
    %c0_i32_2 = arith.constant 0 : i32
    return %c0_i32, %c0_i32_0, %c0_i32_1 : i32, i32, i32
  }
  func.func @transform_35(%arg0: i32) -> (i32, i32) {
    %c0_i32 = arith.constant 0 : i32
    %c0_i32_0 = arith.constant 0 : i32
    %c0_i32_1 = arith.constant 0 : i32
    return %c0_i32, %c0_i32_0 : i32, i32
  }
  func.func @transform_36(%arg0: i32) -> (i32, i32) {
    %c0_i32 = arith.constant 0 : i32
    %c0_i32_0 = arith.constant 0 : i32
    %c0_i32_1 = arith.constant 0 : i32
    return %c0_i32, %c0_i32_0 : i32, i32
  }
  func.func @transform_37(%arg0: i32) -> (i32, i32) {
    %c0_i32 = arith.constant 0 : i32
    %c0_i32_0 = arith.constant 0 : i32
    %c0_i32_1 = arith.constant 0 : i32
    return %c0_i32, %c0_i32_0 : i32, i32
  }
  func.func @transform_38(%arg0: i32) -> (i32, i32) {
    %c0_i32 = arith.constant 0 : i32
    %c0_i32_0 = arith.constant 0 : i32
    %c0_i32_1 = arith.constant 0 : i32
    return %c0_i32, %c0_i32_0 : i32, i32
  }
  func.func @transform_39(%arg0: i32) -> (i32, i32) {
    %c0_i32 = arith.constant 0 : i32
    %c0_i32_0 = arith.constant 0 : i32
    %c0_i32_1 = arith.constant 0 : i32
    return %c0_i32, %c0_i32_0 : i32, i32
  }
  func.func @transform_40(%arg0: i32) -> (i32, i32) {
    %c0_i32 = arith.constant 0 : i32
    %c0_i32_0 = arith.constant 0 : i32
    %c0_i32_1 = arith.constant 0 : i32
    return %c0_i32, %c0_i32_0 : i32, i32
  }
  func.func @transform_41(%arg0: i32) -> (i32, i32) {
    %c0_i32 = arith.constant 0 : i32
    %c0_i32_0 = arith.constant 0 : i32
    %c0_i32_1 = arith.constant 0 : i32
    return %c0_i32, %c0_i32_0 : i32, i32
  }
  func.func @transform_42(%arg0: i32) -> (i32, i32, i32) {
    %c0_i32 = arith.constant 0 : i32
    %c0_i32_0 = arith.constant 0 : i32
    %c0_i32_1 = arith.constant 0 : i32
    return %arg0, %c0_i32, %c0_i32_0 : i32, i32, i32
  }
}

</mosaic_0001>

<bundles_post_ra>
// kernel: eq.1
= control target key start
LH: loop header
LB: loop body
LE: loop exit
PB: predicated region body
PF: predicated region fallthrough
CT: control target
= control target key end

     0   :  { %s29_s10 = smov 3  ;;  %s10_s11 = smov 3  ;;  %vm12_vm0 = vcmask 31744   ;;  %vm19_vm1 = vcmask 130144   ;;  %vm26_vm2 = vcmask 97344   ;;  %vm33_vm3 = vcmask 64544   ;;  %s67_s0 = inlined_call_operand.vmem [shape: s32[2,4,4], index: 0, kind: input, shape index: {}]   ;;  %s68_s1 = inlined_call_operand.vmem [shape: s32[2,16], index: 1, kind: output, shape index: {}]  }
   0x1   :  { %v41_v0 = vld [vmem:[%s67_s0 + $0x4] sm:$0xf]  ;;  %v8_v1 = vld [vmem:[%s67_s0] sm:$0xf]  ;;  %s15_s0 = smov 3  ;;  %s22_s12 = smov 3 }
   0x2   :  { %7 = vst [vmem:[#allocation1 + $0x8] sm:$0xf] %v41_v0  ;;  %9 = vst [vmem:[#allocation1] sm:$0xf] %v8_v1  ;;  %s45_s13 = smov 12   ;;  %s46_s14 = smov 4  }
   0x3   :  { %s47_s15 = smov 8  }
   0x9   :  { %v16_v2 = vld [vmem:[#allocation1 + $0x3] ss:$8 sm:%s15_s0]   ;;  %v30_v3 = vld [vmem:[#allocation1 + $0x1] ss:$8 sm:%s29_s10]   ;;  %v11_v4 = vld [vmem:[#allocation1] ss:$8 sm:%s10_s11]  }
   0xa   :  { %17 = vrot.lane.b32.xlu0 %v16_v2, %s45_s13  ;;  %31 = vrot.lane.b32.xlu1 %v30_v3, %s46_s14  ;;  %v23_v5 = vld [vmem:[#allocation1 + $0x2] ss:$8 sm:%s22_s12]   ;;  %13 = vst.msk [vmem:[#allocation0] sm:$0x3] %vm12_vm0, %v11_v4  }
   0xe   :  { %24 = vrot.lane.b32.xlu0 %v23_v5, %s47_s15 }
  0x7c   :  { %v18_v6 = vpop.permute.xlu0 %17   ;;  %v32_v7 = vpop.permute.xlu1 %31  }
  0x7d   :  { %20 = vst.msk [vmem:[#allocation0] sm:$0x3] %vm19_vm1, %v18_v6  }
  0x80   :  { %v25_v8 = vpop.permute.xlu0 %24  }
  0x81   :  { %27 = vst.msk [vmem:[#allocation0] sm:$0x3] %vm26_vm2, %v25_v8  }
  0x82   :  { %34 = vst.msk [vmem:[#allocation0] sm:$0x3] %vm33_vm3, %v32_v7  }
  0x89   :  { %v38_v9 = vld [vmem:[#allocation0] sm:$0x3] }
  0x8a   :  { %40 = vst [vmem:[%s68_s1] sm:$0x3] %v38_v9 }

// kernel: forward.2
= control target key start
LH: loop header
LB: loop body
LE: loop exit
PB: predicated region body
PF: predicated region fallthrough
CT: control target
= control target key end

     0   :  { %s6446_s18 = smov 0   ;;  %s6448_s19 = smov 0   ;;  %s8203_s0 = inlined_call_operand.vmem [shape: bf16[8,4,3], index: 0, kind: input, shape index: {}]   ;;  %s8204_s1 = inlined_call_operand.vmem [shape: bf16[3,2048], index: 1, kind: input, shape index: {}]   ;;  %s8205_s2 = inlined_call_operand.vmem [shape: f32[1,2048], index: 2, kind: input, shape index: {}]   ;;  %s8206_s3 = inlined_call_operand.vmem [shape: bf16[2048,512], index: 3, kind: input, shape index: {}]   ;;  %s8207_s4 = inlined_call_operand.vmem [shape: f32[1,512], index: 4, kind: input, shape index: {}]   ;;  %s8208_s5 = inlined_call_operand.vmem [shape: f32[8,1,512], index: 5, kind: output, shape index: {}]  }
   0x1   :  { %s6450_s20 = smov 0  }
   0x2 LB: > { %s27_s21 = sadd.s32 1, %s6406_s19  ;;  %p5003_p0 = scmp.ge.s32.totalorder %s6410_s20, 1  ;;  %s6410_s20 = sphi %s6450_s20, %s15_s20   ;;  %s6406_s19 = sphi %s6448_s19, %s8210_s19   ;;  %s6402_s18 = sphi %s6446_s18, %s8209_s18  }
   0x3   : > { %p29_p1 = scmp.ge.s32.totalorder %s27_s21, 8  ;;  %p203_p2 = scmp.lt.s32.totalorder %s6410_s20, 9 }
   0x5   : > { %s8212_s21 = smov (%p29_p1, %s27_s21), 0  ;;  %p204_p3 = pnand %p5003_p0, %p203_p2 }
   0x6   : > { %v251_v0 = vld [vmem:[%s8204_s1] sm:$0xff] (!%p204_p3)  ;;  %v259_v1 = vlaneseq (!%p204_p3)  ;;  %vm415_vm0 = vcmask (!%p204_p3), 1040384   ;;  %p232_p4 = scmp.lt.s32.totalorder (!%p204_p3), %s6402_s18, 7  ;;  %v6412_v2 = vmov (!%p204_p3), 1983009808   ;;  %v252_v4 = vld [vmem:[%s8204_s1 + $0x8] sm:$0xff] (!%p204_p3) }
   0x7   : > { %207 = sbr.rel (%p204_p3) target bundleno = 953 (0x3b9), region = 40  ;;  %v345_v3 = vunpack.c.l.s4 (!%p204_p3), %v6412_v2  ;;  %v253_v5 = vld [vmem:[%s8204_s1 + $0x10] sm:$0xff] (!%p204_p3)  ;;  %vm416_vm1 = vcmask (!%p204_p3), 1041408   ;;  %v6413_v7 = vmov (!%p204_p3), 0   ;;  %v6414_v9 = vmov (!%p204_p3), 65535   ;;  %v254_v22 = vld [vmem:[%s8204_s1 + $0x18] sm:$0xff] (!%p204_p3) }
   0x8   : > { %v6474_v6 = vshrl.u32 (!%p204_p3), %v259_v1, 7  ;;  %499 = vmatprep.mubr.bf16.mxu0 (!%p204_p3), %v6413_v7  ;;  %540 = vmatprep.mubr.bf16.mxu1 (!%p204_p3), %v6413_v7  ;;  %v417_v10 = vsel (!%p204_p3), %vm415_vm0, 4294967295, %v6414_v9  ;;  %v343_v11 = vcombine.high (!%p204_p3), %v251_v0, %v251_v0  ;;  %v360_v12 = vcombine.high (!%p204_p3), %v252_v4, %v252_v4  ;;  %v5622_v51 = vld [vmem:[%s8206_s3 + $0x4] ss:$16 sps:$4 sm:$0xff] (!%p204_p3)   ;;  %v5625_v52 = vld [vmem:[%s8206_s3 + $0xc] ss:$16 sps:$4 sm:$0xff] (!%p204_p3)  }
   0x9   : > { %v346_v8 = vunpack.c.0.s8 (!%p204_p3), %v345_v3  ;;  %v377_v13 = vcombine.high (!%p204_p3), %v253_v5, %v253_v5  ;;  %v6482_v15 = vsel (!%p204_p3), %vm416_vm1, %v417_v10, 0  ;;  %v394_v31 = vcombine.high (!%p204_p3), %v254_v22, %v254_v22  ;;  %v5620_v53 = vld [vmem:[%s8206_s3] ss:$16 sps:$4 sm:$0xff] (!%p204_p3)   ;;  %v5623_v54 = vld [vmem:[%s8206_s3 + $0x8] ss:$16 sps:$4 sm:$0xff] (!%p204_p3)  }
   0xa   : > { %vm411_vm2 = vcmask (!%p204_p3), 23552   ;;  %v5628_v55 = vld [vmem:[%s8206_s3 + $0x24] ss:$16 sps:$4 sm:$0xff] (!%p204_p3)   ;;  %v5631_v56 = vld [vmem:[%s8206_s3 + $0x2c] ss:$16 sps:$4 sm:$0xff] (!%p204_p3)   ;;  %vm813_vm3 = vcmask (!%p204_p3), 1043456  }
   0xb   : > { %v349_v14 = vsub.s32 (!%p204_p3), %v346_v8, %v6474_v6  ;;  %v5626_v57 = vld [vmem:[%s8206_s3 + $0x20] ss:$16 sps:$4 sm:$0xff] (!%p204_p3)   ;;  %v5629_v58 = vld [vmem:[%s8206_s3 + $0x28] ss:$16 sps:$4 sm:$0xff] (!%p204_p3)   ;;  %v5634_v59 = vld [vmem:[%s8206_s3 + $0x44] ss:$16 sps:$4 sm:$0xff] (!%p204_p3)  }
   0xc   : > { %v5637_v60 = vld [vmem:[%s8206_s3 + $0x4c] ss:$16 sps:$4 sm:$0xff] (!%p204_p3)   ;;  %v5632_v61 = vld [vmem:[%s8206_s3 + $0x40] ss:$16 sps:$4 sm:$0xff] (!%p204_p3)   ;;  %v5635_v62 = vld [vmem:[%s8206_s3 + $0x48] ss:$16 sps:$4 sm:$0xff] (!%p204_p3)  }
   0xd   : > { %v350_v16 = vrot.slane (!%p204_p3), %v251_v0, %v349_v14  ;;  %v357_v17 = vrot.slane (!%p204_p3), %v343_v11, %v349_v14  ;;  %v367_v18 = vrot.slane (!%p204_p3), %v252_v4, %v349_v14  ;;  %v374_v19 = vrot.slane (!%p204_p3), %v360_v12, %v349_v14  ;;  %v5640_v63 = vld [vmem:[%s8206_s3 + $0x64] ss:$16 sps:$4 sm:$0xff] (!%p204_p3)   ;;  %v5643_v0 = vld [vmem:[%s8206_s3 + $0x6c] ss:$16 sps:$4 sm:$0xff] (!%p204_p3)   ;;  %v5638_v2 = vld [vmem:[%s8206_s3 + $0x60] ss:$16 sps:$4 sm:$0xff] (!%p204_p3)  }
   0xe   : > { %s8214_s18 = smov (!%p232_p4, %s6402_s18), 7  ;;  %v384_v20 = vrot.slane %v253_v5, %v349_v14  ;;  %v391_v21 = vrot.slane %v377_v13, %v349_v14  ;;  %v401_v41 = vrot.slane %v254_v22, %v349_v14  ;;  %v408_v42 = vrot.slane %v394_v31, %v349_v14  ;;  %v5641_v3 = vld [vmem:[%s8206_s3 + $0x68] ss:$16 sps:$4 sm:$0xff]   ;;  %v5646_v4 = vld [vmem:[%s8206_s3 + $0x84] ss:$16 sps:$4 sm:$0xff]  }
   0xf   : > { %s5004_s28 = sshll.u32 %s8214_s18, 1  ;;  %v358_v23 = vcombine.high %v350_v16, %v350_v16  ;;  %v359_v24 = vcombine.high %v357_v17, %v357_v17  ;;  %v420_v25 = vand.u32 %v6482_v15, %v350_v16  ;;  %v426_v26 = vand.u32 %v6482_v15, %v357_v17  ;;  %v5649_v5 = vld [vmem:[%s8206_s3 + $0x8c] ss:$16 sps:$4 sm:$0xff]   ;;  %v5647_v8 = vld [vmem:[%s8206_s3 + $0x88] ss:$16 sps:$4 sm:$0xff]   ;;  %s5005_s10 = sshll.u32 %s8214_s18, 2 }
  0x10   : > { %v375_v27 = vcombine.high %v367_v18, %v367_v18  ;;  %v376_v28 = vcombine.high %v374_v19, %v374_v19  ;;  %s238_s8 = scalar_lea.vmem %s8203_s0, %s5004_s28  ;;  %v392_v34 = vcombine.high %v384_v20, %v384_v20  ;;  %v393_v35 = vcombine.high %v391_v21, %v391_v21  ;;  %v5652_v9 = vld [vmem:[%s8206_s3 + $0xa4] ss:$16 sps:$4 sm:$0xff]   ;;  %v5655_v10 = vld [vmem:[%s8206_s3 + $0xac] ss:$16 sps:$4 sm:$0xff]   ;;  %v5650_v11 = vld [vmem:[%s8206_s3 + $0xa0] ss:$16 sps:$4 sm:$0xff]   ;;  %s242_s13 = scalar_lea.vmem %s8208_s5, %s5005_s10 }
  0x11   : > { %v423_v29 = vand.u32 %v6482_v15, %v358_v23  ;;  %v429_v30 = vand.u32 %v6482_v15, %v359_v24  ;;  %v250_v36 = vld [vmem:[%s238_s8] sm:$0x3]  ;;  %v432_v37 = vand.u32 %v6482_v15, %v367_v18  ;;  %v438_v38 = vand.u32 %v6482_v15, %v374_v19  ;;  %v5653_v12 = vld [vmem:[%s8206_s3 + $0xa8] ss:$16 sps:$4 sm:$0xff]   ;;  %v5658_v13 = vld [vmem:[%s8206_s3 + $0xc4] ss:$16 sps:$4 sm:$0xff]  }
  0x12   : > { %v435_v32 = vand.u32 %v6482_v15, %v375_v27  ;;  %v441_v33 = vand.u32 %v6482_v15, %v376_v28  ;;  %v447_v39 = vand.u32 %v6482_v15, %v392_v34  ;;  %v453_v40 = vand.u32 %v6482_v15, %v393_v35  ;;  %v5661_v14 = vld [vmem:[%s8206_s3 + $0xcc] ss:$16 sps:$4 sm:$0xff]   ;;  %v5659_v16 = vld [vmem:[%s8206_s3 + $0xc8] ss:$16 sps:$4 sm:$0xff]   ;;  %v5664_v17 = vld [vmem:[%s8206_s3 + $0xe4] ss:$16 sps:$4 sm:$0xff]  }
  0x13   : > { %467 = vmatprep.subr.bf16.mxu0 %v423_v29  ;;  %508 = vmatprep.subr.bf16.mxu1 %v429_v30  ;;  %v409_v43 = vcombine.high %v401_v41, %v401_v41  ;;  %v410_v44 = vcombine.high %v408_v42, %v408_v42  ;;  %v444_v45 = vand.u32 %v6482_v15, %v384_v20  ;;  %v5667_v18 = vld [vmem:[%s8206_s3 + $0xec] ss:$16 sps:$4 sm:$0xff]   ;;  %v5662_v19 = vld [vmem:[%s8206_s3 + $0xe0] ss:$16 sps:$4 sm:$0xff]   ;;  %v5665_v20 = vld [vmem:[%s8206_s3 + $0xe8] ss:$16 sps:$4 sm:$0xff]  }
  0x14   : > { %468 = vmatpush1.bf16.msra.mxu0 %v420_v25  ;;  %509 = vmatpush1.bf16.msra.mxu1 %v426_v26  ;;  %v450_v46 = vand.u32 %v6482_v15, %v391_v21  ;;  %v456_v49 = vand.u32 %v6482_v15, %v401_v41  ;;  %v462_v50 = vand.u32 %v6482_v15, %v408_v42  ;;  %v5670_v21 = vld [vmem:[%s8206_s3 + $0x104] ss:$16 sps:$4 sm:$0xff]   ;;  %v5673_v22 = vld [vmem:[%s8206_s3 + $0x10c] ss:$16 sps:$4 sm:$0xff]   ;;  %v5668_v23 = vld [vmem:[%s8206_s3 + $0x100] ss:$16 sps:$4 sm:$0xff]  }
  0x15   : > { %549 = vmatprep.subr.bf16.mxu0 %v435_v32  ;;  %590 = vmatprep.subr.bf16.mxu1 %v441_v33  ;;  %v459_v47 = vand.u32 %v6482_v15, %v409_v43  ;;  %v465_v48 = vand.u32 %v6482_v15, %v410_v44  ;;  %v5656_v15 = vld [vmem:[%s8206_s3 + $0xc0] ss:$16 sps:$4 sm:$0xff]   ;;  %v5671_v24 = vld [vmem:[%s8206_s3 + $0x108] ss:$16 sps:$4 sm:$0xff]   ;;  %v5676_v25 = vld [vmem:[%s8206_s3 + $0x124] ss:$16 sps:$4 sm:$0xff]  }
  0x16   : > { %v5679_v26 = vld [vmem:[%s8206_s3 + $0x12c] ss:$16 sps:$4 sm:$0xff]   ;;  %v5674_v27 = vld [vmem:[%s8206_s3 + $0x120] ss:$16 sps:$4 sm:$0xff]   ;;  %v5677_v28 = vld [vmem:[%s8206_s3 + $0x128] ss:$16 sps:$4 sm:$0xff]  }
  0x17   : > { %5006 = vmatmul.mubr.msk.bf16.vlgmr.msra.gmra.mrb[0].mxu0 %vm411_vm2, %v250_v36  ;;  %5007 = vmatmul.mubr.msk.bf16.vlgmr.msra.gmra.mrb[0].mxu1 %vm411_vm2, %v250_v36  ;;  %v5682_v29 = vld [vmem:[%s8206_s3 + $0x144] ss:$16 sps:$4 sm:$0xff]   ;;  %v5685_v30 = vld [vmem:[%s8206_s3 + $0x14c] ss:$16 sps:$4 sm:$0xff]   ;;  %v5680_v31 = vld [vmem:[%s8206_s3 + $0x140] ss:$16 sps:$4 sm:$0xff]  }
  0x18   : > { %550 = vmatpush1.bf16.msra.mxu0 %v432_v37  ;;  %591 = vmatpush1.bf16.msra.mxu1 %v438_v38  ;;  %v5683_v32 = vld [vmem:[%s8206_s3 + $0x148] ss:$16 sps:$4 sm:$0xff]   ;;  %v5688_v33 = vld [vmem:[%s8206_s3 + $0x164] ss:$16 sps:$4 sm:$0xff]   ;;  %v5691_v34 = vld [vmem:[%s8206_s3 + $0x16c] ss:$16 sps:$4 sm:$0xff]  }
  0x19   : > { %581 = vmatprep.mubr.bf16.mxu0 %v6413_v7  ;;  %622 = vmatprep.mubr.bf16.mxu1 %v6413_v7  ;;  %v5686_v35 = vld [vmem:[%s8206_s3 + $0x160] ss:$16 sps:$4 sm:$0xff]   ;;  %v5694_v37 = vld [vmem:[%s8206_s3 + $0x184] ss:$16 sps:$4 sm:$0xff]   ;;  %v5697_v38 = vld [vmem:[%s8206_s3 + $0x18c] ss:$16 sps:$4 sm:$0xff]  }
  0x1a   : > { %631 = vmatprep.subr.bf16.mxu0 %v447_v39  ;;  %672 = vmatprep.subr.bf16.mxu1 %v453_v40  ;;  %v5692_v39 = vld [vmem:[%s8206_s3 + $0x180] ss:$16 sps:$4 sm:$0xff]   ;;  %v5695_v40 = vld [vmem:[%s8206_s3 + $0x188] ss:$16 sps:$4 sm:$0xff]   ;;  %v5700_v41 = vld [vmem:[%s8206_s3 + $0x1a4] ss:$16 sps:$4 sm:$0xff]  }
  0x1b   : > { %v5703_v42 = vld [vmem:[%s8206_s3 + $0x1ac] ss:$16 sps:$4 sm:$0xff]   ;;  %v5698_v43 = vld [vmem:[%s8206_s3 + $0x1a0] ss:$16 sps:$4 sm:$0xff]   ;;  %v5701_v44 = vld [vmem:[%s8206_s3 + $0x1a8] ss:$16 sps:$4 sm:$0xff]  }
  0x1c   : > { %vm4932_vm4 = vcmp.lt.s32.totalorder %v259_v1, 512 }
  0x1f   : > { %5008 = vmatmul.mubr.msk.bf16.vlgmr.msra.gmra.mrb[4].mxu0 %vm411_vm2, %v250_v36  ;;  %5009 = vmatmul.mubr.msk.bf16.vlgmr.msra.gmra.mrb[4].mxu1 %vm411_vm2, %v250_v36 }
  0x20   : > { %632 = vmatpush1.bf16.msra.mxu0 %v444_v45  ;;  %673 = vmatpush1.bf16.msra.mxu1 %v450_v46  ;;  %v5706_v45 = vld [vmem:[%s8206_s3 + $0x1c4] ss:$16 sps:$4 sm:$0xff]   ;;  %v5709_v46 = vld [vmem:[%s8206_s3 + $0x1cc] ss:$16 sps:$4 sm:$0xff]  }
  0x21   : > { %663 = vmatprep.mubr.bf16.mxu0 %v6413_v7  ;;  %704 = vmatprep.mubr.bf16.mxu1 %v6413_v7 }
  0x22   : > { %713 = vmatprep.subr.bf16.mxu0 %v459_v47  ;;  %754 = vmatprep.subr.bf16.mxu1 %v465_v48  ;;  %v5704_v47 = vld [vmem:[%s8206_s3 + $0x1c0] ss:$16 sps:$4 sm:$0xff]   ;;  %v5707_v48 = vld [vmem:[%s8206_s3 + $0x1c8] ss:$16 sps:$4 sm:$0xff]  }
  0x27   : > { %5010 = vmatmul.mubr.msk.bf16.vlgmr.msra.gmra.mrb[8].mxu0 %vm411_vm2, %v250_v36  ;;  %5011 = vmatmul.mubr.msk.bf16.vlgmr.msra.gmra.mrb[8].mxu1 %vm411_vm2, %v250_v36 }
  0x28   : > { %714 = vmatpush1.bf16.msra.mxu0 %v456_v49  ;;  %755 = vmatpush1.bf16.msra.mxu1 %v462_v50  ;;  %v5710_v49 = vld [vmem:[%s8206_s3 + $0x1e0] ss:$16 sps:$4 sm:$0xff]   ;;  %v5712_v50 = vld [vmem:[%s8206_s3 + $0x1e4] ss:$16 sps:$4 sm:$0xff]  }
  0x29   : > { %745 = vmatprep.mubr.bf16.mxu0 %v6413_v7  ;;  %786 = vmatprep.mubr.bf16.mxu1 %v6413_v7  ;;  %v5644_v7 = vld [vmem:[%s8206_s3 + $0x80] ss:$16 sps:$4 sm:$0xff]  }
  0x2a   : > { %4245 = vmatprep.subr.bf16.mxu0 %v5622_v51  ;;  %4573 = vmatprep.subr.bf16.mxu1 %v5625_v52  ;;  %v5713_v51 = vld [vmem:[%s8206_s3 + $0x1e8] ss:$16 sps:$4 sm:$0xff]   ;;  %v5715_v52 = vld [vmem:[%s8206_s3 + $0x1ec] ss:$16 sps:$4 sm:$0xff]  }
  0x2f   : > { %5012 = vmatmul.mubr.msk.bf16.vlgmr.msra.gmra.mrb[12].mxu0 %vm411_vm2, %v250_v36  ;;  %5013 = vmatmul.mubr.msk.bf16.vlgmr.msra.gmra.mrb[12].mxu1 %vm411_vm2, %v250_v36  ;;  %v5689_v36 = vld [vmem:[%s8206_s3 + $0x168] ss:$16 sps:$4 sm:$0xff]  }
  0x30   : > { %4246 = vmatpush1.bf16.msra.mxu0 %v5620_v53  ;;  %4574 = vmatpush1.bf16.msra.mxu1 %v5623_v54  ;;  %v5718_v53 = vld [vmem:[%s8206_s3 + $0x204] ss:$16 sps:$4 sm:$0xff]   ;;  %v5721_v54 = vld [vmem:[%s8206_s3 + $0x20c] ss:$16 sps:$4 sm:$0xff]  }
  0x31   : > { %4247 = vmatprep.subr.bf16.mxu0 %v5628_v55  ;;  %4575 = vmatprep.subr.bf16.mxu1 %v5631_v56  ;;  %v6720_v55 = vsub.s32 0, %v6474_v6  ;;  %v6723_v56 = vsub.s32 2, %v6474_v6 }
  0x34   : > { %4248 = vmatpush1.bf16.msra.mxu0 %v5626_v57  ;;  %4576 = vmatpush1.bf16.msra.mxu1 %v5629_v58  ;;  %v255_v57 = vld [vmem:[%s8205_s2] sm:$0xff]  ;;  %v6729_v58 = vsub.s32 1, %v6474_v6 }
  0x35   : > { %4249 = vmatprep.subr.bf16.mxu0 %v5634_v59  ;;  %4577 = vmatprep.subr.bf16.mxu1 %v5637_v60  ;;  %v6732_v59 = vsub.s32 3, %v6474_v6  ;;  %v262_v60 = vrot.slane %v255_v57, %v6720_v55 }
  0x38   : > { %4250 = vmatpush1.bf16.msra.mxu0 %v5632_v61  ;;  %4578 = vmatpush1.bf16.msra.mxu1 %v5635_v62  ;;  %v270_v61 = vrot.slane %v255_v57, %v6723_v56  ;;  %v266_v62 = vrot.slane %v255_v57, %v6729_v58 }
  0x39   : > { %4251 = vmatprep.subr.bf16.mxu0 %v5640_v63  ;;  %4579 = vmatprep.subr.bf16.mxu1 %v5643_v0  ;;  %v274_v63 = vrot.slane %v255_v57, %v6732_v59  ;;  %v6739_v0 = vsub.s32 4, %v6474_v6 }
  0x3c   : > { %4252 = vmatpush1.bf16.msra.mxu0 %v5638_v2  ;;  %4580 = vmatpush1.bf16.msra.mxu1 %v5641_v3 }
  0x3d   : > { %4253 = vmatprep.subr.bf16.mxu0 %v5646_v4  ;;  %4581 = vmatprep.subr.bf16.mxu1 %v5649_v5  ;;  %v6415_v4 = vmov 1966171168  }
  0x3e   : > { %v947_v5 = vunpack.c.l.s4 %v6415_v4 }
  0x40   : > { %4254 = vmatpush1.bf16.msra.mxu0 %v5644_v7  ;;  %4582 = vmatpush1.bf16.msra.mxu1 %v5647_v8  ;;  %v6742_v7 = vsub.s32 6, %v6474_v6 }
  0x41   : > { %4255 = vmatprep.subr.bf16.mxu0 %v5652_v9  ;;  %4583 = vmatprep.subr.bf16.mxu1 %v5655_v10 }
  0x44   : > { %4256 = vmatpush1.bf16.msra.mxu0 %v5650_v11  ;;  %4584 = vmatpush1.bf16.msra.mxu1 %v5653_v12  ;;  %v6745_v12 = vsub.s32 5, %v6474_v6 }
  0x45   : > { %4257 = vmatprep.subr.bf16.mxu0 %v5658_v13  ;;  %4585 = vmatprep.subr.bf16.mxu1 %v5661_v14  ;;  %v6748_v13 = vsub.s32 7, %v6474_v6 }
  0x48   : > { %4258 = vmatpush1.bf16.msra.mxu0 %v5656_v15  ;;  %4586 = vmatpush1.bf16.msra.mxu1 %v5659_v16 }
  0x49   : > { %4259 = vmatprep.subr.bf16.mxu0 %v5664_v17  ;;  %4587 = vmatprep.subr.bf16.mxu1 %v5667_v18 }
  0x4c   : > { %4260 = vmatpush1.bf16.msra.mxu0 %v5662_v19  ;;  %4588 = vmatpush1.bf16.msra.mxu1 %v5665_v20 }
  0x4d   : > { %4261 = vmatprep.subr.bf16.mxu0 %v5670_v21  ;;  %4589 = vmatprep.subr.bf16.mxu1 %v5673_v22  ;;  %v278_v22 = vrot.slane %v255_v57, %v6739_v0 }
  0x50   : > { %4262 = vmatpush1.bf16.msra.mxu0 %v5668_v23  ;;  %4590 = vmatpush1.bf16.msra.mxu1 %v5671_v24  ;;  %v948_v24 = vunpack.c.0.s8 %v947_v5 }
  0x51   : > { %4263 = vmatprep.subr.bf16.mxu0 %v5676_v25  ;;  %4591 = vmatprep.subr.bf16.mxu1 %v5679_v26  ;;  %v286_v26 = vrot.slane %v255_v57, %v6742_v7 }
  0x54   : > { %4264 = vmatpush1.bf16.msra.mxu0 %v5674_v27  ;;  %4592 = vmatpush1.bf16.msra.mxu1 %v5677_v28 }
  0x55   : > { %4265 = vmatprep.subr.bf16.mxu0 %v5682_v29  ;;  %4593 = vmatprep.subr.bf16.mxu1 %v5685_v30  ;;  %v282_v29 = vrot.slane %v255_v57, %v6745_v12  ;;  %v290_v30 = vrot.slane %v255_v57, %v6748_v13 }
  0x58   : > { %4266 = vmatpush1.bf16.msra.mxu0 %v5680_v31  ;;  %4594 = vmatpush1.bf16.msra.mxu1 %v5683_v32 }
  0x59   : > { %4267 = vmatprep.subr.bf16.mxu0 %v5688_v33  ;;  %4595 = vmatprep.subr.bf16.mxu1 %v5691_v34 }
  0x5c   : > { %4268 = vmatpush1.bf16.msra.mxu0 %v5686_v35  ;;  %4596 = vmatpush1.bf16.msra.mxu1 %v5689_v36 }
  0x5d   : > { %4269 = vmatprep.subr.bf16.mxu0 %v5694_v37  ;;  %4597 = vmatprep.subr.bf16.mxu1 %v5697_v38 }
  0x60   : > { %4270 = vmatpush1.bf16.msra.mxu0 %v5692_v39  ;;  %4598 = vmatpush1.bf16.msra.mxu1 %v5695_v40  ;;  %v6759_v39 = vsub.s32 %v948_v24, %v6474_v6 }
  0x61   : > { %4271 = vmatprep.subr.bf16.mxu0 %v5700_v41  ;;  %4599 = vmatprep.subr.bf16.mxu1 %v5703_v42 }
  0x64   : > { %4272 = vmatpush1.bf16.msra.mxu0 %v5698_v43  ;;  %4600 = vmatpush1.bf16.msra.mxu1 %v5701_v44 }
  0x65   : > { %4273 = vmatprep.subr.bf16.mxu0 %v5706_v45  ;;  %4601 = vmatprep.subr.bf16.mxu1 %v5709_v46 }
  0x68   : > { %4274 = vmatpush1.bf16.msra.mxu0 %v5704_v47  ;;  %4602 = vmatpush1.bf16.msra.mxu1 %v5707_v48 }
  0x69   : > { %4275 = vmatprep.subr.bf16.mxu0 %v5712_v50  ;;  %4603 = vmatprep.subr.bf16.mxu1 %v5715_v52 }
  0x6c   : > { %4276 = vmatpush1.bf16.msra.mxu0 %v5710_v49  ;;  %4604 = vmatpush1.bf16.msra.mxu1 %v5713_v51 }
  0x6d   : > { %4286 = vmatprep.subr.bf16.mxu0 %v5718_v53  ;;  %4614 = vmatprep.subr.bf16.mxu1 %v5721_v54 }
  0xea   : > { %v501_v2 = vpop.f32.mrb[0].mxu0  ;;  %v542_v3 = vpop.f32.mrb[0].mxu1 }
  0xeb   : > { %v502_v8 = vadd.f32 %v501_v2, %v262_v60  ;;  %v543_v9 = vadd.f32 %v542_v3, %v270_v61  ;;  %v503_v10 = vpop.f32.mrb[1].mxu0  ;;  %v544_v11 = vpop.f32.mrb[1].mxu1 }
  0xec   : > { %v504_v14 = vadd.f32 %v503_v10, %v266_v62  ;;  %v545_v15 = vadd.f32 %v544_v11, %v274_v63  ;;  %v505_v16 = vpop.f32.mrb[2].mxu0  ;;  %v546_v17 = vpop.f32.mrb[2].mxu1 }
  0xed   : > { %v795_v18 = vmax.f32 %v502_v8, 0.0  ;;  %v797_v19 = vmax.f32 %v543_v9, 0.0  ;;  %v506_v20 = vpop.f32.mrb[3].mxu0  ;;  %v547_v21 = vpop.f32.mrb[3].mxu1 }
  0xee   : > { %v796_v23 = vmax.f32 %v504_v14, 0.0  ;;  %v798_v25 = vmax.f32 %v545_v15, 0.0 }
  0xef   : > { %v814_v27 = vsel %vm813_vm3, %v795_v18, 0.0  ;;  %v828_v28 = vsel %vm813_vm3, %v797_v19, 0.0 }
  0xf0   : > { %v815_v31 = vrot.slane %v814_v27, 4  ;;  %v829_v32 = vrot.slane %v828_v28, 4  ;;  %v821_v33 = vsel %vm813_vm3, %v796_v23, 0.0  ;;  %v835_v34 = vsel %vm813_vm3, %v798_v25, 0.0 }
  0xf1   : > { %v822_v35 = vrot.slane %v821_v33, 4  ;;  %v836_v36 = vrot.slane %v835_v34, 4 }
  0xf2   : > { %v816_v37 = vadd.f32 %v815_v31, %v814_v27  ;;  %v830_v38 = vadd.f32 %v829_v32, %v828_v28  ;;  %v583_v40 = vpop.f32.mrb[4].mxu0  ;;  %v624_v41 = vpop.f32.mrb[4].mxu1 }
  0xf3   : > { %v823_v42 = vadd.f32 %v822_v35, %v821_v33  ;;  %v837_v43 = vadd.f32 %v836_v36, %v835_v34  ;;  %v584_v44 = vadd.f32 %v583_v40, %v278_v22  ;;  %v625_v45 = vadd.f32 %v624_v41, %v286_v26  ;;  %v585_v46 = vpop.f32.mrb[5].mxu0  ;;  %v626_v47 = vpop.f32.mrb[5].mxu1 }
  0xf4   : > { %v817_v48 = vrot.slane %v816_v37, 2  ;;  %v831_v49 = vrot.slane %v830_v38, 2  ;;  %v586_v50 = vadd.f32 %v585_v46, %v282_v29  ;;  %v627_v51 = vadd.f32 %v626_v47, %v290_v30  ;;  %v587_v52 = vpop.f32.mrb[6].mxu0  ;;  %v628_v53 = vpop.f32.mrb[6].mxu1 }
  0xf5   : > { %v824_v54 = vrot.slane %v823_v42, 2  ;;  %v838_v57 = vrot.slane %v837_v43, 2  ;;  %v799_v60 = vmax.f32 %v584_v44, 0.0  ;;  %v801_v61 = vmax.f32 %v625_v45, 0.0  ;;  %v588_v6 = vpop.f32.mrb[7].mxu0  ;;  %v629_v62 = vpop.f32.mrb[7].mxu1 }
  0xf6   : > { %v818_v63 = vadd.f32 %v817_v48, %v816_v37  ;;  %v832_v2 = vadd.f32 %v831_v49, %v830_v38  ;;  %v800_v3 = vmax.f32 %v586_v50, 0.0  ;;  %v802_v4 = vmax.f32 %v627_v51, 0.0 }
  0xf7   : > { %v825_v5 = vadd.f32 %v824_v54, %v823_v42  ;;  %v839_v8 = vadd.f32 %v838_v57, %v837_v43  ;;  %v842_v9 = vsel %vm813_vm3, %v799_v60, 0.0  ;;  %v856_v10 = vsel %vm813_vm3, %v801_v61, 0.0 }
  0xf8   : > { %v819_v11 = vrot.slane %v818_v63, 1  ;;  %v833_v14 = vrot.slane %v832_v2, 1  ;;  %v843_v15 = vrot.slane %v842_v9, 4  ;;  %v857_v16 = vrot.slane %v856_v10, 4 }
  0xf9   : > { %v826_v17 = vrot.slane %v825_v5, 1  ;;  %v840_v18 = vrot.slane %v839_v8, 1  ;;  %v849_v19 = vsel %vm813_vm3, %v800_v3, 0.0  ;;  %v863_v20 = vsel %vm813_vm3, %v802_v4, 0.0 }
  0xfa   : > { %v820_v21 = vadd.f32 %v819_v11, %v818_v63  ;;  %v834_v22 = vadd.f32 %v833_v14, %v832_v2  ;;  %v844_v23 = vadd.f32 %v843_v15, %v842_v9  ;;  %v858_v24 = vadd.f32 %v857_v16, %v856_v10  ;;  %v5716_v9 = vld [vmem:[%s8206_s3 + $0x200] ss:$16 sps:$4 sm:$0xff]   ;;  %v5719_v10 = vld [vmem:[%s8206_s3 + $0x208] ss:$16 sps:$4 sm:$0xff]   ;;  %v5724_v14 = vld [vmem:[%s8206_s3 + $0x224] ss:$16 sps:$4 sm:$0xff]  }
  0xfb   : > { %v827_v25 = vadd.f32 %v826_v17, %v825_v5  ;;  %v841_v26 = vadd.f32 %v840_v18, %v839_v8  ;;  %v850_v27 = vrot.slane %v849_v19, 4  ;;  %v864_v28 = vrot.slane %v863_v20, 4  ;;  %v5727_v15 = vld [vmem:[%s8206_s3 + $0x22c] ss:$16 sps:$4 sm:$0xff]   ;;  %v5722_v17 = vld [vmem:[%s8206_s3 + $0x220] ss:$16 sps:$4 sm:$0xff]  }
  0xfc   : > { %v845_v29 = vrot.slane %v844_v23, 2  ;;  %v859_v30 = vrot.slane %v858_v24, 2  ;;  %v5725_v18 = vld [vmem:[%s8206_s3 + $0x228] ss:$16 sps:$4 sm:$0xff]  }
  0xfd   : > { %v942_v31 = vcombine.low %v820_v21, %v827_v25  ;;  %v943_v32 = vcombine.low %v834_v22, %v841_v26  ;;  %v851_v33 = vadd.f32 %v850_v27, %v849_v19  ;;  %v865_v34 = vadd.f32 %v864_v28, %v863_v20  ;;  %v5730_v19 = vld [vmem:[%s8206_s3 + $0x244] ss:$16 sps:$4 sm:$0xff]   ;;  %v5733_v20 = vld [vmem:[%s8206_s3 + $0x24c] ss:$16 sps:$4 sm:$0xff]   ;;  %v665_v22 = vpop.f32.mrb[8].mxu0 }
  0xfe   : > { %v846_v35 = vadd.f32 %v845_v29, %v844_v23  ;;  %v860_v36 = vadd.f32 %v859_v30, %v858_v24  ;;  %v256_v21 = vld [vmem:[%s8205_s2 + $0x8] sm:$0xff]  ;;  %v706_v23 = vpop.f32.mrb[8].mxu1  ;;  %v667_v27 = vpop.f32.mrb[9].mxu0  ;;  %v5728_v30 = vld [vmem:[%s8206_s3 + $0x240] ss:$16 sps:$4 sm:$0xff]  }
  0xff   : > { %v952_v37 = vrot.slane %v942_v31, %v6759_v39  ;;  %v959_v38 = vrot.slane %v943_v32, %v6759_v39  ;;  %v852_v40 = vrot.slane %v851_v33, 2  ;;  %v866_v41 = vrot.slane %v865_v34, 2  ;;  %v708_v29 = vpop.f32.mrb[9].mxu1  ;;  %v5731_v31 = vld [vmem:[%s8206_s3 + $0x248] ss:$16 sps:$4 sm:$0xff]   ;;  %v669_v32 = vpop.f32.mrb[10].mxu0 }
 0x100   : > { %v847_v42 = vrot.slane %v846_v35, 1  ;;  %v861_v43 = vrot.slane %v860_v36, 1  ;;  %v294_v24 = vrot.slane %v256_v21, %v6720_v55  ;;  %v302_v25 = vrot.slane %v256_v21, %v6723_v56 }
 0x101   : > { %v974_v44 = vcombine.low %v952_v37, %v959_v38  ;;  %v853_v45 = vadd.f32 %v852_v40, %v851_v33  ;;  %v867_v46 = vadd.f32 %v866_v41, %v865_v34  ;;  %v298_v26 = vrot.slane %v256_v21, %v6729_v58  ;;  %v710_v33 = vpop.f32.mrb[10].mxu1  ;;  %v5736_v34 = vld [vmem:[%s8206_s3 + $0x264] ss:$16 sps:$4 sm:$0xff]   ;;  %v670_v40 = vpop.f32.mrb[11].mxu0 }
 0x102   : > { %v848_v47 = vadd.f32 %v847_v42, %v846_v35  ;;  %v862_v48 = vadd.f32 %v861_v43, %v860_v36  ;;  %v306_v28 = vrot.slane %v256_v21, %v6732_v59  ;;  %v5739_v35 = vld [vmem:[%s8206_s3 + $0x26c] ss:$16 sps:$4 sm:$0xff]   ;;  %v666_v36 = vadd.f32 %v665_v22, %v294_v24  ;;  %v711_v41 = vpop.f32.mrb[11].mxu1  ;;  %v5734_v42 = vld [vmem:[%s8206_s3 + $0x260] ss:$16 sps:$4 sm:$0xff]  }
 0x103   : > { %v854_v49 = vrot.slane %v853_v45, 1  ;;  %v868_v50 = vrot.slane %v867_v46, 1  ;;  %v982_v6 = vrot.slane %v974_v44, %v6759_v39  ;;  %v707_v37 = vadd.f32 %v706_v23, %v302_v25  ;;  %v5737_v43 = vld [vmem:[%s8206_s3 + $0x268] ss:$16 sps:$4 sm:$0xff]   ;;  %v5748_v25 = vld [vmem:[%s8206_s3 + $0x2a4] ss:$16 sps:$4 sm:$0xff]  }
 0x104   : > { %v668_v38 = vadd.f32 %v667_v27, %v298_v26  ;;  %v709_v44 = vadd.f32 %v708_v29, %v306_v28  ;;  %v5743_v24 = vld [vmem:[%s8206_s3 + $0x288] ss:$16 sps:$4 sm:$0xff]  }
 0x105   : > { %v855_v51 = vadd.f32 %v854_v49, %v853_v45  ;;  %v869_v52 = vadd.f32 %v868_v50, %v867_v46  ;;  %v310_v45 = vrot.slane %v256_v21, %v6739_v0  ;;  %v747_v46 = vpop.f32.mrb[12].mxu0  ;;  %v314_v49 = vrot.slane %v256_v21, %v6745_v12 }
 0x106   : > { %v803_v50 = vmax.f32 %v666_v36, 0.0 }
 0x107   : > { %v944_v53 = vcombine.low %v848_v47, %v855_v51  ;;  %v945_v54 = vcombine.low %v862_v48, %v869_v52  ;;  %v318_v47 = vrot.slane %v256_v21, %v6742_v7  ;;  %v788_v48 = vpop.f32.mrb[12].mxu1  ;;  %v805_v51 = vmax.f32 %v707_v37, 0.0 }
 0x108   : > { %v804_v52 = vmax.f32 %v668_v38, 0.0 }
 0x109   : > { %v966_v57 = vrot.slane %v944_v53, %v6759_v39  ;;  %v973_v60 = vrot.slane %v945_v54, %v6759_v39  ;;  %v749_v53 = vpop.f32.mrb[13].mxu0  ;;  %v322_v54 = vrot.slane %v256_v21, %v6748_v13 }
 0x10b   : > { %v975_v61 = vcombine.low %v966_v57, %v973_v60  ;;  %v790_v57 = vpop.f32.mrb[13].mxu1  ;;  %v5742_v60 = vld [vmem:[%s8206_s3 + $0x284] ss:$16 sps:$4 sm:$0xff]  }
 0x10d   : > { %v989_v62 = vrot.slane %v975_v61, %v6759_v39  ;;  %v806_v61 = vmax.f32 %v709_v44, 0.0 }
 0x10f   : > { %v990_v63 = vcombine.low %v982_v6, %v989_v62  ;;  %v748_v6 = vadd.f32 %v747_v46, %v310_v45  ;;  %v789_v62 = vadd.f32 %v788_v48, %v318_v47  ;;  %v5746_v45 = vld [vmem:[%s8206_s3 + $0x2a0] ss:$16 sps:$4 sm:$0xff]   ;;  %v5749_v46 = vld [vmem:[%s8206_s3 + $0x2a8] ss:$16 sps:$4 sm:$0xff]  }
 0x111   : > { %v6771_v2 = vmul.f32 0.25, %v990_v63  ;;  %v750_v63 = vadd.f32 %v749_v53, %v314_v49  ;;  %v807_v21 = vmax.f32 %v748_v6, 0.0  ;;  %v809_v22 = vmax.f32 %v789_v62, 0.0 }
 0x113   : > { %v1062_v3 = vrot.slane %v6771_v2, %v6729_v58  ;;  %v1058_v4 = vrot.slane %v6771_v2, %v6720_v55  ;;  %v1070_v5 = vrot.slane %v6771_v2, %v6732_v59  ;;  %v808_v23 = vmax.f32 %v750_v63, 0.0 }
 0x114   : > { %v898_v33 = vsel %vm813_vm3, %v807_v21, 0.0 }
 0x115   : > { %v1136_v8 = vpack.c.bf16 %v1062_v3, %v1062_v3  ;;  %v1135_v11 = vpack.c.bf16 %v1058_v4, %v1058_v4  ;;  %v1138_v16 = vpack.c.bf16 %v1070_v5, %v1070_v5  ;;  %v751_v3 = vpop.f32.mrb[14].mxu0  ;;  %v792_v4 = vpop.f32.mrb[14].mxu1  ;;  %v5745_v5 = vld [vmem:[%s8206_s3 + $0x28c] ss:$16 sps:$4 sm:$0xff]   ;;  %v899_v40 = vrot.slane %v898_v33, 4 }
 0x117   : > { %4277 = vmatprep.mubr.bf16.mxu0 %v1136_v8  ;;  %4605 = vmatprep.mubr.bf16.mxu1 %v1136_v8  ;;  %v870_v8 = vsel %vm813_vm3, %v803_v50, 0.0 }
 0x118   : > { %4278 = vmatmul.mubr.bf16.vlgmr.msra.gmra.mrb[16].mxu0 %v1135_v11  ;;  %4606 = vmatmul.mubr.bf16.vlgmr.msra.gmra.mrb[16].mxu1 %v1135_v11  ;;  %v791_v11 = vadd.f32 %v790_v57, %v322_v54  ;;  %v900_v54 = vadd.f32 %v899_v40, %v898_v33  ;;  %v5769_v33 = vld [vmem:[%s8206_s3 + $0x30c] ss:$16 sps:$4 sm:$0xff]  }
 0x119   : > { %4287 = vmatpush1.bf16.msra.mxu0 %v5716_v9  ;;  %4615 = vmatpush1.bf16.msra.mxu1 %v5719_v10  ;;  %v884_v9 = vsel %vm813_vm3, %v805_v51, 0.0  ;;  %v877_v10 = vsel %vm813_vm3, %v804_v52, 0.0  ;;  %v5754_v51 = vld [vmem:[%s8206_s3 + $0x2c4] ss:$16 sps:$4 sm:$0xff]   ;;  %v5757_v52 = vld [vmem:[%s8206_s3 + $0x2cc] ss:$16 sps:$4 sm:$0xff]  }
 0x11a   : > { %4318 = vmatprep.mubr.bf16.mxu0 %v1138_v16  ;;  %4646 = vmatprep.mubr.bf16.mxu1 %v1138_v16  ;;  %v885_v16 = vrot.slane %v884_v9, 4  ;;  %v810_v29 = vmax.f32 %v791_v11, 0.0  ;;  %v901_v3 = vrot.slane %v900_v54, 2 }
 0x11b   : > { %4288 = vmatprep.subr.bf16.mxu0 %v5724_v14  ;;  %4616 = vmatprep.subr.bf16.mxu1 %v5727_v15  ;;  %v752_v14 = vpop.f32.mrb[15].mxu0  ;;  %v871_v15 = vrot.slane %v870_v8, 4 }
 0x11c   : > { %v886_v27 = vadd.f32 %v885_v16, %v884_v9  ;;  %v919_v44 = vsel %vm813_vm3, %v810_v29, 0.0  ;;  %v5755_v9 = vld [vmem:[%s8206_s3 + $0x2c8] ss:$16 sps:$4 sm:$0xff]   ;;  %v5760_v16 = vld [vmem:[%s8206_s3 + $0x2e4] ss:$16 sps:$4 sm:$0xff]  }
 0x11d   : > { %4289 = vmatpush1.bf16.msra.mxu0 %v5722_v17  ;;  %4617 = vmatpush1.bf16.msra.mxu1 %v5725_v18  ;;  %v878_v17 = vrot.slane %v877_v10, 4  ;;  %v891_v18 = vsel %vm813_vm3, %v806_v61, 0.0  ;;  %v872_v26 = vadd.f32 %v871_v15, %v870_v8  ;;  %v920_v50 = vrot.slane %v919_v44, 4  ;;  %v5752_v8 = vld [vmem:[%s8206_s3 + $0x2c0] ss:$16 sps:$4 sm:$0xff]  }
 0x11e   : > { %4290 = vmatprep.subr.bf16.mxu0 %v5730_v19  ;;  %4618 = vmatprep.subr.bf16.mxu1 %v5733_v20  ;;  %v5740_v19 = vld [vmem:[%s8206_s3 + $0x280] ss:$16 sps:$4 sm:$0xff]   ;;  %v892_v20 = vrot.slane %v891_v18, 4  ;;  %v887_v37 = vrot.slane %v886_v27, 2  ;;  %v5761_v29 = vld [vmem:[%s8206_s3 + $0x2e8] ss:$16 sps:$4 sm:$0xff]  }
 0x11f   : > { %v879_v28 = vadd.f32 %v878_v17, %v877_v10  ;;  %v873_v36 = vrot.slane %v872_v26, 2  ;;  %v5763_v17 = vld [vmem:[%s8206_s3 + $0x2ec] ss:$16 sps:$4 sm:$0xff]  }
 0x120   : > { %v893_v32 = vadd.f32 %v892_v20, %v891_v18  ;;  %v888_v48 = vadd.f32 %v887_v37, %v886_v27 }
 0x121   : > { %4291 = vmatpush1.bf16.msra.mxu0 %v5728_v30  ;;  %4619 = vmatpush1.bf16.msra.mxu1 %v5731_v31  ;;  %v793_v30 = vpop.f32.mrb[15].mxu1  ;;  %v5751_v31 = vld [vmem:[%s8206_s3 + $0x2ac] ss:$16 sps:$4 sm:$0xff]   ;;  %v880_v38 = vrot.slane %v879_v28, 2  ;;  %v874_v47 = vadd.f32 %v873_v36, %v872_v26 }
 0x122   : > { %4292 = vmatprep.subr.bf16.mxu0 %v5736_v34  ;;  %4620 = vmatprep.subr.bf16.mxu1 %v5739_v35  ;;  %v912_v34 = vsel %vm813_vm3, %v809_v22, 0.0  ;;  %v905_v35 = vsel %vm813_vm3, %v808_v23, 0.0  ;;  %v894_v41 = vrot.slane %v893_v32, 2  ;;  %v889_v61 = vrot.slane %v888_v48, 1 }
 0x123   : > { %v881_v49 = vadd.f32 %v880_v38, %v879_v28  ;;  %v5758_v28 = vld [vmem:[%s8206_s3 + $0x2e0] ss:$16 sps:$4 sm:$0xff]  }
 0x124   : > { %v895_v53 = vadd.f32 %v894_v41, %v893_v32  ;;  %v890_v11 = vadd.f32 %v889_v61, %v888_v48  ;;  %v5766_v32 = vld [vmem:[%s8206_s3 + $0x304] ss:$16 sps:$4 sm:$0xff]   ;;  %v5776_v61 = vld [vmem:[%s8206_s3 + $0x340] ss:$16 sps:$4 sm:$0xff]  }
 0x125   : > { %4293 = vmatpush1.bf16.msra.mxu0 %v5734_v42  ;;  %4621 = vmatpush1.bf16.msra.mxu1 %v5737_v43  ;;  %v913_v42 = vrot.slane %v912_v34, 4  ;;  %v906_v43 = vrot.slane %v905_v35, 4  ;;  %v882_v6 = vrot.slane %v881_v49, 1 }
 0x126   : > { %4294 = vmatprep.subr.bf16.mxu0 %v5742_v60  ;;  %4622 = vmatprep.subr.bf16.mxu1 %v5745_v5  ;;  %v875_v60 = vrot.slane %v874_v47, 1  ;;  %v896_v63 = vrot.slane %v895_v53, 1  ;;  %v921_v5 = vadd.f32 %v920_v50, %v919_v44  ;;  %v5770_v50 = vld [vmem:[%s8206_s3 + $0x320] ss:$16 sps:$4 sm:$0xff]  }
 0x127   : > { %v914_v57 = vadd.f32 %v913_v42, %v912_v34  ;;  %v907_v62 = vadd.f32 %v906_v43, %v905_v35  ;;  %v883_v14 = vadd.f32 %v882_v6, %v881_v49  ;;  %v5764_v42 = vld [vmem:[%s8206_s3 + $0x300] ss:$16 sps:$4 sm:$0xff]   ;;  %v5767_v43 = vld [vmem:[%s8206_s3 + $0x308] ss:$16 sps:$4 sm:$0xff]  }
 0x128   : > { %v876_v10 = vadd.f32 %v875_v60, %v874_v47  ;;  %v897_v18 = vadd.f32 %v896_v63, %v895_v53  ;;  %v922_v21 = vrot.slane %v921_v5, 2  ;;  %v5781_v53 = vld [vmem:[%s8206_s3 + $0x34c] ss:$16 sps:$4 sm:$0xff]   ;;  %v5779_v6 = vld [vmem:[%s8206_s3 + $0x348] ss:$16 sps:$4 sm:$0xff]  }
 0x129   : > { %4295 = vmatpush1.bf16.msra.mxu0 %v5740_v19  ;;  %4623 = vmatpush1.bf16.msra.mxu1 %v5743_v24  ;;  %v915_v4 = vrot.slane %v914_v57, 2  ;;  %v908_v15 = vrot.slane %v907_v62, 2  ;;  %v902_v19 = vadd.f32 %v901_v3, %v900_v54  ;;  %v5787_v63 = vld [vmem:[%s8206_s3 + $0x36c] ss:$16 sps:$4 sm:$0xff]  }
 0x12a   : > { %4296 = vmatprep.subr.bf16.mxu0 %v5748_v25  ;;  %4624 = vmatprep.subr.bf16.mxu1 %v5751_v31  ;;  %v991_v22 = vcombine.low %v876_v10, %v883_v14  ;;  %v992_v24 = vcombine.low %v890_v11, %v897_v18  ;;  %v923_v27 = vadd.f32 %v922_v21, %v921_v5  ;;  %v5785_v5 = vld [vmem:[%s8206_s3 + $0x368] ss:$16 sps:$4 sm:$0xff]   ;;  %v5788_v10 = vld [vmem:[%s8206_s3 + $0x380] ss:$16 sps:$4 sm:$0xff]   ;;  %v5796_v14 = vld [vmem:[%s8206_s3 + $0x3a4] ss:$16 sps:$4 sm:$0xff]  }
 0x12b   : > { %v916_v20 = vadd.f32 %v915_v4, %v914_v57  ;;  %v909_v23 = vadd.f32 %v908_v15, %v907_v62  ;;  %v903_v25 = vrot.slane %v902_v19, 1  ;;  %v5784_v62 = vld [vmem:[%s8206_s3 + $0x364] ss:$16 sps:$4 sm:$0xff]   ;;  %v5782_v4 = vld [vmem:[%s8206_s3 + $0x360] ss:$16 sps:$4 sm:$0xff]  }
 0x12c   : > { %v1001_v30 = vrot.slane %v991_v22, %v6759_v39  ;;  %v1008_v34 = vrot.slane %v992_v24, %v6759_v39  ;;  %v924_v37 = vrot.slane %v923_v27, 1  ;;  %v5791_v11 = vld [vmem:[%s8206_s3 + $0x388] ss:$16 sps:$4 sm:$0xff]   ;;  %v5799_v15 = vld [vmem:[%s8206_s3 + $0x3ac] ss:$16 sps:$4 sm:$0xff]  }
 0x12d   : > { %4297 = vmatpush1.bf16.msra.mxu0 %v5746_v45  ;;  %4625 = vmatpush1.bf16.msra.mxu1 %v5749_v46  ;;  %v917_v26 = vrot.slane %v916_v20, 1  ;;  %v910_v31 = vrot.slane %v909_v23, 1  ;;  %v904_v35 = vadd.f32 %v903_v25, %v902_v19  ;;  %v5772_v45 = vld [vmem:[%s8206_s3 + $0x324] ss:$16 sps:$4 sm:$0xff]   ;;  %v5775_v46 = vld [vmem:[%s8206_s3 + $0x32c] ss:$16 sps:$4 sm:$0xff]  }
 0x12e   : > { %4298 = vmatprep.subr.bf16.mxu0 %v5754_v51  ;;  %4626 = vmatprep.subr.bf16.mxu1 %v5757_v52  ;;  %v1023_v40 = vcombine.low %v1001_v30, %v1008_v34  ;;  %v925_v41 = vadd.f32 %v924_v37, %v923_v27  ;;  %v5773_v51 = vld [vmem:[%s8206_s3 + $0x328] ss:$16 sps:$4 sm:$0xff]   ;;  %v5778_v52 = vld [vmem:[%s8206_s3 + $0x344] ss:$16 sps:$4 sm:$0xff]   ;;  %v5805_v19 = vld [vmem:[%s8206_s3 + $0x3cc] ss:$16 sps:$4 sm:$0xff]  }
 0x12f   : > { %v918_v36 = vadd.f32 %v917_v26, %v916_v20  ;;  %v911_v38 = vadd.f32 %v910_v31, %v909_v23  ;;  %v5802_v18 = vld [vmem:[%s8206_s3 + $0x3c4] ss:$16 sps:$4 sm:$0xff]   ;;  %v5800_v20 = vld [vmem:[%s8206_s3 + $0x3c0] ss:$16 sps:$4 sm:$0xff]   ;;  %v5803_v21 = vld [vmem:[%s8206_s3 + $0x3c8] ss:$16 sps:$4 sm:$0xff]   ;;  %v1066_v26 = vrot.slane %v6771_v2, %v6723_v56 }
 0x130   : > { %v6923_v54 = vrot.slane %v1023_v40, %v6759_v39  ;;  %v5808_v22 = vld [vmem:[%s8206_s3 + $0x3e4] ss:$16 sps:$4 sm:$0xff]   ;;  %v5811_v23 = vld [vmem:[%s8206_s3 + $0x3ec] ss:$16 sps:$4 sm:$0xff]   ;;  %v5806_v24 = vld [vmem:[%s8206_s3 + $0x3e0] ss:$16 sps:$4 sm:$0xff]  }
 0x131   : > { %4299 = vmatpush1.bf16.msra.mxu0 %v5752_v8  ;;  %4627 = vmatpush1.bf16.msra.mxu1 %v5755_v9  ;;  %v993_v44 = vcombine.low %v904_v35, %v911_v38  ;;  %v994_v47 = vcombine.low %v918_v36, %v925_v41  ;;  %v5790_v8 = vld [vmem:[%s8206_s3 + $0x384] ss:$16 sps:$4 sm:$0xff]   ;;  %v5793_v9 = vld [vmem:[%s8206_s3 + $0x38c] ss:$16 sps:$4 sm:$0xff]   ;;  %v5809_v25 = vld [vmem:[%s8206_s3 + $0x3e8] ss:$16 sps:$4 sm:$0xff]   ;;  %v1137_v31 = vpack.c.bf16 %v1066_v26, %v1066_v26 }
 0x132   : > { %4300 = vmatprep.subr.bf16.mxu0 %v5760_v16  ;;  %4628 = vmatprep.subr.bf16.mxu1 %v5763_v17  ;;  %v5794_v16 = vld [vmem:[%s8206_s3 + $0x3a0] ss:$16 sps:$4 sm:$0xff]   ;;  %v5797_v17 = vld [vmem:[%s8206_s3 + $0x3a8] ss:$16 sps:$4 sm:$0xff]   ;;  %v5814_v27 = vld [vmem:[%s8206_s3 + $0x404] ss:$16 sps:$4 sm:$0xff]  }
 0x133   : > { %v1015_v48 = vrot.slane %v993_v44, %v6759_v39  ;;  %v1022_v49 = vrot.slane %v994_v47, %v6759_v39  ;;  %v5812_v30 = vld [vmem:[%s8206_s3 + $0x400] ss:$16 sps:$4 sm:$0xff]   ;;  %v5820_v34 = vld [vmem:[%s8206_s3 + $0x424] ss:$16 sps:$4 sm:$0xff]   ;;  %v5823_v35 = vld [vmem:[%s8206_s3 + $0x42c] ss:$16 sps:$4 sm:$0xff]  }
 0x134   : > { %v5818_v36 = vld [vmem:[%s8206_s3 + $0x420] ss:$16 sps:$4 sm:$0xff]   ;;  %v5821_v37 = vld [vmem:[%s8206_s3 + $0x428] ss:$16 sps:$4 sm:$0xff]   ;;  %v5826_v38 = vld [vmem:[%s8206_s3 + $0x444] ss:$16 sps:$4 sm:$0xff]  }
 0x135   : > { %4301 = vmatpush1.bf16.msra.mxu0 %v5758_v28  ;;  %4629 = vmatpush1.bf16.msra.mxu1 %v5761_v29  ;;  %v1024_v57 = vcombine.low %v1015_v48, %v1022_v49  ;;  %v5817_v28 = vld [vmem:[%s8206_s3 + $0x40c] ss:$16 sps:$4 sm:$0xff]   ;;  %v1078_v29 = vrot.slane %v6771_v2, %v6745_v12  ;;  %v5824_v41 = vld [vmem:[%s8206_s3 + $0x440] ss:$16 sps:$4 sm:$0xff]   ;;  %v5838_v47 = vld [vmem:[%s8206_s3 + $0x484] ss:$16 sps:$4 sm:$0xff]  }
 0x136   : > { %4302 = vmatprep.subr.bf16.mxu0 %v5766_v32  ;;  %4630 = vmatprep.subr.bf16.mxu1 %v5769_v33  ;;  %v5815_v32 = vld [vmem:[%s8206_s3 + $0x408] ss:$16 sps:$4 sm:$0xff]   ;;  %v5829_v40 = vld [vmem:[%s8206_s3 + $0x44c] ss:$16 sps:$4 sm:$0xff]   ;;  %v5836_v49 = vld [vmem:[%s8206_s3 + $0x480] ss:$16 sps:$4 sm:$0xff]  }
 0x137   : > { %v6926_v60 = vrot.slane %v1024_v57, %v6759_v39  ;;  %v1140_v33 = vpack.c.bf16 %v1078_v29, %v1078_v29  ;;  %v5835_v44 = vld [vmem:[%s8206_s3 + $0x46c] ss:$16 sps:$4 sm:$0xff]   ;;  %v5845_v57 = vld [vmem:[%s8206_s3 + $0x4a8] ss:$16 sps:$4 sm:$0xff]   ;;  %v5878_v26 = vld [vmem:[%s8206_s3 + $0x560] ss:$16 sps:$4 sm:$0xff]  }
 0x138   : > { %v5841_v48 = vld [vmem:[%s8206_s3 + $0x48c] ss:$16 sps:$4 sm:$0xff]  }
 0x139   : > { %4303 = vmatpush1.bf16.msra.mxu0 %v5764_v42  ;;  %4631 = vmatpush1.bf16.msra.mxu1 %v5767_v43  ;;  %v1039_v3 = vcombine.low %v6923_v54, %v6926_v60  ;;  %v5827_v42 = vld [vmem:[%s8206_s3 + $0x448] ss:$16 sps:$4 sm:$0xff]   ;;  %v5832_v43 = vld [vmem:[%s8206_s3 + $0x464] ss:$16 sps:$4 sm:$0xff]   ;;  %v5889_v29 = vld [vmem:[%s8206_s3 + $0x58c] ss:$16 sps:$4 sm:$0xff]  }
 0x13a   : > { %4304 = vmatprep.subr.bf16.mxu0 %v5772_v45  ;;  %4632 = vmatprep.subr.bf16.mxu1 %v5775_v46  ;;  %v5830_v45 = vld [vmem:[%s8206_s3 + $0x460] ss:$16 sps:$4 sm:$0xff]   ;;  %v5833_v46 = vld [vmem:[%s8206_s3 + $0x468] ss:$16 sps:$4 sm:$0xff]   ;;  %v6006_v54 = vld [vmem:[%s8206_s3 + $0x804] ss:$16 sps:$4 sm:$0xff]  }
 0x13b   : > { %v6009_v60 = vld [vmem:[%s8206_s3 + $0x80c] ss:$16 sps:$4 sm:$0xff]  }
 0x13d   : > { %4305 = vmatpush1.bf16.msra.mxu0 %v5770_v50  ;;  %4633 = vmatpush1.bf16.msra.mxu1 %v5773_v51  ;;  %v5839_v50 = vld [vmem:[%s8206_s3 + $0x488] ss:$16 sps:$4 sm:$0xff]   ;;  %v5844_v51 = vld [vmem:[%s8206_s3 + $0x4a4] ss:$16 sps:$4 sm:$0xff]  }
 0x13e   : > { %4306 = vmatprep.subr.bf16.mxu0 %v5778_v52  ;;  %4634 = vmatprep.subr.bf16.mxu1 %v5781_v53  ;;  %v5847_v52 = vld [vmem:[%s8206_s3 + $0x4ac] ss:$16 sps:$4 sm:$0xff]   ;;  %v5842_v53 = vld [vmem:[%s8206_s3 + $0x4a0] ss:$16 sps:$4 sm:$0xff]  }
 0x141   : > { %4307 = vmatpush1.bf16.msra.mxu0 %v5776_v61  ;;  %4635 = vmatpush1.bf16.msra.mxu1 %v5779_v6  ;;  %v5850_v61 = vld [vmem:[%s8206_s3 + $0x4c4] ss:$16 sps:$4 sm:$0xff]   ;;  %v5853_v6 = vld [vmem:[%s8206_s3 + $0x4cc] ss:$16 sps:$4 sm:$0xff]  }
 0x142   : > { %4308 = vmatprep.subr.bf16.mxu0 %v5784_v62  ;;  %4636 = vmatprep.subr.bf16.mxu1 %v5787_v63  ;;  %v5848_v62 = vld [vmem:[%s8206_s3 + $0x4c0] ss:$16 sps:$4 sm:$0xff]   ;;  %v5851_v63 = vld [vmem:[%s8206_s3 + $0x4c8] ss:$16 sps:$4 sm:$0xff]  }
 0x145   : > { %4309 = vmatpush1.bf16.msra.mxu0 %v5782_v4  ;;  %4637 = vmatpush1.bf16.msra.mxu1 %v5785_v5  ;;  %v5856_v4 = vld [vmem:[%s8206_s3 + $0x4e4] ss:$16 sps:$4 sm:$0xff]   ;;  %v5859_v5 = vld [vmem:[%s8206_s3 + $0x4ec] ss:$16 sps:$4 sm:$0xff]  }
 0x146   : > { %4310 = vmatprep.subr.bf16.mxu0 %v5790_v8  ;;  %4638 = vmatprep.subr.bf16.mxu1 %v5793_v9  ;;  %v5854_v8 = vld [vmem:[%s8206_s3 + $0x4e0] ss:$16 sps:$4 sm:$0xff]   ;;  %v5857_v9 = vld [vmem:[%s8206_s3 + $0x4e8] ss:$16 sps:$4 sm:$0xff]  }
 0x149   : > { %4311 = vmatpush1.bf16.msra.mxu0 %v5788_v10  ;;  %4639 = vmatpush1.bf16.msra.mxu1 %v5791_v11  ;;  %v5862_v10 = vld [vmem:[%s8206_s3 + $0x504] ss:$16 sps:$4 sm:$0xff]   ;;  %v5865_v11 = vld [vmem:[%s8206_s3 + $0x50c] ss:$16 sps:$4 sm:$0xff]  }
 0x14a   : > { %4312 = vmatprep.subr.bf16.mxu0 %v5796_v14  ;;  %4640 = vmatprep.subr.bf16.mxu1 %v5799_v15  ;;  %v5860_v14 = vld [vmem:[%s8206_s3 + $0x500] ss:$16 sps:$4 sm:$0xff]   ;;  %v5863_v15 = vld [vmem:[%s8206_s3 + $0x508] ss:$16 sps:$4 sm:$0xff]  }
 0x14d   : > { %4313 = vmatpush1.bf16.msra.mxu0 %v5794_v16  ;;  %4641 = vmatpush1.bf16.msra.mxu1 %v5797_v17  ;;  %v5868_v16 = vld [vmem:[%s8206_s3 + $0x524] ss:$16 sps:$4 sm:$0xff]   ;;  %v5871_v17 = vld [vmem:[%s8206_s3 + $0x52c] ss:$16 sps:$4 sm:$0xff]  }
 0x14e   : > { %4314 = vmatprep.subr.bf16.mxu0 %v5802_v18  ;;  %4642 = vmatprep.subr.bf16.mxu1 %v5805_v19  ;;  %v5866_v18 = vld [vmem:[%s8206_s3 + $0x520] ss:$16 sps:$4 sm:$0xff]   ;;  %v5869_v19 = vld [vmem:[%s8206_s3 + $0x528] ss:$16 sps:$4 sm:$0xff]  }
 0x151   : > { %4315 = vmatpush1.bf16.msra.mxu0 %v5800_v20  ;;  %4643 = vmatpush1.bf16.msra.mxu1 %v5803_v21  ;;  %v5874_v20 = vld [vmem:[%s8206_s3 + $0x544] ss:$16 sps:$4 sm:$0xff]   ;;  %v5877_v21 = vld [vmem:[%s8206_s3 + $0x54c] ss:$16 sps:$4 sm:$0xff]  }
 0x152   : > { %4316 = vmatprep.subr.bf16.mxu0 %v5808_v22  ;;  %4644 = vmatprep.subr.bf16.mxu1 %v5811_v23  ;;  %v5872_v22 = vld [vmem:[%s8206_s3 + $0x540] ss:$16 sps:$4 sm:$0xff]   ;;  %v5875_v23 = vld [vmem:[%s8206_s3 + $0x548] ss:$16 sps:$4 sm:$0xff]  }
 0x155   : > { %4317 = vmatpush1.bf16.msra.mxu0 %v5806_v24  ;;  %4645 = vmatpush1.bf16.msra.mxu1 %v5809_v25  ;;  %v5880_v24 = vld [vmem:[%s8206_s3 + $0x564] ss:$16 sps:$4 sm:$0xff]   ;;  %v5883_v25 = vld [vmem:[%s8206_s3 + $0x56c] ss:$16 sps:$4 sm:$0xff]  }
 0x156   : > { %4327 = vmatprep.subr.bf16.mxu0 %v5814_v27  ;;  %4655 = vmatprep.subr.bf16.mxu1 %v5817_v28  ;;  %v5881_v27 = vld [vmem:[%s8206_s3 + $0x568] ss:$16 sps:$4 sm:$0xff]   ;;  %v5886_v28 = vld [vmem:[%s8206_s3 + $0x584] ss:$16 sps:$4 sm:$0xff]  }
 0x158   : > { %4319 = vmatmul.mubr.bf16.vlgmr.msra.gmra.mrb[16].mxu0 %v1137_v31  ;;  %4647 = vmatmul.mubr.bf16.vlgmr.msra.gmra.mrb[16].mxu1 %v1137_v31  ;;  %v5887_v31 = vld [vmem:[%s8206_s3 + $0x588] ss:$16 sps:$4 sm:$0xff]  }
 0x159   : > { %4328 = vmatpush1.bf16.msra.mxu0 %v5812_v30  ;;  %4359 = vmatprep.mubr.bf16.mxu0 %v1140_v33  ;;  %v5884_v30 = vld [vmem:[%s8206_s3 + $0x580] ss:$16 sps:$4 sm:$0xff]  }
 0x15a   : > { %4656 = vmatpush1.bf16.msra.mxu1 %v5815_v32  ;;  %4687 = vmatprep.mubr.bf16.mxu1 %v1140_v33  ;;  %v5892_v32 = vld [vmem:[%s8206_s3 + $0x5a4] ss:$16 sps:$4 sm:$0xff]   ;;  %v5895_v33 = vld [vmem:[%s8206_s3 + $0x5ac] ss:$16 sps:$4 sm:$0xff]  }
 0x15b   : > { %4329 = vmatprep.subr.bf16.mxu0 %v5820_v34  ;;  %4657 = vmatprep.subr.bf16.mxu1 %v5823_v35  ;;  %v5890_v34 = vld [vmem:[%s8206_s3 + $0x5a0] ss:$16 sps:$4 sm:$0xff]   ;;  %v5893_v35 = vld [vmem:[%s8206_s3 + $0x5a8] ss:$16 sps:$4 sm:$0xff]  }
 0x15d   : > { %4330 = vmatpush1.bf16.msra.mxu0 %v5818_v36  ;;  %v5898_v36 = vld [vmem:[%s8206_s3 + $0x5c4] ss:$16 sps:$4 sm:$0xff]  }
 0x15e   : > { %4658 = vmatpush1.bf16.msra.mxu1 %v5821_v37  ;;  %4331 = vmatprep.subr.bf16.mxu0 %v5826_v38  ;;  %v5901_v37 = vld [vmem:[%s8206_s3 + $0x5cc] ss:$16 sps:$4 sm:$0xff]   ;;  %v5896_v38 = vld [vmem:[%s8206_s3 + $0x5c0] ss:$16 sps:$4 sm:$0xff]  }
 0x15f   : > { %4659 = vmatprep.subr.bf16.mxu1 %v5829_v40  ;;  %v5899_v40 = vld [vmem:[%s8206_s3 + $0x5c8] ss:$16 sps:$4 sm:$0xff]  }
 0x161   : > { %4332 = vmatpush1.bf16.msra.mxu0 %v5824_v41  ;;  %v5904_v41 = vld [vmem:[%s8206_s3 + $0x5e4] ss:$16 sps:$4 sm:$0xff]  }
 0x162   : > { %4660 = vmatpush1.bf16.msra.mxu1 %v5827_v42  ;;  %4333 = vmatprep.subr.bf16.mxu0 %v5832_v43  ;;  %v5907_v42 = vld [vmem:[%s8206_s3 + $0x5ec] ss:$16 sps:$4 sm:$0xff]   ;;  %v5902_v43 = vld [vmem:[%s8206_s3 + $0x5e0] ss:$16 sps:$4 sm:$0xff]  }
 0x163   : > { %4661 = vmatprep.subr.bf16.mxu1 %v5835_v44  ;;  %v5905_v44 = vld [vmem:[%s8206_s3 + $0x5e8] ss:$16 sps:$4 sm:$0xff]  }
 0x165   : > { %4334 = vmatpush1.bf16.msra.mxu0 %v5830_v45  ;;  %v1074_v45 = vrot.slane %v6771_v2, %v6739_v0 }
 0x166   : > { %4662 = vmatpush1.bf16.msra.mxu1 %v5833_v46  ;;  %4335 = vmatprep.subr.bf16.mxu0 %v5838_v47  ;;  %v5910_v46 = vld [vmem:[%s8206_s3 + $0x604] ss:$16 sps:$4 sm:$0xff]   ;;  %v5913_v47 = vld [vmem:[%s8206_s3 + $0x60c] ss:$16 sps:$4 sm:$0xff]  }
 0x167   : > { %4663 = vmatprep.subr.bf16.mxu1 %v5841_v48  ;;  %v1086_v48 = vrot.slane %v6771_v2, %v6748_v13 }
 0x169   : > { %4336 = vmatpush1.bf16.msra.mxu0 %v5836_v49  ;;  %v5908_v49 = vld [vmem:[%s8206_s3 + $0x600] ss:$16 sps:$4 sm:$0xff]  }
 0x16a   : > { %4664 = vmatpush1.bf16.msra.mxu1 %v5839_v50  ;;  %4337 = vmatprep.subr.bf16.mxu0 %v5844_v51  ;;  %v1139_v50 = vpack.c.bf16 %v1074_v45, %v1074_v45  ;;  %v5911_v51 = vld [vmem:[%s8206_s3 + $0x608] ss:$16 sps:$4 sm:$0xff]   ;;  %v5974_v45 = vld [vmem:[%s8206_s3 + $0x760] ss:$16 sps:$4 sm:$0xff]  }
 0x16b   : > { %4665 = vmatprep.subr.bf16.mxu1 %v5847_v52  ;;  %v5916_v52 = vld [vmem:[%s8206_s3 + $0x624] ss:$16 sps:$4 sm:$0xff]  }
 0x16d   : > { %4338 = vmatpush1.bf16.msra.mxu0 %v5842_v53  ;;  %v1142_v53 = vpack.c.bf16 %v1086_v48, %v1086_v48  ;;  %v5985_v48 = vld [vmem:[%s8206_s3 + $0x78c] ss:$16 sps:$4 sm:$0xff]  }
 0x16e   : > { %4666 = vmatpush1.bf16.msra.mxu1 %v5845_v57  ;;  %4339 = vmatprep.subr.bf16.mxu0 %v5850_v61  ;;  %v5919_v57 = vld [vmem:[%s8206_s3 + $0x62c] ss:$16 sps:$4 sm:$0xff]   ;;  %v5914_v61 = vld [vmem:[%s8206_s3 + $0x620] ss:$16 sps:$4 sm:$0xff]  }
 0x16f   : > { %4667 = vmatprep.subr.bf16.mxu1 %v5853_v6  ;;  %v5917_v6 = vld [vmem:[%s8206_s3 + $0x628] ss:$16 sps:$4 sm:$0xff]  }
 0x171   : > { %4340 = vmatpush1.bf16.msra.mxu0 %v5848_v62  ;;  %v5922_v62 = vld [vmem:[%s8206_s3 + $0x644] ss:$16 sps:$4 sm:$0xff]  }
 0x172   : > { %4668 = vmatpush1.bf16.msra.mxu1 %v5851_v63  ;;  %4341 = vmatprep.subr.bf16.mxu0 %v5856_v4  ;;  %v5925_v63 = vld [vmem:[%s8206_s3 + $0x64c] ss:$16 sps:$4 sm:$0xff]   ;;  %v5920_v4 = vld [vmem:[%s8206_s3 + $0x640] ss:$16 sps:$4 sm:$0xff]  }
 0x173   : > { %4669 = vmatprep.subr.bf16.mxu1 %v5859_v5  ;;  %v5923_v5 = vld [vmem:[%s8206_s3 + $0x648] ss:$16 sps:$4 sm:$0xff]  }
 0x175   : > { %4342 = vmatpush1.bf16.msra.mxu0 %v5854_v8  ;;  %v5928_v8 = vld [vmem:[%s8206_s3 + $0x664] ss:$16 sps:$4 sm:$0xff]  }
 0x176   : > { %4670 = vmatpush1.bf16.msra.mxu1 %v5857_v9  ;;  %4343 = vmatprep.subr.bf16.mxu0 %v5862_v10  ;;  %v5931_v9 = vld [vmem:[%s8206_s3 + $0x66c] ss:$16 sps:$4 sm:$0xff]   ;;  %v5926_v10 = vld [vmem:[%s8206_s3 + $0x660] ss:$16 sps:$4 sm:$0xff]  }
 0x177   : > { %4671 = vmatprep.subr.bf16.mxu1 %v5865_v11  ;;  %v5929_v11 = vld [vmem:[%s8206_s3 + $0x668] ss:$16 sps:$4 sm:$0xff]  }
 0x179   : > { %4344 = vmatpush1.bf16.msra.mxu0 %v5860_v14  ;;  %v5934_v14 = vld [vmem:[%s8206_s3 + $0x684] ss:$16 sps:$4 sm:$0xff]  }
 0x17a   : > { %4672 = vmatpush1.bf16.msra.mxu1 %v5863_v15  ;;  %4345 = vmatprep.subr.bf16.mxu0 %v5868_v16  ;;  %v5937_v15 = vld [vmem:[%s8206_s3 + $0x68c] ss:$16 sps:$4 sm:$0xff]   ;;  %v5932_v16 = vld [vmem:[%s8206_s3 + $0x680] ss:$16 sps:$4 sm:$0xff]  }
 0x17b   : > { %4673 = vmatprep.subr.bf16.mxu1 %v5871_v17  ;;  %v5935_v17 = vld [vmem:[%s8206_s3 + $0x688] ss:$16 sps:$4 sm:$0xff]  }
 0x17d   : > { %4346 = vmatpush1.bf16.msra.mxu0 %v5866_v18  ;;  %v5940_v18 = vld [vmem:[%s8206_s3 + $0x6a4] ss:$16 sps:$4 sm:$0xff]  }
 0x17e   : > { %4674 = vmatpush1.bf16.msra.mxu1 %v5869_v19  ;;  %4347 = vmatprep.subr.bf16.mxu0 %v5874_v20  ;;  %v5943_v19 = vld [vmem:[%s8206_s3 + $0x6ac] ss:$16 sps:$4 sm:$0xff]   ;;  %v5938_v20 = vld [vmem:[%s8206_s3 + $0x6a0] ss:$16 sps:$4 sm:$0xff]  }
 0x17f   : > { %4675 = vmatprep.subr.bf16.mxu1 %v5877_v21  ;;  %v5941_v21 = vld [vmem:[%s8206_s3 + $0x6a8] ss:$16 sps:$4 sm:$0xff]  }
 0x181   : > { %4348 = vmatpush1.bf16.msra.mxu0 %v5872_v22  ;;  %v5946_v22 = vld [vmem:[%s8206_s3 + $0x6c4] ss:$16 sps:$4 sm:$0xff]  }
 0x182   : > { %4676 = vmatpush1.bf16.msra.mxu1 %v5875_v23  ;;  %4349 = vmatprep.subr.bf16.mxu0 %v5880_v24  ;;  %v5949_v23 = vld [vmem:[%s8206_s3 + $0x6cc] ss:$16 sps:$4 sm:$0xff]   ;;  %v5944_v24 = vld [vmem:[%s8206_s3 + $0x6c0] ss:$16 sps:$4 sm:$0xff]  }
 0x183   : > { %4677 = vmatprep.subr.bf16.mxu1 %v5883_v25  ;;  %v5947_v25 = vld [vmem:[%s8206_s3 + $0x6c8] ss:$16 sps:$4 sm:$0xff]  }
 0x185   : > { %4350 = vmatpush1.bf16.msra.mxu0 %v5878_v26  ;;  %v5952_v26 = vld [vmem:[%s8206_s3 + $0x6e4] ss:$16 sps:$4 sm:$0xff]  }
 0x186   : > { %4678 = vmatpush1.bf16.msra.mxu1 %v5881_v27  ;;  %4351 = vmatprep.subr.bf16.mxu0 %v5886_v28  ;;  %v5955_v27 = vld [vmem:[%s8206_s3 + $0x6ec] ss:$16 sps:$4 sm:$0xff]   ;;  %v5950_v28 = vld [vmem:[%s8206_s3 + $0x6e0] ss:$16 sps:$4 sm:$0xff]  }
 0x187   : > { %4679 = vmatprep.subr.bf16.mxu1 %v5889_v29  ;;  %v5953_v29 = vld [vmem:[%s8206_s3 + $0x6e8] ss:$16 sps:$4 sm:$0xff]  }
 0x189   : > { %4352 = vmatpush1.bf16.msra.mxu0 %v5884_v30  ;;  %v5958_v30 = vld [vmem:[%s8206_s3 + $0x704] ss:$16 sps:$4 sm:$0xff]  }
 0x18a   : > { %4680 = vmatpush1.bf16.msra.mxu1 %v5887_v31  ;;  %4353 = vmatprep.subr.bf16.mxu0 %v5892_v32  ;;  %v5961_v31 = vld [vmem:[%s8206_s3 + $0x70c] ss:$16 sps:$4 sm:$0xff]   ;;  %v5956_v32 = vld [vmem:[%s8206_s3 + $0x700] ss:$16 sps:$4 sm:$0xff]  }
 0x18b   : > { %4681 = vmatprep.subr.bf16.mxu1 %v5895_v33  ;;  %v5959_v33 = vld [vmem:[%s8206_s3 + $0x708] ss:$16 sps:$4 sm:$0xff]  }
 0x18d   : > { %4354 = vmatpush1.bf16.msra.mxu0 %v5890_v34  ;;  %v5964_v34 = vld [vmem:[%s8206_s3 + $0x724] ss:$16 sps:$4 sm:$0xff]  }
 0x18e   : > { %4682 = vmatpush1.bf16.msra.mxu1 %v5893_v35  ;;  %4355 = vmatprep.subr.bf16.mxu0 %v5898_v36  ;;  %v5967_v35 = vld [vmem:[%s8206_s3 + $0x72c] ss:$16 sps:$4 sm:$0xff]   ;;  %v5962_v36 = vld [vmem:[%s8206_s3 + $0x720] ss:$16 sps:$4 sm:$0xff]  }
 0x18f   : > { %4683 = vmatprep.subr.bf16.mxu1 %v5901_v37  ;;  %v5965_v37 = vld [vmem:[%s8206_s3 + $0x728] ss:$16 sps:$4 sm:$0xff]  }
 0x191   : > { %4356 = vmatpush1.bf16.msra.mxu0 %v5896_v38  ;;  %v5970_v38 = vld [vmem:[%s8206_s3 + $0x744] ss:$16 sps:$4 sm:$0xff]  }
 0x192   : > { %4684 = vmatpush1.bf16.msra.mxu1 %v5899_v40  ;;  %4357 = vmatprep.subr.bf16.mxu0 %v5904_v41  ;;  %v5973_v40 = vld [vmem:[%s8206_s3 + $0x74c] ss:$16 sps:$4 sm:$0xff]   ;;  %v5968_v41 = vld [vmem:[%s8206_s3 + $0x740] ss:$16 sps:$4 sm:$0xff]  }
 0x193   : > { %4685 = vmatprep.subr.bf16.mxu1 %v5907_v42  ;;  %v5971_v42 = vld [vmem:[%s8206_s3 + $0x748] ss:$16 sps:$4 sm:$0xff]  }
 0x195   : > { %4358 = vmatpush1.bf16.msra.mxu0 %v5902_v43  ;;  %v5976_v43 = vld [vmem:[%s8206_s3 + $0x764] ss:$16 sps:$4 sm:$0xff]  }
 0x196   : > { %4686 = vmatpush1.bf16.msra.mxu1 %v5905_v44  ;;  %4368 = vmatprep.subr.bf16.mxu0 %v5910_v46  ;;  %v5979_v44 = vld [vmem:[%s8206_s3 + $0x76c] ss:$16 sps:$4 sm:$0xff]   ;;  %v5977_v46 = vld [vmem:[%s8206_s3 + $0x768] ss:$16 sps:$4 sm:$0xff]  }
 0x197   : > { %4696 = vmatprep.subr.bf16.mxu1 %v5913_v47  ;;  %v5982_v47 = vld [vmem:[%s8206_s3 + $0x784] ss:$16 sps:$4 sm:$0xff]  }
 0x198   : > { %4360 = vmatmul.mubr.bf16.vlgmr.msra.gmra.mrb[16].mxu0 %v1139_v50 }
 0x199   : > { %4688 = vmatmul.mubr.bf16.vlgmr.msra.gmra.mrb[16].mxu1 %v1139_v50  ;;  %4369 = vmatpush1.bf16.msra.mxu0 %v5908_v49  ;;  %v5980_v49 = vld [vmem:[%s8206_s3 + $0x780] ss:$16 sps:$4 sm:$0xff]   ;;  %v5983_v50 = vld [vmem:[%s8206_s3 + $0x788] ss:$16 sps:$4 sm:$0xff]  }
 0x19a   : > { %4400 = vmatprep.mubr.bf16.mxu0 %v1142_v53  ;;  %4697 = vmatpush1.bf16.msra.mxu1 %v5911_v51  ;;  %v5988_v51 = vld [vmem:[%s8206_s3 + $0x7a4] ss:$16 sps:$4 sm:$0xff]  }
 0x19b   : > { %4728 = vmatprep.mubr.bf16.mxu1 %v1142_v53  ;;  %4370 = vmatprep.subr.bf16.mxu0 %v5916_v52  ;;  %v5991_v52 = vld [vmem:[%s8206_s3 + $0x7ac] ss:$16 sps:$4 sm:$0xff]   ;;  %v5986_v53 = vld [vmem:[%s8206_s3 + $0x7a0] ss:$16 sps:$4 sm:$0xff]  }
 0x19c   : > { %4698 = vmatprep.subr.bf16.mxu1 %v5919_v57  ;;  %v5989_v57 = vld [vmem:[%s8206_s3 + $0x7a8] ss:$16 sps:$4 sm:$0xff]  }
 0x19d   : > { %4371 = vmatpush1.bf16.msra.mxu0 %v5914_v61  ;;  %v5994_v61 = vld [vmem:[%s8206_s3 + $0x7c4] ss:$16 sps:$4 sm:$0xff]  }
 0x19e   : > { %4699 = vmatpush1.bf16.msra.mxu1 %v5917_v6  ;;  %4372 = vmatprep.subr.bf16.mxu0 %v5922_v62  ;;  %v5997_v6 = vld [vmem:[%s8206_s3 + $0x7cc] ss:$16 sps:$4 sm:$0xff]   ;;  %v5992_v62 = vld [vmem:[%s8206_s3 + $0x7c0] ss:$16 sps:$4 sm:$0xff]  }
 0x19f   : > { %4700 = vmatprep.subr.bf16.mxu1 %v5925_v63  ;;  %v5995_v63 = vld [vmem:[%s8206_s3 + $0x7c8] ss:$16 sps:$4 sm:$0xff]  }
 0x1a1   : > { %4373 = vmatpush1.bf16.msra.mxu0 %v5920_v4  ;;  %v6000_v4 = vld [vmem:[%s8206_s3 + $0x7e4] ss:$16 sps:$4 sm:$0xff]  }
 0x1a2   : > { %4701 = vmatpush1.bf16.msra.mxu1 %v5923_v5  ;;  %4374 = vmatprep.subr.bf16.mxu0 %v5928_v8  ;;  %v6003_v5 = vld [vmem:[%s8206_s3 + $0x7ec] ss:$16 sps:$4 sm:$0xff]   ;;  %v7385_v8 = vmul.f32 0.25, %v1039_v3 }
 0x1a3   : > { %4702 = vmatprep.subr.bf16.mxu1 %v5931_v9  ;;  %v5998_v9 = vld [vmem:[%s8206_s3 + $0x7e0] ss:$16 sps:$4 sm:$0xff]  }
 0x1a4   : > { %v1094_v3 = vrot.slane %v7385_v8, %v6729_v58 }
 0x1a5   : > { %4375 = vmatpush1.bf16.msra.mxu0 %v5926_v10  ;;  %v6001_v10 = vld [vmem:[%s8206_s3 + $0x7e8] ss:$16 sps:$4 sm:$0xff]  }
 0x1a6   : > { %4703 = vmatpush1.bf16.msra.mxu1 %v5929_v11  ;;  %4376 = vmatprep.subr.bf16.mxu0 %v5934_v14  ;;  %v1082_v11 = vrot.slane %v6771_v2, %v6742_v7  ;;  %v6004_v14 = vld [vmem:[%s8206_s3 + $0x800] ss:$16 sps:$4 sm:$0xff]   ;;  %v6007_v2 = vld [vmem:[%s8206_s3 + $0x808] ss:$16 sps:$4 sm:$0xff]  }
 0x1a7   : > { %4704 = vmatprep.subr.bf16.mxu1 %v5937_v15 }
 0x1a8   : > { %v1141_v15 = vpack.c.bf16 %v1082_v11, %v1082_v11  ;;  %v6081_v11 = vld [vmem:[%s8206_s3 + $0x98c] ss:$16 sps:$4 sm:$0xff]  }
 0x1a9   : > { %4377 = vmatpush1.bf16.msra.mxu0 %v5932_v16  ;;  %v6012_v16 = vld [vmem:[%s8206_s3 + $0x824] ss:$16 sps:$4 sm:$0xff]  }
 0x1aa   : > { %4705 = vmatpush1.bf16.msra.mxu1 %v5935_v17  ;;  %4378 = vmatprep.subr.bf16.mxu0 %v5940_v18  ;;  %v1144_v17 = vpack.c.bf16 %v1094_v3, %v1094_v3  ;;  %v6015_v18 = vld [vmem:[%s8206_s3 + $0x82c] ss:$16 sps:$4 sm:$0xff]   ;;  %v6084_v3 = vld [vmem:[%s8206_s3 + $0x9a4] ss:$16 sps:$4 sm:$0xff]  }
 0x1ab   : > { %4706 = vmatprep.subr.bf16.mxu1 %v5943_v19  ;;  %v6010_v19 = vld [vmem:[%s8206_s3 + $0x820] ss:$16 sps:$4 sm:$0xff]  }
 0x1ad   : > { %4379 = vmatpush1.bf16.msra.mxu0 %v5938_v20  ;;  %v6013_v20 = vld [vmem:[%s8206_s3 + $0x828] ss:$16 sps:$4 sm:$0xff]  }
 0x1ae   : > { %4707 = vmatpush1.bf16.msra.mxu1 %v5941_v21  ;;  %4380 = vmatprep.subr.bf16.mxu0 %v5946_v22  ;;  %v6018_v21 = vld [vmem:[%s8206_s3 + $0x844] ss:$16 sps:$4 sm:$0xff]   ;;  %v6021_v22 = vld [vmem:[%s8206_s3 + $0x84c] ss:$16 sps:$4 sm:$0xff]  }
 0x1af   : > { %4708 = vmatprep.subr.bf16.mxu1 %v5949_v23  ;;  %v6016_v23 = vld [vmem:[%s8206_s3 + $0x840] ss:$16 sps:$4 sm:$0xff]  }
 0x1b1   : > { %4381 = vmatpush1.bf16.msra.mxu0 %v5944_v24  ;;  %v6019_v24 = vld [vmem:[%s8206_s3 + $0x848] ss:$16 sps:$4 sm:$0xff]  }
 0x1b2   : > { %4709 = vmatpush1.bf16.msra.mxu1 %v5947_v25  ;;  %4382 = vmatprep.subr.bf16.mxu0 %v5952_v26  ;;  %v6024_v25 = vld [vmem:[%s8206_s3 + $0x864] ss:$16 sps:$4 sm:$0xff]   ;;  %v6027_v26 = vld [vmem:[%s8206_s3 + $0x86c] ss:$16 sps:$4 sm:$0xff]  }
 0x1b3   : > { %4710 = vmatprep.subr.bf16.mxu1 %v5955_v27  ;;  %v6022_v27 = vld [vmem:[%s8206_s3 + $0x860] ss:$16 sps:$4 sm:$0xff]  }
 0x1b5   : > { %4383 = vmatpush1.bf16.msra.mxu0 %v5950_v28  ;;  %v6025_v28 = vld [vmem:[%s8206_s3 + $0x868] ss:$16 sps:$4 sm:$0xff]  }
 0x1b6   : > { %4711 = vmatpush1.bf16.msra.mxu1 %v5953_v29  ;;  %4384 = vmatprep.subr.bf16.mxu0 %v5958_v30  ;;  %v6030_v29 = vld [vmem:[%s8206_s3 + $0x884] ss:$16 sps:$4 sm:$0xff]   ;;  %v6033_v30 = vld [vmem:[%s8206_s3 + $0x88c] ss:$16 sps:$4 sm:$0xff]  }
 0x1b7   : > { %4712 = vmatprep.subr.bf16.mxu1 %v5961_v31  ;;  %v6028_v31 = vld [vmem:[%s8206_s3 + $0x880] ss:$16 sps:$4 sm:$0xff]  }
 0x1b9   : > { %4385 = vmatpush1.bf16.msra.mxu0 %v5956_v32  ;;  %v6031_v32 = vld [vmem:[%s8206_s3 + $0x888] ss:$16 sps:$4 sm:$0xff]  }
 0x1ba   : > { %4713 = vmatpush1.bf16.msra.mxu1 %v5959_v33  ;;  %4386 = vmatprep.subr.bf16.mxu0 %v5964_v34  ;;  %v6036_v33 = vld [vmem:[%s8206_s3 + $0x8a4] ss:$16 sps:$4 sm:$0xff]   ;;  %v6039_v34 = vld [vmem:[%s8206_s3 + $0x8ac] ss:$16 sps:$4 sm:$0xff]  }
 0x1bb   : > { %4714 = vmatprep.subr.bf16.mxu1 %v5967_v35  ;;  %v6034_v35 = vld [vmem:[%s8206_s3 + $0x8a0] ss:$16 sps:$4 sm:$0xff]  }
 0x1bd   : > { %4387 = vmatpush1.bf16.msra.mxu0 %v5962_v36  ;;  %v6037_v36 = vld [vmem:[%s8206_s3 + $0x8a8] ss:$16 sps:$4 sm:$0xff]  }
 0x1be   : > { %4715 = vmatpush1.bf16.msra.mxu1 %v5965_v37  ;;  %4388 = vmatprep.subr.bf16.mxu0 %v5970_v38  ;;  %v6042_v37 = vld [vmem:[%s8206_s3 + $0x8c4] ss:$16 sps:$4 sm:$0xff]   ;;  %v6045_v38 = vld [vmem:[%s8206_s3 + $0x8cc] ss:$16 sps:$4 sm:$0xff]  }
 0x1bf   : > { %4716 = vmatprep.subr.bf16.mxu1 %v5973_v40  ;;  %v6040_v40 = vld [vmem:[%s8206_s3 + $0x8c0] ss:$16 sps:$4 sm:$0xff]  }
 0x1c1   : > { %4389 = vmatpush1.bf16.msra.mxu0 %v5968_v41  ;;  %v6043_v41 = vld [vmem:[%s8206_s3 + $0x8c8] ss:$16 sps:$4 sm:$0xff]  }
 0x1c2   : > { %4717 = vmatpush1.bf16.msra.mxu1 %v5971_v42  ;;  %4390 = vmatprep.subr.bf16.mxu0 %v5976_v43  ;;  %v6048_v42 = vld [vmem:[%s8206_s3 + $0x8e4] ss:$16 sps:$4 sm:$0xff]   ;;  %v6051_v43 = vld [vmem:[%s8206_s3 + $0x8ec] ss:$16 sps:$4 sm:$0xff]  }
 0x1c3   : > { %4718 = vmatprep.subr.bf16.mxu1 %v5979_v44  ;;  %v6046_v44 = vld [vmem:[%s8206_s3 + $0x8e0] ss:$16 sps:$4 sm:$0xff]  }
 0x1c5   : > { %4391 = vmatpush1.bf16.msra.mxu0 %v5974_v45  ;;  %v6049_v45 = vld [vmem:[%s8206_s3 + $0x8e8] ss:$16 sps:$4 sm:$0xff]  }
 0x1c6   : > { %4719 = vmatpush1.bf16.msra.mxu1 %v5977_v46  ;;  %4392 = vmatprep.subr.bf16.mxu0 %v5982_v47  ;;  %v6054_v46 = vld [vmem:[%s8206_s3 + $0x904] ss:$16 sps:$4 sm:$0xff]   ;;  %v6057_v47 = vld [vmem:[%s8206_s3 + $0x90c] ss:$16 sps:$4 sm:$0xff]  }
 0x1c7   : > { %4720 = vmatprep.subr.bf16.mxu1 %v5985_v48  ;;  %v6052_v48 = vld [vmem:[%s8206_s3 + $0x900] ss:$16 sps:$4 sm:$0xff]  }
 0x1c9   : > { %4393 = vmatpush1.bf16.msra.mxu0 %v5980_v49  ;;  %v6055_v49 = vld [vmem:[%s8206_s3 + $0x908] ss:$16 sps:$4 sm:$0xff]  }
 0x1ca   : > { %4721 = vmatpush1.bf16.msra.mxu1 %v5983_v50  ;;  %4394 = vmatprep.subr.bf16.mxu0 %v5988_v51  ;;  %v6060_v50 = vld [vmem:[%s8206_s3 + $0x924] ss:$16 sps:$4 sm:$0xff]   ;;  %v6063_v51 = vld [vmem:[%s8206_s3 + $0x92c] ss:$16 sps:$4 sm:$0xff]  }
 0x1cb   : > { %4722 = vmatprep.subr.bf16.mxu1 %v5991_v52  ;;  %v6058_v52 = vld [vmem:[%s8206_s3 + $0x920] ss:$16 sps:$4 sm:$0xff]  }
 0x1cd   : > { %4395 = vmatpush1.bf16.msra.mxu0 %v5986_v53  ;;  %v6061_v53 = vld [vmem:[%s8206_s3 + $0x928] ss:$16 sps:$4 sm:$0xff]  }
 0x1ce   : > { %4723 = vmatpush1.bf16.msra.mxu1 %v5989_v57  ;;  %4396 = vmatprep.subr.bf16.mxu0 %v5994_v61  ;;  %v6066_v57 = vld [vmem:[%s8206_s3 + $0x944] ss:$16 sps:$4 sm:$0xff]   ;;  %v6069_v61 = vld [vmem:[%s8206_s3 + $0x94c] ss:$16 sps:$4 sm:$0xff]  }
 0x1cf   : > { %4724 = vmatprep.subr.bf16.mxu1 %v5997_v6  ;;  %v6064_v6 = vld [vmem:[%s8206_s3 + $0x940] ss:$16 sps:$4 sm:$0xff]  }
 0x1d1   : > { %4397 = vmatpush1.bf16.msra.mxu0 %v5992_v62  ;;  %v6067_v62 = vld [vmem:[%s8206_s3 + $0x948] ss:$16 sps:$4 sm:$0xff]  }
 0x1d2   : > { %4725 = vmatpush1.bf16.msra.mxu1 %v5995_v63  ;;  %4398 = vmatprep.subr.bf16.mxu0 %v6000_v4  ;;  %v6072_v63 = vld [vmem:[%s8206_s3 + $0x964] ss:$16 sps:$4 sm:$0xff]   ;;  %v6075_v4 = vld [vmem:[%s8206_s3 + $0x96c] ss:$16 sps:$4 sm:$0xff]  }
 0x1d3   : > { %4726 = vmatprep.subr.bf16.mxu1 %v6003_v5  ;;  %v6070_v5 = vld [vmem:[%s8206_s3 + $0x960] ss:$16 sps:$4 sm:$0xff]  }
 0x1d5   : > { %4399 = vmatpush1.bf16.msra.mxu0 %v5998_v9  ;;  %v6073_v9 = vld [vmem:[%s8206_s3 + $0x968] ss:$16 sps:$4 sm:$0xff]  }
 0x1d6   : > { %4727 = vmatpush1.bf16.msra.mxu1 %v6001_v10  ;;  %4409 = vmatprep.subr.bf16.mxu0 %v6006_v54  ;;  %v6078_v10 = vld [vmem:[%s8206_s3 + $0x984] ss:$16 sps:$4 sm:$0xff]   ;;  %v6076_v54 = vld [vmem:[%s8206_s3 + $0x980] ss:$16 sps:$4 sm:$0xff]  }
 0x1d7   : > { %4737 = vmatprep.subr.bf16.mxu1 %v6009_v60  ;;  %v6079_v60 = vld [vmem:[%s8206_s3 + $0x988] ss:$16 sps:$4 sm:$0xff]  }
 0x1d8   : > { %4401 = vmatmul.mubr.bf16.vlgmr.msra.gmra.mrb[16].mxu0 %v1141_v15 }
 0x1d9   : > { %4729 = vmatmul.mubr.bf16.vlgmr.msra.gmra.mrb[16].mxu1 %v1141_v15  ;;  %4410 = vmatpush1.bf16.msra.mxu0 %v6004_v14  ;;  %v6087_v14 = vld [vmem:[%s8206_s3 + $0x9ac] ss:$16 sps:$4 sm:$0xff]   ;;  %v6082_v15 = vld [vmem:[%s8206_s3 + $0x9a0] ss:$16 sps:$4 sm:$0xff]  }
 0x1da   : > { %4441 = vmatprep.mubr.bf16.mxu0 %v1144_v17  ;;  %4738 = vmatpush1.bf16.msra.mxu1 %v6007_v2  ;;  %v6085_v2 = vld [vmem:[%s8206_s3 + $0x9a8] ss:$16 sps:$4 sm:$0xff]  }
 0x1db   : > { %4769 = vmatprep.mubr.bf16.mxu1 %v1144_v17  ;;  %4411 = vmatprep.subr.bf16.mxu0 %v6012_v16  ;;  %v6090_v16 = vld [vmem:[%s8206_s3 + $0x9c4] ss:$16 sps:$4 sm:$0xff]   ;;  %v6093_v17 = vld [vmem:[%s8206_s3 + $0x9cc] ss:$16 sps:$4 sm:$0xff]  }
 0x1dc   : > { %4739 = vmatprep.subr.bf16.mxu1 %v6015_v18  ;;  %v6088_v18 = vld [vmem:[%s8206_s3 + $0x9c0] ss:$16 sps:$4 sm:$0xff]  }
 0x1dd   : > { %4412 = vmatpush1.bf16.msra.mxu0 %v6010_v19  ;;  %v6091_v19 = vld [vmem:[%s8206_s3 + $0x9c8] ss:$16 sps:$4 sm:$0xff]  }
 0x1de   : > { %4740 = vmatpush1.bf16.msra.mxu1 %v6013_v20  ;;  %4413 = vmatprep.subr.bf16.mxu0 %v6018_v21  ;;  %v6096_v20 = vld [vmem:[%s8206_s3 + $0x9e4] ss:$16 sps:$4 sm:$0xff]   ;;  %v6099_v21 = vld [vmem:[%s8206_s3 + $0x9ec] ss:$16 sps:$4 sm:$0xff]  }
 0x1df   : > { %4741 = vmatprep.subr.bf16.mxu1 %v6021_v22  ;;  %v6094_v22 = vld [vmem:[%s8206_s3 + $0x9e0] ss:$16 sps:$4 sm:$0xff]  }
 0x1e1   : > { %4414 = vmatpush1.bf16.msra.mxu0 %v6016_v23  ;;  %v6097_v23 = vld [vmem:[%s8206_s3 + $0x9e8] ss:$16 sps:$4 sm:$0xff]  }
 0x1e2   : > { %4742 = vmatpush1.bf16.msra.mxu1 %v6019_v24  ;;  %4415 = vmatprep.subr.bf16.mxu0 %v6024_v25  ;;  %v1090_v24 = vrot.slane %v7385_v8, %v6720_v55  ;;  %v6102_v25 = vld [vmem:[%s8206_s3 + $0xa04] ss:$16 sps:$4 sm:$0xff]  }
 0x1e3   : > { %4743 = vmatprep.subr.bf16.mxu1 %v6027_v26  ;;  %v6105_v26 = vld [vmem:[%s8206_s3 + $0xa0c] ss:$16 sps:$4 sm:$0xff]  }
 0x1e5   : > { %4416 = vmatpush1.bf16.msra.mxu0 %v6022_v27  ;;  %v1102_v27 = vrot.slane %v7385_v8, %v6732_v59 }
 0x1e6   : > { %4744 = vmatpush1.bf16.msra.mxu1 %v6025_v28  ;;  %4417 = vmatprep.subr.bf16.mxu0 %v6030_v29  ;;  %v6100_v28 = vld [vmem:[%s8206_s3 + $0xa00] ss:$16 sps:$4 sm:$0xff]   ;;  %v1143_v29 = vpack.c.bf16 %v1090_v24, %v1090_v24  ;;  %v6177_v24 = vld [vmem:[%s8206_s3 + $0xb8c] ss:$16 sps:$4 sm:$0xff]  }
 0x1e7   : > { %4745 = vmatprep.subr.bf16.mxu1 %v6033_v30  ;;  %v6103_v30 = vld [vmem:[%s8206_s3 + $0xa08] ss:$16 sps:$4 sm:$0xff]  }
 0x1e9   : > { %4418 = vmatpush1.bf16.msra.mxu0 %v6028_v31  ;;  %v6108_v31 = vld [vmem:[%s8206_s3 + $0xa24] ss:$16 sps:$4 sm:$0xff]  }
 0x1ea   : > { %4746 = vmatpush1.bf16.msra.mxu1 %v6031_v32  ;;  %4419 = vmatprep.subr.bf16.mxu0 %v6036_v33  ;;  %v1146_v32 = vpack.c.bf16 %v1102_v27, %v1102_v27  ;;  %v6111_v33 = vld [vmem:[%s8206_s3 + $0xa2c] ss:$16 sps:$4 sm:$0xff]   ;;  %v6180_v27 = vld [vmem:[%s8206_s3 + $0xba4] ss:$16 sps:$4 sm:$0xff]  }
 0x1eb   : > { %4747 = vmatprep.subr.bf16.mxu1 %v6039_v34  ;;  %v6106_v34 = vld [vmem:[%s8206_s3 + $0xa20] ss:$16 sps:$4 sm:$0xff]  }
 0x1ed   : > { %4420 = vmatpush1.bf16.msra.mxu0 %v6034_v35  ;;  %v6109_v35 = vld [vmem:[%s8206_s3 + $0xa28] ss:$16 sps:$4 sm:$0xff]  }
 0x1ee   : > { %4748 = vmatpush1.bf16.msra.mxu1 %v6037_v36  ;;  %4421 = vmatprep.subr.bf16.mxu0 %v6042_v37  ;;  %v6114_v36 = vld [vmem:[%s8206_s3 + $0xa44] ss:$16 sps:$4 sm:$0xff]   ;;  %v6117_v37 = vld [vmem:[%s8206_s3 + $0xa4c] ss:$16 sps:$4 sm:$0xff]  }
 0x1ef   : > { %4749 = vmatprep.subr.bf16.mxu1 %v6045_v38  ;;  %v6112_v38 = vld [vmem:[%s8206_s3 + $0xa40] ss:$16 sps:$4 sm:$0xff]  }
 0x1f1   : > { %4422 = vmatpush1.bf16.msra.mxu0 %v6040_v40  ;;  %v6115_v40 = vld [vmem:[%s8206_s3 + $0xa48] ss:$16 sps:$4 sm:$0xff]  }
 0x1f2   : > { %4750 = vmatpush1.bf16.msra.mxu1 %v6043_v41  ;;  %4423 = vmatprep.subr.bf16.mxu0 %v6048_v42  ;;  %v6120_v41 = vld [vmem:[%s8206_s3 + $0xa64] ss:$16 sps:$4 sm:$0xff]   ;;  %v6123_v42 = vld [vmem:[%s8206_s3 + $0xa6c] ss:$16 sps:$4 sm:$0xff]  }
 0x1f3   : > { %4751 = vmatprep.subr.bf16.mxu1 %v6051_v43  ;;  %v6118_v43 = vld [vmem:[%s8206_s3 + $0xa60] ss:$16 sps:$4 sm:$0xff]  }
 0x1f5   : > { %4424 = vmatpush1.bf16.msra.mxu0 %v6046_v44  ;;  %v6121_v44 = vld [vmem:[%s8206_s3 + $0xa68] ss:$16 sps:$4 sm:$0xff]  }
 0x1f6   : > { %4752 = vmatpush1.bf16.msra.mxu1 %v6049_v45  ;;  %4425 = vmatprep.subr.bf16.mxu0 %v6054_v46  ;;  %v6126_v45 = vld [vmem:[%s8206_s3 + $0xa84] ss:$16 sps:$4 sm:$0xff]   ;;  %v6129_v46 = vld [vmem:[%s8206_s3 + $0xa8c] ss:$16 sps:$4 sm:$0xff]  }
 0x1f7   : > { %4753 = vmatprep.subr.bf16.mxu1 %v6057_v47  ;;  %v6124_v47 = vld [vmem:[%s8206_s3 + $0xa80] ss:$16 sps:$4 sm:$0xff]  }
 0x1f9   : > { %4426 = vmatpush1.bf16.msra.mxu0 %v6052_v48  ;;  %v6127_v48 = vld [vmem:[%s8206_s3 + $0xa88] ss:$16 sps:$4 sm:$0xff]  }
 0x1fa   : > { %4754 = vmatpush1.bf16.msra.mxu1 %v6055_v49  ;;  %4427 = vmatprep.subr.bf16.mxu0 %v6060_v50  ;;  %v6132_v49 = vld [vmem:[%s8206_s3 + $0xaa4] ss:$16 sps:$4 sm:$0xff]   ;;  %v6135_v50 = vld [vmem:[%s8206_s3 + $0xaac] ss:$16 sps:$4 sm:$0xff]  }
 0x1fb   : > { %4755 = vmatprep.subr.bf16.mxu1 %v6063_v51  ;;  %v6130_v51 = vld [vmem:[%s8206_s3 + $0xaa0] ss:$16 sps:$4 sm:$0xff]  }
 0x1fd   : > { %4428 = vmatpush1.bf16.msra.mxu0 %v6058_v52  ;;  %v6133_v52 = vld [vmem:[%s8206_s3 + $0xaa8] ss:$16 sps:$4 sm:$0xff]  }
 0x1fe   : > { %4756 = vmatpush1.bf16.msra.mxu1 %v6061_v53  ;;  %4429 = vmatprep.subr.bf16.mxu0 %v6066_v57  ;;  %v6138_v53 = vld [vmem:[%s8206_s3 + $0xac4] ss:$16 sps:$4 sm:$0xff]   ;;  %v6141_v57 = vld [vmem:[%s8206_s3 + $0xacc] ss:$16 sps:$4 sm:$0xff]  }
 0x1ff   : > { %4757 = vmatprep.subr.bf16.mxu1 %v6069_v61  ;;  %v6136_v61 = vld [vmem:[%s8206_s3 + $0xac0] ss:$16 sps:$4 sm:$0xff]  }
 0x201   : > { %4430 = vmatpush1.bf16.msra.mxu0 %v6064_v6  ;;  %v6139_v6 = vld [vmem:[%s8206_s3 + $0xac8] ss:$16 sps:$4 sm:$0xff]  }
 0x202   : > { %4758 = vmatpush1.bf16.msra.mxu1 %v6067_v62  ;;  %4431 = vmatprep.subr.bf16.mxu0 %v6072_v63  ;;  %v6144_v62 = vld [vmem:[%s8206_s3 + $0xae4] ss:$16 sps:$4 sm:$0xff]   ;;  %v6147_v63 = vld [vmem:[%s8206_s3 + $0xaec] ss:$16 sps:$4 sm:$0xff]  }
 0x203   : > { %4759 = vmatprep.subr.bf16.mxu1 %v6075_v4  ;;  %v6142_v4 = vld [vmem:[%s8206_s3 + $0xae0] ss:$16 sps:$4 sm:$0xff]  }
 0x205   : > { %4432 = vmatpush1.bf16.msra.mxu0 %v6070_v5  ;;  %v6145_v5 = vld [vmem:[%s8206_s3 + $0xae8] ss:$16 sps:$4 sm:$0xff]  }
 0x206   : > { %4760 = vmatpush1.bf16.msra.mxu1 %v6073_v9  ;;  %4433 = vmatprep.subr.bf16.mxu0 %v6078_v10  ;;  %v6150_v9 = vld [vmem:[%s8206_s3 + $0xb04] ss:$16 sps:$4 sm:$0xff]   ;;  %v6153_v10 = vld [vmem:[%s8206_s3 + $0xb0c] ss:$16 sps:$4 sm:$0xff]  }
 0x207   : > { %4761 = vmatprep.subr.bf16.mxu1 %v6081_v11  ;;  %v6148_v11 = vld [vmem:[%s8206_s3 + $0xb00] ss:$16 sps:$4 sm:$0xff]  }
 0x209   : > { %4434 = vmatpush1.bf16.msra.mxu0 %v6076_v54  ;;  %v6151_v54 = vld [vmem:[%s8206_s3 + $0xb08] ss:$16 sps:$4 sm:$0xff]  }
 0x20a   : > { %4762 = vmatpush1.bf16.msra.mxu1 %v6079_v60  ;;  %4435 = vmatprep.subr.bf16.mxu0 %v6084_v3  ;;  %v6156_v60 = vld [vmem:[%s8206_s3 + $0xb24] ss:$16 sps:$4 sm:$0xff]   ;;  %v6159_v3 = vld [vmem:[%s8206_s3 + $0xb2c] ss:$16 sps:$4 sm:$0xff]  }
 0x20b   : > { %4763 = vmatprep.subr.bf16.mxu1 %v6087_v14  ;;  %v6154_v14 = vld [vmem:[%s8206_s3 + $0xb20] ss:$16 sps:$4 sm:$0xff]  }
 0x20d   : > { %4436 = vmatpush1.bf16.msra.mxu0 %v6082_v15  ;;  %v6157_v15 = vld [vmem:[%s8206_s3 + $0xb28] ss:$16 sps:$4 sm:$0xff]  }
 0x20e   : > { %4764 = vmatpush1.bf16.msra.mxu1 %v6085_v2  ;;  %4437 = vmatprep.subr.bf16.mxu0 %v6090_v16  ;;  %v6162_v2 = vld [vmem:[%s8206_s3 + $0xb44] ss:$16 sps:$4 sm:$0xff]   ;;  %v6165_v16 = vld [vmem:[%s8206_s3 + $0xb4c] ss:$16 sps:$4 sm:$0xff]  }
 0x20f   : > { %4765 = vmatprep.subr.bf16.mxu1 %v6093_v17  ;;  %v6160_v17 = vld [vmem:[%s8206_s3 + $0xb40] ss:$16 sps:$4 sm:$0xff]  }
 0x211   : > { %4438 = vmatpush1.bf16.msra.mxu0 %v6088_v18  ;;  %v6163_v18 = vld [vmem:[%s8206_s3 + $0xb48] ss:$16 sps:$4 sm:$0xff]  }
 0x212   : > { %4766 = vmatpush1.bf16.msra.mxu1 %v6091_v19  ;;  %4439 = vmatprep.subr.bf16.mxu0 %v6096_v20  ;;  %v6168_v19 = vld [vmem:[%s8206_s3 + $0xb64] ss:$16 sps:$4 sm:$0xff]   ;;  %v6171_v20 = vld [vmem:[%s8206_s3 + $0xb6c] ss:$16 sps:$4 sm:$0xff]  }
 0x213   : > { %4767 = vmatprep.subr.bf16.mxu1 %v6099_v21  ;;  %v6166_v21 = vld [vmem:[%s8206_s3 + $0xb60] ss:$16 sps:$4 sm:$0xff]  }
 0x215   : > { %4440 = vmatpush1.bf16.msra.mxu0 %v6094_v22  ;;  %v6169_v22 = vld [vmem:[%s8206_s3 + $0xb68] ss:$16 sps:$4 sm:$0xff]  }
 0x216   : > { %4768 = vmatpush1.bf16.msra.mxu1 %v6097_v23  ;;  %4450 = vmatprep.subr.bf16.mxu0 %v6102_v25  ;;  %v6174_v23 = vld [vmem:[%s8206_s3 + $0xb84] ss:$16 sps:$4 sm:$0xff]   ;;  %v6172_v25 = vld [vmem:[%s8206_s3 + $0xb80] ss:$16 sps:$4 sm:$0xff]  }
 0x217   : > { %4778 = vmatprep.subr.bf16.mxu1 %v6105_v26  ;;  %v6175_v26 = vld [vmem:[%s8206_s3 + $0xb88] ss:$16 sps:$4 sm:$0xff]  }
 0x218   : > { %4442 = vmatmul.mubr.bf16.vlgmr.msra.gmra.mrb[16].mxu0 %v1143_v29 }
 0x219   : > { %4770 = vmatmul.mubr.bf16.vlgmr.msra.gmra.mrb[16].mxu1 %v1143_v29  ;;  %4451 = vmatpush1.bf16.msra.mxu0 %v6100_v28  ;;  %v6183_v28 = vld [vmem:[%s8206_s3 + $0xbac] ss:$16 sps:$4 sm:$0xff]   ;;  %v6178_v29 = vld [vmem:[%s8206_s3 + $0xba0] ss:$16 sps:$4 sm:$0xff]  }
 0x21a   : > { %4482 = vmatprep.mubr.bf16.mxu0 %v1146_v32  ;;  %4779 = vmatpush1.bf16.msra.mxu1 %v6103_v30  ;;  %v6181_v30 = vld [vmem:[%s8206_s3 + $0xba8] ss:$16 sps:$4 sm:$0xff]  }
 0x21b   : > { %4810 = vmatprep.mubr.bf16.mxu1 %v1146_v32  ;;  %4452 = vmatprep.subr.bf16.mxu0 %v6108_v31  ;;  %v6186_v31 = vld [vmem:[%s8206_s3 + $0xbc4] ss:$16 sps:$4 sm:$0xff]   ;;  %v6189_v32 = vld [vmem:[%s8206_s3 + $0xbcc] ss:$16 sps:$4 sm:$0xff]  }
 0x21c   : > { %4780 = vmatprep.subr.bf16.mxu1 %v6111_v33  ;;  %v6184_v33 = vld [vmem:[%s8206_s3 + $0xbc0] ss:$16 sps:$4 sm:$0xff]  }
 0x21d   : > { %4453 = vmatpush1.bf16.msra.mxu0 %v6106_v34  ;;  %v6187_v34 = vld [vmem:[%s8206_s3 + $0xbc8] ss:$16 sps:$4 sm:$0xff]  }
 0x21e   : > { %4781 = vmatpush1.bf16.msra.mxu1 %v6109_v35  ;;  %4454 = vmatprep.subr.bf16.mxu0 %v6114_v36  ;;  %v6192_v35 = vld [vmem:[%s8206_s3 + $0xbe4] ss:$16 sps:$4 sm:$0xff]   ;;  %v6195_v36 = vld [vmem:[%s8206_s3 + $0xbec] ss:$16 sps:$4 sm:$0xff]  }
 0x21f   : > { %4782 = vmatprep.subr.bf16.mxu1 %v6117_v37  ;;  %v6190_v37 = vld [vmem:[%s8206_s3 + $0xbe0] ss:$16 sps:$4 sm:$0xff]  }
 0x221   : > { %4455 = vmatpush1.bf16.msra.mxu0 %v6112_v38  ;;  %v6193_v38 = vld [vmem:[%s8206_s3 + $0xbe8] ss:$16 sps:$4 sm:$0xff]  }
 0x222   : > { %4783 = vmatpush1.bf16.msra.mxu1 %v6115_v40  ;;  %4456 = vmatprep.subr.bf16.mxu0 %v6120_v41  ;;  %v1098_v40 = vrot.slane %v7385_v8, %v6723_v56  ;;  %v6198_v41 = vld [vmem:[%s8206_s3 + $0xc04] ss:$16 sps:$4 sm:$0xff]  }
 0x223   : > { %4784 = vmatprep.subr.bf16.mxu1 %v6123_v42  ;;  %v6201_v42 = vld [vmem:[%s8206_s3 + $0xc0c] ss:$16 sps:$4 sm:$0xff]  }
 0x225   : > { %4457 = vmatpush1.bf16.msra.mxu0 %v6118_v43  ;;  %v1110_v43 = vrot.slane %v7385_v8, %v6745_v12  ;;  %v6207_v12 = vld [vmem:[%s8206_s3 + $0xc2c] ss:$16 sps:$4 sm:$0xff]  }
 0x226   : > { %4785 = vmatpush1.bf16.msra.mxu1 %v6121_v44  ;;  %4458 = vmatprep.subr.bf16.mxu0 %v6126_v45  ;;  %v6196_v44 = vld [vmem:[%s8206_s3 + $0xc00] ss:$16 sps:$4 sm:$0xff]   ;;  %v1145_v45 = vpack.c.bf16 %v1098_v40, %v1098_v40 }
 0x227   : > { %4786 = vmatprep.subr.bf16.mxu1 %v6129_v46  ;;  %v6199_v46 = vld [vmem:[%s8206_s3 + $0xc08] ss:$16 sps:$4 sm:$0xff]   ;;  %v6268_v40 = vld [vmem:[%s8206_s3 + $0xd80] ss:$16 sps:$4 sm:$0xff]  }
 0x229   : > { %4459 = vmatpush1.bf16.msra.mxu0 %v6124_v47  ;;  %v6204_v47 = vld [vmem:[%s8206_s3 + $0xc24] ss:$16 sps:$4 sm:$0xff]  }
 0x22a   : > { %4787 = vmatpush1.bf16.msra.mxu1 %v6127_v48  ;;  %4460 = vmatprep.subr.bf16.mxu0 %v6132_v49  ;;  %v1148_v48 = vpack.c.bf16 %v1110_v43, %v1110_v43  ;;  %v6202_v49 = vld [vmem:[%s8206_s3 + $0xc20] ss:$16 sps:$4 sm:$0xff]   ;;  %v6279_v43 = vld [vmem:[%s8206_s3 + $0xdac] ss:$16 sps:$4 sm:$0xff]  }
 0x22b   : > { %4788 = vmatprep.subr.bf16.mxu1 %v6135_v50  ;;  %v6205_v50 = vld [vmem:[%s8206_s3 + $0xc28] ss:$16 sps:$4 sm:$0xff]  }
 0x22d   : > { %4461 = vmatpush1.bf16.msra.mxu0 %v6130_v51  ;;  %v6210_v51 = vld [vmem:[%s8206_s3 + $0xc44] ss:$16 sps:$4 sm:$0xff]  }
 0x22e   : > { %4789 = vmatpush1.bf16.msra.mxu1 %v6133_v52  ;;  %4462 = vmatprep.subr.bf16.mxu0 %v6138_v53  ;;  %v6213_v52 = vld [vmem:[%s8206_s3 + $0xc4c] ss:$16 sps:$4 sm:$0xff]   ;;  %v6208_v53 = vld [vmem:[%s8206_s3 + $0xc40] ss:$16 sps:$4 sm:$0xff]  }
 0x22f   : > { %4790 = vmatprep.subr.bf16.mxu1 %v6141_v57  ;;  %v6211_v57 = vld [vmem:[%s8206_s3 + $0xc48] ss:$16 sps:$4 sm:$0xff]  }
 0x231   : > { %4463 = vmatpush1.bf16.msra.mxu0 %v6136_v61  ;;  %v6216_v61 = vld [vmem:[%s8206_s3 + $0xc64] ss:$16 sps:$4 sm:$0xff]  }
 0x232   : > { %4791 = vmatpush1.bf16.msra.mxu1 %v6139_v6  ;;  %4464 = vmatprep.subr.bf16.mxu0 %v6144_v62  ;;  %v6219_v6 = vld [vmem:[%s8206_s3 + $0xc6c] ss:$16 sps:$4 sm:$0xff]   ;;  %v6214_v62 = vld [vmem:[%s8206_s3 + $0xc60] ss:$16 sps:$4 sm:$0xff]  }
 0x233   : > { %4792 = vmatprep.subr.bf16.mxu1 %v6147_v63  ;;  %v6217_v63 = vld [vmem:[%s8206_s3 + $0xc68] ss:$16 sps:$4 sm:$0xff]  }
 0x235   : > { %4465 = vmatpush1.bf16.msra.mxu0 %v6142_v4  ;;  %v6222_v4 = vld [vmem:[%s8206_s3 + $0xc84] ss:$16 sps:$4 sm:$0xff]  }
 0x236   : > { %4793 = vmatpush1.bf16.msra.mxu1 %v6145_v5  ;;  %4466 = vmatprep.subr.bf16.mxu0 %v6150_v9  ;;  %v6225_v5 = vld [vmem:[%s8206_s3 + $0xc8c] ss:$16 sps:$4 sm:$0xff]   ;;  %v6220_v9 = vld [vmem:[%s8206_s3 + $0xc80] ss:$16 sps:$4 sm:$0xff]  }
 0x237   : > { %4794 = vmatprep.subr.bf16.mxu1 %v6153_v10  ;;  %v6223_v10 = vld [vmem:[%s8206_s3 + $0xc88] ss:$16 sps:$4 sm:$0xff]  }
 0x239   : > { %4467 = vmatpush1.bf16.msra.mxu0 %v6148_v11  ;;  %v6228_v11 = vld [vmem:[%s8206_s3 + $0xca4] ss:$16 sps:$4 sm:$0xff]  }
 0x23a   : > { %4795 = vmatpush1.bf16.msra.mxu1 %v6151_v54  ;;  %4468 = vmatprep.subr.bf16.mxu0 %v6156_v60  ;;  %v6231_v54 = vld [vmem:[%s8206_s3 + $0xcac] ss:$16 sps:$4 sm:$0xff]   ;;  %v6226_v60 = vld [vmem:[%s8206_s3 + $0xca0] ss:$16 sps:$4 sm:$0xff]  }
 0x23b   : > { %4796 = vmatprep.subr.bf16.mxu1 %v6159_v3  ;;  %v6229_v3 = vld [vmem:[%s8206_s3 + $0xca8] ss:$16 sps:$4 sm:$0xff]  }
 0x23d   : > { %4469 = vmatpush1.bf16.msra.mxu0 %v6154_v14  ;;  %v6234_v14 = vld [vmem:[%s8206_s3 + $0xcc4] ss:$16 sps:$4 sm:$0xff]  }
 0x23e   : > { %4797 = vmatpush1.bf16.msra.mxu1 %v6157_v15  ;;  %4470 = vmatprep.subr.bf16.mxu0 %v6162_v2  ;;  %v6237_v15 = vld [vmem:[%s8206_s3 + $0xccc] ss:$16 sps:$4 sm:$0xff]   ;;  %v6232_v2 = vld [vmem:[%s8206_s3 + $0xcc0] ss:$16 sps:$4 sm:$0xff]  }
 0x23f   : > { %4798 = vmatprep.subr.bf16.mxu1 %v6165_v16  ;;  %v6235_v16 = vld [vmem:[%s8206_s3 + $0xcc8] ss:$16 sps:$4 sm:$0xff]  }
 0x241   : > { %4471 = vmatpush1.bf16.msra.mxu0 %v6160_v17  ;;  %v6240_v17 = vld [vmem:[%s8206_s3 + $0xce4] ss:$16 sps:$4 sm:$0xff]  }
 0x242   : > { %4799 = vmatpush1.bf16.msra.mxu1 %v6163_v18  ;;  %4472 = vmatprep.subr.bf16.mxu0 %v6168_v19  ;;  %v6243_v18 = vld [vmem:[%s8206_s3 + $0xcec] ss:$16 sps:$4 sm:$0xff]   ;;  %v6238_v19 = vld [vmem:[%s8206_s3 + $0xce0] ss:$16 sps:$4 sm:$0xff]  }
 0x243   : > { %4800 = vmatprep.subr.bf16.mxu1 %v6171_v20  ;;  %v6241_v20 = vld [vmem:[%s8206_s3 + $0xce8] ss:$16 sps:$4 sm:$0xff]  }
 0x245   : > { %4473 = vmatpush1.bf16.msra.mxu0 %v6166_v21  ;;  %v6246_v21 = vld [vmem:[%s8206_s3 + $0xd04] ss:$16 sps:$4 sm:$0xff]  }
 0x246   : > { %4801 = vmatpush1.bf16.msra.mxu1 %v6169_v22  ;;  %4474 = vmatprep.subr.bf16.mxu0 %v6174_v23  ;;  %v6249_v22 = vld [vmem:[%s8206_s3 + $0xd0c] ss:$16 sps:$4 sm:$0xff]   ;;  %v6244_v23 = vld [vmem:[%s8206_s3 + $0xd00] ss:$16 sps:$4 sm:$0xff]  }
 0x247   : > { %4802 = vmatprep.subr.bf16.mxu1 %v6177_v24  ;;  %v6247_v24 = vld [vmem:[%s8206_s3 + $0xd08] ss:$16 sps:$4 sm:$0xff]  }
 0x249   : > { %4475 = vmatpush1.bf16.msra.mxu0 %v6172_v25  ;;  %v6252_v25 = vld [vmem:[%s8206_s3 + $0xd24] ss:$16 sps:$4 sm:$0xff]  }
 0x24a   : > { %4803 = vmatpush1.bf16.msra.mxu1 %v6175_v26  ;;  %4476 = vmatprep.subr.bf16.mxu0 %v6180_v27  ;;  %v6255_v26 = vld [vmem:[%s8206_s3 + $0xd2c] ss:$16 sps:$4 sm:$0xff]   ;;  %v6250_v27 = vld [vmem:[%s8206_s3 + $0xd20] ss:$16 sps:$4 sm:$0xff]  }
 0x24b   : > { %4804 = vmatprep.subr.bf16.mxu1 %v6183_v28  ;;  %v6253_v28 = vld [vmem:[%s8206_s3 + $0xd28] ss:$16 sps:$4 sm:$0xff]  }
 0x24d   : > { %4477 = vmatpush1.bf16.msra.mxu0 %v6178_v29  ;;  %v6258_v29 = vld [vmem:[%s8206_s3 + $0xd44] ss:$16 sps:$4 sm:$0xff]  }
 0x24e   : > { %4805 = vmatpush1.bf16.msra.mxu1 %v6181_v30  ;;  %4478 = vmatprep.subr.bf16.mxu0 %v6186_v31  ;;  %v6261_v30 = vld [vmem:[%s8206_s3 + $0xd4c] ss:$16 sps:$4 sm:$0xff]   ;;  %v6256_v31 = vld [vmem:[%s8206_s3 + $0xd40] ss:$16 sps:$4 sm:$0xff]  }
 0x24f   : > { %4806 = vmatprep.subr.bf16.mxu1 %v6189_v32  ;;  %v6259_v32 = vld [vmem:[%s8206_s3 + $0xd48] ss:$16 sps:$4 sm:$0xff]  }
 0x251   : > { %4479 = vmatpush1.bf16.msra.mxu0 %v6184_v33  ;;  %v6264_v33 = vld [vmem:[%s8206_s3 + $0xd64] ss:$16 sps:$4 sm:$0xff]  }
 0x252   : > { %4807 = vmatpush1.bf16.msra.mxu1 %v6187_v34  ;;  %4480 = vmatprep.subr.bf16.mxu0 %v6192_v35  ;;  %v6267_v34 = vld [vmem:[%s8206_s3 + $0xd6c] ss:$16 sps:$4 sm:$0xff]   ;;  %v6262_v35 = vld [vmem:[%s8206_s3 + $0xd60] ss:$16 sps:$4 sm:$0xff]  }
 0x253   : > { %4808 = vmatprep.subr.bf16.mxu1 %v6195_v36  ;;  %v6265_v36 = vld [vmem:[%s8206_s3 + $0xd68] ss:$16 sps:$4 sm:$0xff]  }
 0x255   : > { %4481 = vmatpush1.bf16.msra.mxu0 %v6190_v37  ;;  %v6270_v37 = vld [vmem:[%s8206_s3 + $0xd84] ss:$16 sps:$4 sm:$0xff]  }
 0x256   : > { %4809 = vmatpush1.bf16.msra.mxu1 %v6193_v38  ;;  %4491 = vmatprep.subr.bf16.mxu0 %v6198_v41  ;;  %v6273_v38 = vld [vmem:[%s8206_s3 + $0xd8c] ss:$16 sps:$4 sm:$0xff]   ;;  %v6271_v41 = vld [vmem:[%s8206_s3 + $0xd88] ss:$16 sps:$4 sm:$0xff]  }
 0x257   : > { %4819 = vmatprep.subr.bf16.mxu1 %v6201_v42  ;;  %v6276_v42 = vld [vmem:[%s8206_s3 + $0xda4] ss:$16 sps:$4 sm:$0xff]  }
 0x258   : > { %4483 = vmatmul.mubr.bf16.vlgmr.msra.gmra.mrb[16].mxu0 %v1145_v45 }
 0x259   : > { %4811 = vmatmul.mubr.bf16.vlgmr.msra.gmra.mrb[16].mxu1 %v1145_v45  ;;  %4492 = vmatpush1.bf16.msra.mxu0 %v6196_v44  ;;  %v6274_v44 = vld [vmem:[%s8206_s3 + $0xda0] ss:$16 sps:$4 sm:$0xff]   ;;  %v6277_v45 = vld [vmem:[%s8206_s3 + $0xda8] ss:$16 sps:$4 sm:$0xff]  }
 0x25a   : > { %4523 = vmatprep.mubr.bf16.mxu0 %v1148_v48  ;;  %4820 = vmatpush1.bf16.msra.mxu1 %v6199_v46  ;;  %v6282_v46 = vld [vmem:[%s8206_s3 + $0xdc4] ss:$16 sps:$4 sm:$0xff]  }
 0x25b   : > { %4851 = vmatprep.mubr.bf16.mxu1 %v1148_v48  ;;  %4493 = vmatprep.subr.bf16.mxu0 %v6204_v47  ;;  %v6285_v47 = vld [vmem:[%s8206_s3 + $0xdcc] ss:$16 sps:$4 sm:$0xff]   ;;  %v6280_v48 = vld [vmem:[%s8206_s3 + $0xdc0] ss:$16 sps:$4 sm:$0xff]  }
 0x25c   : > { %4821 = vmatprep.subr.bf16.mxu1 %v6207_v12  ;;  %v6283_v12 = vld [vmem:[%s8206_s3 + $0xdc8] ss:$16 sps:$4 sm:$0xff]  }
 0x25d   : > { %4494 = vmatpush1.bf16.msra.mxu0 %v6202_v49  ;;  %v6288_v49 = vld [vmem:[%s8206_s3 + $0xde4] ss:$16 sps:$4 sm:$0xff]  }
 0x25e   : > { %4822 = vmatpush1.bf16.msra.mxu1 %v6205_v50  ;;  %4495 = vmatprep.subr.bf16.mxu0 %v6210_v51  ;;  %v6291_v50 = vld [vmem:[%s8206_s3 + $0xdec] ss:$16 sps:$4 sm:$0xff]   ;;  %v6286_v51 = vld [vmem:[%s8206_s3 + $0xde0] ss:$16 sps:$4 sm:$0xff]  }
 0x25f   : > { %4823 = vmatprep.subr.bf16.mxu1 %v6213_v52  ;;  %v6289_v52 = vld [vmem:[%s8206_s3 + $0xde8] ss:$16 sps:$4 sm:$0xff]  }
 0x261   : > { %4496 = vmatpush1.bf16.msra.mxu0 %v6208_v53  ;;  %v1106_v53 = vrot.slane %v7385_v8, %v6739_v0  ;;  %v6295_v0 = vld [vmem:[%s8206_s3 + $0xe08] ss:$16 sps:$4 sm:$0xff]  }
 0x262   : > { %4824 = vmatpush1.bf16.msra.mxu1 %v6211_v57  ;;  %4497 = vmatprep.subr.bf16.mxu0 %v6216_v61  ;;  %v6294_v57 = vld [vmem:[%s8206_s3 + $0xe04] ss:$16 sps:$4 sm:$0xff]   ;;  %v6297_v61 = vld [vmem:[%s8206_s3 + $0xe0c] ss:$16 sps:$4 sm:$0xff]  }
 0x263   : > { %4825 = vmatprep.subr.bf16.mxu1 %v6219_v6  ;;  %v1118_v6 = vrot.slane %v7385_v8, %v6748_v13  ;;  %v6303_v13 = vld [vmem:[%s8206_s3 + $0xe2c] ss:$16 sps:$4 sm:$0xff]  }
 0x265   : > { %4498 = vmatpush1.bf16.msra.mxu0 %v6214_v62  ;;  %v6292_v62 = vld [vmem:[%s8206_s3 + $0xe00] ss:$16 sps:$4 sm:$0xff]  }
 0x266   : > { %4826 = vmatpush1.bf16.msra.mxu1 %v6217_v63  ;;  %4499 = vmatprep.subr.bf16.mxu0 %v6222_v4  ;;  %v1147_v63 = vpack.c.bf16 %v1106_v53, %v1106_v53  ;;  %v6300_v4 = vld [vmem:[%s8206_s3 + $0xe24] ss:$16 sps:$4 sm:$0xff]  }
 0x267   : > { %4827 = vmatprep.subr.bf16.mxu1 %v6225_v5  ;;  %v1150_v5 = vpack.c.bf16 %v1118_v6, %v1118_v6  ;;  %v6372_v53 = vld [vmem:[%s8206_s3 + $0xfa4] ss:$16 sps:$4 sm:$0xff]   ;;  %v6373_v6 = vld [vmem:[%s8206_s3 + $0xfa8] ss:$16 sps:$4 sm:$0xff]  }
 0x269   : > { %4500 = vmatpush1.bf16.msra.mxu0 %v6220_v9  ;;  %v6298_v9 = vld [vmem:[%s8206_s3 + $0xe20] ss:$16 sps:$4 sm:$0xff]  }
 0x26a   : > { %4828 = vmatpush1.bf16.msra.mxu1 %v6223_v10  ;;  %4501 = vmatprep.subr.bf16.mxu0 %v6228_v11  ;;  %v6301_v10 = vld [vmem:[%s8206_s3 + $0xe28] ss:$16 sps:$4 sm:$0xff]   ;;  %v6306_v11 = vld [vmem:[%s8206_s3 + $0xe44] ss:$16 sps:$4 sm:$0xff]  }
 0x26b   : > { %4829 = vmatprep.subr.bf16.mxu1 %v6231_v54  ;;  %v6309_v54 = vld [vmem:[%s8206_s3 + $0xe4c] ss:$16 sps:$4 sm:$0xff]  }
 0x26d   : > { %4502 = vmatpush1.bf16.msra.mxu0 %v6226_v60  ;;  %v6304_v60 = vld [vmem:[%s8206_s3 + $0xe40] ss:$16 sps:$4 sm:$0xff]  }
 0x26e   : > { %4830 = vmatpush1.bf16.msra.mxu1 %v6229_v3  ;;  %4503 = vmatprep.subr.bf16.mxu0 %v6234_v14  ;;  %v6307_v3 = vld [vmem:[%s8206_s3 + $0xe48] ss:$16 sps:$4 sm:$0xff]   ;;  %v6312_v14 = vld [vmem:[%s8206_s3 + $0xe64] ss:$16 sps:$4 sm:$0xff]  }
 0x26f   : > { %4831 = vmatprep.subr.bf16.mxu1 %v6237_v15  ;;  %v6315_v15 = vld [vmem:[%s8206_s3 + $0xe6c] ss:$16 sps:$4 sm:$0xff]  }
 0x271   : > { %4504 = vmatpush1.bf16.msra.mxu0 %v6232_v2  ;;  %v6310_v2 = vld [vmem:[%s8206_s3 + $0xe60] ss:$16 sps:$4 sm:$0xff]  }
 0x272   : > { %4832 = vmatpush1.bf16.msra.mxu1 %v6235_v16  ;;  %4505 = vmatprep.subr.bf16.mxu0 %v6240_v17  ;;  %v6313_v16 = vld [vmem:[%s8206_s3 + $0xe68] ss:$16 sps:$4 sm:$0xff]   ;;  %v6318_v17 = vld [vmem:[%s8206_s3 + $0xe84] ss:$16 sps:$4 sm:$0xff]  }
 0x273   : > { %4833 = vmatprep.subr.bf16.mxu1 %v6243_v18  ;;  %v6321_v18 = vld [vmem:[%s8206_s3 + $0xe8c] ss:$16 sps:$4 sm:$0xff]  }
 0x275   : > { %4506 = vmatpush1.bf16.msra.mxu0 %v6238_v19  ;;  %v6316_v19 = vld [vmem:[%s8206_s3 + $0xe80] ss:$16 sps:$4 sm:$0xff]  }
 0x276   : > { %4834 = vmatpush1.bf16.msra.mxu1 %v6241_v20  ;;  %4507 = vmatprep.subr.bf16.mxu0 %v6246_v21  ;;  %v6319_v20 = vld [vmem:[%s8206_s3 + $0xe88] ss:$16 sps:$4 sm:$0xff]   ;;  %v6324_v21 = vld [vmem:[%s8206_s3 + $0xea4] ss:$16 sps:$4 sm:$0xff]  }
 0x277   : > { %4835 = vmatprep.subr.bf16.mxu1 %v6249_v22  ;;  %v6327_v22 = vld [vmem:[%s8206_s3 + $0xeac] ss:$16 sps:$4 sm:$0xff]  }
 0x279   : > { %4508 = vmatpush1.bf16.msra.mxu0 %v6244_v23  ;;  %v6322_v23 = vld [vmem:[%s8206_s3 + $0xea0] ss:$16 sps:$4 sm:$0xff]  }
 0x27a   : > { %4836 = vmatpush1.bf16.msra.mxu1 %v6247_v24  ;;  %4509 = vmatprep.subr.bf16.mxu0 %v6252_v25  ;;  %v6325_v24 = vld [vmem:[%s8206_s3 + $0xea8] ss:$16 sps:$4 sm:$0xff]   ;;  %v6330_v25 = vld [vmem:[%s8206_s3 + $0xec4] ss:$16 sps:$4 sm:$0xff]  }
 0x27b   : > { %4837 = vmatprep.subr.bf16.mxu1 %v6255_v26  ;;  %v6333_v26 = vld [vmem:[%s8206_s3 + $0xecc] ss:$16 sps:$4 sm:$0xff]  }
 0x27d   : > { %4510 = vmatpush1.bf16.msra.mxu0 %v6250_v27  ;;  %v6328_v27 = vld [vmem:[%s8206_s3 + $0xec0] ss:$16 sps:$4 sm:$0xff]  }
 0x27e   : > { %4838 = vmatpush1.bf16.msra.mxu1 %v6253_v28  ;;  %4511 = vmatprep.subr.bf16.mxu0 %v6258_v29  ;;  %v6331_v28 = vld [vmem:[%s8206_s3 + $0xec8] ss:$16 sps:$4 sm:$0xff]   ;;  %v6336_v29 = vld [vmem:[%s8206_s3 + $0xee4] ss:$16 sps:$4 sm:$0xff]  }
 0x27f   : > { %4839 = vmatprep.subr.bf16.mxu1 %v6261_v30  ;;  %v6339_v30 = vld [vmem:[%s8206_s3 + $0xeec] ss:$16 sps:$4 sm:$0xff]  }
 0x281   : > { %4512 = vmatpush1.bf16.msra.mxu0 %v6256_v31  ;;  %v6334_v31 = vld [vmem:[%s8206_s3 + $0xee0] ss:$16 sps:$4 sm:$0xff]  }
 0x282   : > { %4840 = vmatpush1.bf16.msra.mxu1 %v6259_v32  ;;  %4513 = vmatprep.subr.bf16.mxu0 %v6264_v33  ;;  %v6337_v32 = vld [vmem:[%s8206_s3 + $0xee8] ss:$16 sps:$4 sm:$0xff]   ;;  %v6342_v33 = vld [vmem:[%s8206_s3 + $0xf04] ss:$16 sps:$4 sm:$0xff]  }
 0x283   : > { %4841 = vmatprep.subr.bf16.mxu1 %v6267_v34  ;;  %v6345_v34 = vld [vmem:[%s8206_s3 + $0xf0c] ss:$16 sps:$4 sm:$0xff]  }
 0x285   : > { %4514 = vmatpush1.bf16.msra.mxu0 %v6262_v35  ;;  %v6340_v35 = vld [vmem:[%s8206_s3 + $0xf00] ss:$16 sps:$4 sm:$0xff]  }
 0x286   : > { %4842 = vmatpush1.bf16.msra.mxu1 %v6265_v36  ;;  %4515 = vmatprep.subr.bf16.mxu0 %v6270_v37  ;;  %v6343_v36 = vld [vmem:[%s8206_s3 + $0xf08] ss:$16 sps:$4 sm:$0xff]   ;;  %v6348_v37 = vld [vmem:[%s8206_s3 + $0xf24] ss:$16 sps:$4 sm:$0xff]  }
 0x287   : > { %4843 = vmatprep.subr.bf16.mxu1 %v6273_v38  ;;  %v6351_v38 = vld [vmem:[%s8206_s3 + $0xf2c] ss:$16 sps:$4 sm:$0xff]  }
 0x289   : > { %4516 = vmatpush1.bf16.msra.mxu0 %v6268_v40  ;;  %v6346_v40 = vld [vmem:[%s8206_s3 + $0xf20] ss:$16 sps:$4 sm:$0xff]  }
 0x28a   : > { %4844 = vmatpush1.bf16.msra.mxu1 %v6271_v41  ;;  %4517 = vmatprep.subr.bf16.mxu0 %v6276_v42  ;;  %v6349_v41 = vld [vmem:[%s8206_s3 + $0xf28] ss:$16 sps:$4 sm:$0xff]   ;;  %v6354_v42 = vld [vmem:[%s8206_s3 + $0xf44] ss:$16 sps:$4 sm:$0xff]  }
 0x28b   : > { %4845 = vmatprep.subr.bf16.mxu1 %v6279_v43  ;;  %v6357_v43 = vld [vmem:[%s8206_s3 + $0xf4c] ss:$16 sps:$4 sm:$0xff]  }
 0x28d   : > { %4518 = vmatpush1.bf16.msra.mxu0 %v6274_v44  ;;  %v6352_v44 = vld [vmem:[%s8206_s3 + $0xf40] ss:$16 sps:$4 sm:$0xff]  }
 0x28e   : > { %4846 = vmatpush1.bf16.msra.mxu1 %v6277_v45  ;;  %4519 = vmatprep.subr.bf16.mxu0 %v6282_v46  ;;  %v6355_v45 = vld [vmem:[%s8206_s3 + $0xf48] ss:$16 sps:$4 sm:$0xff]   ;;  %v6360_v46 = vld [vmem:[%s8206_s3 + $0xf64] ss:$16 sps:$4 sm:$0xff]  }
 0x28f   : > { %4847 = vmatprep.subr.bf16.mxu1 %v6285_v47  ;;  %v6363_v47 = vld [vmem:[%s8206_s3 + $0xf6c] ss:$16 sps:$4 sm:$0xff]  }
 0x291   : > { %4520 = vmatpush1.bf16.msra.mxu0 %v6280_v48  ;;  %v6358_v48 = vld [vmem:[%s8206_s3 + $0xf60] ss:$16 sps:$4 sm:$0xff]  }
 0x292   : > { %4848 = vmatpush1.bf16.msra.mxu1 %v6283_v12  ;;  %4521 = vmatprep.subr.bf16.mxu0 %v6288_v49  ;;  %v6361_v12 = vld [vmem:[%s8206_s3 + $0xf68] ss:$16 sps:$4 sm:$0xff]   ;;  %v6366_v49 = vld [vmem:[%s8206_s3 + $0xf84] ss:$16 sps:$4 sm:$0xff]  }
 0x293   : > { %4849 = vmatprep.subr.bf16.mxu1 %v6291_v50  ;;  %v6369_v50 = vld [vmem:[%s8206_s3 + $0xf8c] ss:$16 sps:$4 sm:$0xff]  }
 0x295   : > { %4522 = vmatpush1.bf16.msra.mxu0 %v6286_v51  ;;  %v6364_v51 = vld [vmem:[%s8206_s3 + $0xf80] ss:$16 sps:$4 sm:$0xff]  }
 0x296   : > { %4850 = vmatpush1.bf16.msra.mxu1 %v6289_v52  ;;  %4532 = vmatprep.subr.bf16.mxu0 %v6294_v57  ;;  %v6367_v52 = vld [vmem:[%s8206_s3 + $0xf88] ss:$16 sps:$4 sm:$0xff]   ;;  %v6375_v57 = vld [vmem:[%s8206_s3 + $0xfac] ss:$16 sps:$4 sm:$0xff]  }
 0x297   : > { %4860 = vmatprep.subr.bf16.mxu1 %v6297_v61  ;;  %v6370_v61 = vld [vmem:[%s8206_s3 + $0xfa0] ss:$16 sps:$4 sm:$0xff]  }
 0x298   : > { %4524 = vmatmul.mubr.bf16.vlgmr.msra.gmra.mrb[16].mxu0 %v1147_v63 }
 0x299   : > { %4852 = vmatmul.mubr.bf16.vlgmr.msra.gmra.mrb[16].mxu1 %v1147_v63  ;;  %4533 = vmatpush1.bf16.msra.mxu0 %v6292_v62  ;;  %v6378_v62 = vld [vmem:[%s8206_s3 + $0xfc4] ss:$16 sps:$4 sm:$0xff]   ;;  %v6381_v63 = vld [vmem:[%s8206_s3 + $0xfcc] ss:$16 sps:$4 sm:$0xff]  }
 0x29a   : > { %4564 = vmatprep.mubr.bf16.mxu0 %v1150_v5  ;;  %4861 = vmatpush1.bf16.msra.mxu1 %v6295_v0  ;;  %v6376_v0 = vld [vmem:[%s8206_s3 + $0xfc0] ss:$16 sps:$4 sm:$0xff]  }
 0x29b   : > { %4892 = vmatprep.mubr.bf16.mxu1 %v1150_v5  ;;  %4534 = vmatprep.subr.bf16.mxu0 %v6300_v4  ;;  %v6379_v4 = vld [vmem:[%s8206_s3 + $0xfc8] ss:$16 sps:$4 sm:$0xff]   ;;  %v6384_v5 = vld [vmem:[%s8206_s3 + $0xfe4] ss:$16 sps:$4 sm:$0xff]  }
 0x29c   : > { %4862 = vmatprep.subr.bf16.mxu1 %v6303_v13  ;;  %v6387_v13 = vld [vmem:[%s8206_s3 + $0xfec] ss:$16 sps:$4 sm:$0xff]  }
 0x29d   : > { %4535 = vmatpush1.bf16.msra.mxu0 %v6298_v9  ;;  %v6382_v9 = vld [vmem:[%s8206_s3 + $0xfe0] ss:$16 sps:$4 sm:$0xff]  }
 0x29e   : > { %4863 = vmatpush1.bf16.msra.mxu1 %v6301_v10  ;;  %4536 = vmatprep.subr.bf16.mxu0 %v6306_v11  ;;  %v6385_v10 = vld [vmem:[%s8206_s3 + $0xfe8] ss:$16 sps:$4 sm:$0xff]   ;;  %v1114_v11 = vrot.slane %v7385_v8, %v6742_v7 }
 0x29f   : > { %4864 = vmatprep.subr.bf16.mxu1 %v6309_v54 }
 0x2a0   : > { %v1149_v54 = vpack.c.bf16 %v1114_v11, %v1114_v11 }
 0x2a1   : > { %4537 = vmatpush1.bf16.msra.mxu0 %v6304_v60  ;;  %v1663_v60 = vld [vmem:[%s8207_s4] sm:$0xf] }
 0x2a2   : > { %4865 = vmatpush1.bf16.msra.mxu1 %v6307_v3  ;;  %4538 = vmatprep.subr.bf16.mxu0 %v6312_v14  ;;  %v4228_v3 = vrot.slane %v1663_v60, %v6720_v55  ;;  %v4236_v14 = vrot.slane %v1663_v60, %v6723_v56 }
 0x2a3   : > { %4866 = vmatprep.subr.bf16.mxu1 %v6315_v15  ;;  %v4232_v15 = vrot.slane %v1663_v60, %v6729_v58 }
 0x2a5   : > { %4539 = vmatpush1.bf16.msra.mxu0 %v6310_v2  ;;  %v4240_v2 = vrot.slane %v1663_v60, %v6732_v59 }
 0x2a6   : > { %4867 = vmatpush1.bf16.msra.mxu1 %v6313_v16  ;;  %4540 = vmatprep.subr.bf16.mxu0 %v6318_v17 }
 0x2a7   : > { %4868 = vmatprep.subr.bf16.mxu1 %v6321_v18 }
 0x2a9   : > { %4541 = vmatpush1.bf16.msra.mxu0 %v6316_v19 }
 0x2aa   : > { %4869 = vmatpush1.bf16.msra.mxu1 %v6319_v20  ;;  %4542 = vmatprep.subr.bf16.mxu0 %v6324_v21 }
 0x2ab   : > { %4870 = vmatprep.subr.bf16.mxu1 %v6327_v22 }
 0x2ad   : > { %4543 = vmatpush1.bf16.msra.mxu0 %v6322_v23 }
 0x2ae   : > { %4871 = vmatpush1.bf16.msra.mxu1 %v6325_v24  ;;  %4544 = vmatprep.subr.bf16.mxu0 %v6330_v25 }
 0x2af   : > { %4872 = vmatprep.subr.bf16.mxu1 %v6333_v26 }
 0x2b1   : > { %4545 = vmatpush1.bf16.msra.mxu0 %v6328_v27 }
 0x2b2   : > { %4873 = vmatpush1.bf16.msra.mxu1 %v6331_v28  ;;  %4546 = vmatprep.subr.bf16.mxu0 %v6336_v29 }
 0x2b3   : > { %4874 = vmatprep.subr.bf16.mxu1 %v6339_v30 }
 0x2b5   : > { %4547 = vmatpush1.bf16.msra.mxu0 %v6334_v31 }
 0x2b6   : > { %4875 = vmatpush1.bf16.msra.mxu1 %v6337_v32  ;;  %4548 = vmatprep.subr.bf16.mxu0 %v6342_v33 }
 0x2b7   : > { %4876 = vmatprep.subr.bf16.mxu1 %v6345_v34 }
 0x2b9   : > { %4549 = vmatpush1.bf16.msra.mxu0 %v6340_v35 }
 0x2ba   : > { %4877 = vmatpush1.bf16.msra.mxu1 %v6343_v36  ;;  %4550 = vmatprep.subr.bf16.mxu0 %v6348_v37 }
 0x2bb   : > { %4878 = vmatprep.subr.bf16.mxu1 %v6351_v38 }
 0x2bd   : > { %4551 = vmatpush1.bf16.msra.mxu0 %v6346_v40 }
 0x2be   : > { %4879 = vmatpush1.bf16.msra.mxu1 %v6349_v41  ;;  %4552 = vmatprep.subr.bf16.mxu0 %v6354_v42 }
 0x2bf   : > { %4880 = vmatprep.subr.bf16.mxu1 %v6357_v43 }
 0x2c1   : > { %4553 = vmatpush1.bf16.msra.mxu0 %v6352_v44 }
 0x2c2   : > { %4881 = vmatpush1.bf16.msra.mxu1 %v6355_v45  ;;  %4554 = vmatprep.subr.bf16.mxu0 %v6360_v46 }
 0x2c3   : > { %4882 = vmatprep.subr.bf16.mxu1 %v6363_v47 }
 0x2c5   : > { %4555 = vmatpush1.bf16.msra.mxu0 %v6358_v48 }
 0x2c6   : > { %4883 = vmatpush1.bf16.msra.mxu1 %v6361_v12  ;;  %4556 = vmatprep.subr.bf16.mxu0 %v6366_v49 }
 0x2c7   : > { %4884 = vmatprep.subr.bf16.mxu1 %v6369_v50 }
 0x2c9   : > { %4557 = vmatpush1.bf16.msra.mxu0 %v6364_v51 }
 0x2ca   : > { %4885 = vmatpush1.bf16.msra.mxu1 %v6367_v52  ;;  %4558 = vmatprep.subr.bf16.mxu0 %v6372_v53 }
 0x2cb   : > { %4886 = vmatprep.subr.bf16.mxu1 %v6375_v57 }
 0x2cd   : > { %4559 = vmatpush1.bf16.msra.mxu0 %v6370_v61 }
 0x2ce   : > { %4887 = vmatpush1.bf16.msra.mxu1 %v6373_v6  ;;  %4560 = vmatprep.subr.bf16.mxu0 %v6378_v62 }
 0x2cf   : > { %4888 = vmatprep.subr.bf16.mxu1 %v6381_v63 }
 0x2d1   : > { %4561 = vmatpush1.bf16.msra.mxu0 %v6376_v0 }
 0x2d2   : > { %4889 = vmatpush1.bf16.msra.mxu1 %v6379_v4  ;;  %4562 = vmatprep.subr.bf16.mxu0 %v6384_v5 }
 0x2d3   : > { %4890 = vmatprep.subr.bf16.mxu1 %v6387_v13 }
 0x2d5   : > { %4563 = vmatpush1.bf16.msra.mxu0 %v6382_v9 }
 0x2d6   : > { %4891 = vmatpush1.bf16.msra.mxu1 %v6385_v10 }
 0x2d8   : > { %4565 = vmatmul.mubr.bf16.vlgmr.msra.gmra.mrb[16].mxu0 %v1149_v54 }
 0x2d9   : > { %4893 = vmatmul.mubr.bf16.vlgmr.msra.gmra.mrb[16].mxu1 %v1149_v54 }
 0x3ab   : > { %v4566_v7 = vpop.f32.mrb[16].mxu0 }
 0x3ac   : > { %v5528_v8 = vadd.f32 %v4566_v7, %v4228_v3  ;;  %v4894_v16 = vpop.f32.mrb[16].mxu1  ;;  %v4568_v17 = vpop.f32.mrb[17].mxu0 }
 0x3ad   : > { %v5530_v18 = vadd.f32 %v4894_v16, %v4236_v14  ;;  %v5529_v19 = vadd.f32 %v4568_v17, %v4232_v15  ;;  %v4896_v20 = vpop.f32.mrb[17].mxu1  ;;  %v4570_v21 = vpop.f32.mrb[18].mxu0 }
 0x3ae   : > { %v5531_v22 = vadd.f32 %v4896_v20, %v4240_v2  ;;  %v4898_v23 = vpop.f32.mrb[18].mxu1  ;;  %v4571_v24 = vpop.f32.mrb[19].mxu0 }
 0x3af   : > { %v4905_v25 = vcombine.low %v5528_v8, %v5529_v19  ;;  %v4899_v55 = vpop.f32.mrb[19].mxu1 }
 0x3b0   : > { %v4906_v26 = vcombine.low %v5530_v18, %v5531_v22 }
 0x3b1   : > { %v4913_v56 = vrot.slane %v4905_v25, %v6759_v39 }
 0x3b2   : > { %v4920_v58 = vrot.slane %v4906_v26, %v6759_v39 }
 0x3b4   : > { %v4921_v59 = vcombine.low %v4913_v56, %v4920_v58 }
 0x3b6   : > { %v4928_v27 = vrot.slane %v4921_v59, %v6759_v39 }
 0x3b8   : > { %4934 = vst.msk [vmem:[%s242_s13] sm:$0xf] %vm4932_vm4, %v4928_v27 }
 0x3b9 PF: > { %s15_s20 = sadd.s32 1, %s6410_s20   ;;  %s8209_s18 = smov %s6406_s19 }
 0x3ba   : > { %p12_p5 = scmp.ge.s32.totalorder %s15_s20, 10   ;;  %s8210_s19 = smov %s8212_s21 }
 0x3bc   :  { %14 = sbr.rel (!%p12_p5) target bundleno = 2 (0x2), region = 78 }

// kernel: squeeze.2
= control target key start
LH: loop header
LB: loop body
LE: loop exit
PB: predicated region body
PF: predicated region fallthrough
CT: control target
= control target key end

     0   :  { %s133_s0 = inlined_call_operand.vmem [shape: f32[8,512], index: 0, kind: input, shape index: {}]   ;;  %s134_s1 = inlined_call_operand.vmem [shape: f32[2,4,512], index: 1, kind: output, shape index: {}]  }
   0x1   :  { %v2_v0 = vld [vmem:[%s133_s0] sm:$0xff]   ;;  %v77_v1 = vld [vmem:[%s133_s0 + $0x8] sm:$0xff]   ;;  %v78_v2 = vld [vmem:[%s133_s0 + $0x10] sm:$0xff]  }
   0x2   :  { %3 = vst [vmem:[#allocation0] sm:$0xf] %v2_v0   ;;  %5 = vst [vmem:[#allocation0 + $0x1c] sm:$0xf0] %v2_v0   ;;  %v79_v3 = vld [vmem:[%s133_s0 + $0x18] sm:$0xff]  }
   0x3   :  { %9 = vst [vmem:[#allocation0 + $0x8] sm:$0xf] %v77_v1   ;;  %11 = vst [vmem:[#allocation0 + $0x24] sm:$0xf0] %v77_v1  }
   0x4   :  { %15 = vst [vmem:[#allocation0 + $0x10] sm:$0xf] %v78_v2   ;;  %17 = vst [vmem:[#allocation0 + $0x2c] sm:$0xf0] %v78_v2  }
   0x5   :  { %21 = vst [vmem:[#allocation0 + $0x18] sm:$0xf] %v79_v3   ;;  %23 = vst [vmem:[#allocation0 + $0x34] sm:$0xf0] %v79_v3  }
   0x9   :  { %v27_v4 = vld [vmem:[#allocation0] sm:$0xf] }
   0xa   :  { %v31_v5 = vld [vmem:[#allocation0 + $0x8] sm:$0xf]  ;;  %29 = vst [vmem:[%s134_s1] sm:$0xf] %v27_v4  ;;  %v48_v8 = vld [vmem:[#allocation0 + $0x20] sm:$0xf] }
   0xb   :  { %v36_v6 = vld [vmem:[#allocation0 + $0x10] sm:$0xf]  ;;  %80 = vst [vmem:[%s134_s1 + $0x4] sm:$0xf] %v31_v5  ;;  %v54_v9 = vld [vmem:[#allocation0 + $0x28] sm:$0xf] }
   0xc   :  { %81 = vst [vmem:[%s134_s1 + $0x8] sm:$0xf] %v36_v6  ;;  %v42_v7 = vld [vmem:[#allocation0 + $0x18] sm:$0xf]  ;;  %83 = vst [vmem:[%s134_s1 + $0x10] sm:$0xf] %v48_v8 }
   0xd   :  { %82 = vst [vmem:[%s134_s1 + $0xc] sm:$0xf] %v42_v7  ;;  %84 = vst [vmem:[%s134_s1 + $0x14] sm:$0xf] %v54_v9  ;;  %v60_v10 = vld [vmem:[#allocation0 + $0x30] sm:$0xf] }
   0xe   :  { %v66_v11 = vld [vmem:[#allocation0 + $0x38] sm:$0xf]  ;;  %85 = vst [vmem:[%s134_s1 + $0x18] sm:$0xf] %v60_v10 }
   0xf   :  { %86 = vst [vmem:[%s134_s1 + $0x1c] sm:$0xf] %v66_v11 }

// kernel: forward.3
= control target key start
LH: loop header
LB: loop body
LE: loop exit
PB: predicated region body
PF: predicated region fallthrough
CT: control target
= control target key end

     0   :  { %s6810_s6 = smov 1   ;;  %s6811_s10 = smov 2   ;;  %s7680_s0 = inlined_call_operand.smem [shape: u32[43], index: -1, kind: input, shape index: {}] }
   0x1   :  { %s6864_s5 = sld [smem:[%s7680_s0]]   ;;  %s6812_s14 = smov 3  }
   0x2   :  { %s6869_s9 = sld [smem:[%s7680_s0 + %s6810_s6]]   ;;  %s6813_s18 = smov 4  }
   0x3   :  { %s6874_s13 = sld [smem:[%s7680_s0 + %s6811_s10]]   ;;  %s6814_s22 = smov 5  }
   0x4   :  { %s6879_s17 = sld [smem:[%s7680_s0 + %s6812_s14]]   ;;  %s6815_s26 = smov 6  }
   0x5   :  { %s6884_s21 = sld [smem:[%s7680_s0 + %s6813_s18]]   ;;  %s6816_s30 = smov 7  }
   0x6   :  { %s6889_s25 = sld [smem:[%s7680_s0 + %s6814_s22]]   ;;  %s6817_s4 = smov 8  }
   0x7   :  { %7716 = sst [smem:[#allocation5_spill]] %s6864_s5  ;;  %s6818_s10 = smov 9  }
   0x8   :  { %7717 = sst [smem:[#allocation6_spill]] %s6869_s9  ;;  %s6819_s15 = smov 10  }
   0x9   :  { %7718 = sst [smem:[#allocation7_spill]] %s6874_s13  ;;  %s6820_s20 = smov 11  }
   0xa   :  { %7719 = sst [smem:[#allocation8_spill]] %s6879_s17  ;;  %s6822_s1 = smov 13  }
   0xb   :  { %7720 = sst [smem:[#allocation9_spill]] %s6884_s21  ;;  %s6823_s7 = smov 14  }
   0xc   :  { %s6894_s29 = sld [smem:[%s7680_s0 + %s6815_s26]]   ;;  %s6821_s26 = smov 12  }
   0xd   :  { %s6899_s3 = sld [smem:[%s7680_s0 + %s6816_s30]]   ;;  %s6825_s22 = smov 16  }
   0xe   :  { %s6904_s8 = sld [smem:[%s7680_s0 + %s6817_s4]]   ;;  %s6826_s28 = smov 17  }
   0xf   :  { %s6909_s14 = sld [smem:[%s7680_s0 + %s6818_s10]]  }
  0x10   :  { %s6914_s19 = sld [smem:[%s7680_s0 + %s6819_s15]]   ;;  %s6824_s15 = smov 15  }
  0x11   :  { %s6919_s24 = sld [smem:[%s7680_s0 + %s6820_s20]]  }
  0x12   :  { %s6924_s30 = sld [smem:[%s7680_s0 + %s6821_s26]]  }
  0x13   :  { %7721 = sst [smem:[#allocation10_spill]] %s6899_s3 }
  0x14   :  { %7722 = sst [smem:[#allocation11_spill]] %s6904_s8 }
  0x15   :  { %7723 = sst [smem:[#allocation12_spill]] %s6909_s14 }
  0x16   :  { %7724 = sst [smem:[#allocation13_spill]] %s6914_s19 }
  0x17   :  { %7725 = sst [smem:[#allocation14_spill]] %s6919_s24 }
  0x18   :  { %s6929_s6 = sld [smem:[%s7680_s0 + %s6822_s1]]  }
  0x19   :  { %s6934_s12 = sld [smem:[%s7680_s0 + %s6823_s7]]   ;;  %s6827_s7 = smov 18  }
  0x1a   :  { %s6939_s20 = sld [smem:[%s7680_s0 + %s6824_s15]]   ;;  %s6828_s15 = smov 19  }
  0x1b   :  { %s6944_s27 = sld [smem:[%s7680_s0 + %s6825_s22]]   ;;  %s6829_s22 = smov 20  }
  0x1c   :  { %s6949_s4 = sld [smem:[%s7680_s0 + %s6826_s28]]   ;;  %s6830_s28 = smov 21  }
  0x1d   :  { %s6954_s13 = sld [smem:[%s7680_s0 + %s6827_s7]]   ;;  %s6831_s7 = smov 22  }
  0x1e   :  { %7726 = sst [smem:[#allocation15_spill]] %s6929_s6 }
  0x1f   :  { %7727 = sst [smem:[#allocation16_spill]] %s6934_s12 }
  0x20   :  { %7728 = sst [smem:[#allocation17_spill]] %s6939_s20 }
  0x21   :  { %7729 = sst [smem:[#allocation18_spill]] %s6944_s27 }
  0x22   :  { %7730 = sst [smem:[#allocation19_spill]] %s6949_s4 }
  0x23   :  { %7731 = sst [smem:[#allocation20_spill]] %s6954_s13 }
  0x24   :  { %s6959_s12 = sld [smem:[%s7680_s0 + %s6828_s15]]   ;;  %s6832_s15 = smov 23  }
  0x25   :  { %s6964_s27 = sld [smem:[%s7680_s0 + %s6829_s22]]   ;;  %s6833_s22 = smov 24  }
  0x26   :  { %s6969_s4 = sld [smem:[%s7680_s0 + %s6830_s28]]   ;;  %s6834_s28 = smov 25  }
  0x27   :  { %s6974_s13 = sld [smem:[%s7680_s0 + %s6831_s7]]   ;;  %s6835_s7 = smov 26  }
  0x2a   :  { %7732 = sst [smem:[#allocation21_spill]] %s6959_s12 }
  0x2b   :  { %7733 = sst [smem:[#allocation22_spill]] %s6964_s27 }
  0x2c   :  { %7734 = sst [smem:[#allocation23_spill]] %s6969_s4 }
  0x2d   :  { %7735 = sst [smem:[#allocation24_spill]] %s6974_s13 }
  0x2e   :  { %s6979_s12 = sld [smem:[%s7680_s0 + %s6832_s15]]   ;;  %s6836_s15 = smov 27  }
  0x2f   :  { %s6984_s27 = sld [smem:[%s7680_s0 + %s6833_s22]]   ;;  %s6837_s22 = smov 28  }
  0x30   :  { %s6989_s4 = sld [smem:[%s7680_s0 + %s6834_s28]]   ;;  %s6838_s28 = smov 29  }
  0x31   :  { %s6994_s13 = sld [smem:[%s7680_s0 + %s6835_s7]]   ;;  %s6839_s7 = smov 30  }
  0x34   :  { %7736 = sst [smem:[#allocation25_spill]] %s6979_s12 }
  0x35   :  { %7737 = sst [smem:[#allocation26_spill]] %s6984_s27 }
  0x36   :  { %7738 = sst [smem:[#allocation27_spill]] %s6989_s4 }
  0x37   :  { %7739 = sst [smem:[#allocation28_spill]] %s6994_s13 }
  0x38   :  { %s6999_s12 = sld [smem:[%s7680_s0 + %s6836_s15]]   ;;  %s6840_s15 = smov 31  }
  0x39   :  { %s7004_s27 = sld [smem:[%s7680_s0 + %s6837_s22]]   ;;  %s6841_s22 = smov 32  }
  0x3a   :  { %s7009_s4 = sld [smem:[%s7680_s0 + %s6838_s28]]   ;;  %s6842_s28 = smov 33  }
  0x3b   :  { %s7014_s13 = sld [smem:[%s7680_s0 + %s6839_s7]]   ;;  %s6843_s7 = smov 34  }
  0x3e   :  { %7740 = sst [smem:[#allocation29_spill]] %s6999_s12 }
  0x3f   :  { %7741 = sst [smem:[#allocation30_spill]] %s7004_s27 }
  0x40   :  { %7742 = sst [smem:[#allocation31_spill]] %s7009_s4 }
  0x41   :  { %7743 = sst [smem:[#allocation32_spill]] %s7014_s13 }
  0x42   :  { %s7019_s12 = sld [smem:[%s7680_s0 + %s6840_s15]]   ;;  %s6844_s15 = smov 35  }
  0x43   :  { %s7024_s27 = sld [smem:[%s7680_s0 + %s6841_s22]]   ;;  %s6845_s22 = smov 36  }
  0x44   :  { %s7029_s4 = sld [smem:[%s7680_s0 + %s6842_s28]]   ;;  %s6846_s28 = smov 37  }
  0x45   :  { %s7034_s13 = sld [smem:[%s7680_s0 + %s6843_s7]]   ;;  %s6847_s7 = smov 38  }
  0x48   :  { %7744 = sst [smem:[#allocation33_spill]] %s7019_s12 }
  0x49   :  { %7745 = sst [smem:[#allocation34_spill]] %s7024_s27 }
  0x4a   :  { %7746 = sst [smem:[#allocation35_spill]] %s7029_s4 }
  0x4b   :  { %7747 = sst [smem:[#allocation36_spill]] %s7034_s13 }
  0x4c   :  { %s7039_s12 = sld [smem:[%s7680_s0 + %s6844_s15]]   ;;  %s6848_s15 = smov 39  }
  0x4d   :  { %s7044_s27 = sld [smem:[%s7680_s0 + %s6845_s22]]   ;;  %s6849_s22 = smov 40  }
  0x4e   :  { %s7049_s4 = sld [smem:[%s7680_s0 + %s6846_s28]]   ;;  %s6850_s28 = smov 41  }
  0x4f   :  { %s7054_s13 = sld [smem:[%s7680_s0 + %s6847_s7]]   ;;  %s6851_s7 = smov 42  }
  0x52   :  { %7748 = sst [smem:[#allocation37_spill]] %s7039_s12 }
  0x53   :  { %7749 = sst [smem:[#allocation38_spill]] %s7044_s27 }
  0x54   :  { %7750 = sst [smem:[#allocation39_spill]] %s7049_s4 }
  0x55   :  { %7751 = sst [smem:[#allocation40_spill]] %s7054_s13 }
  0x56   :  { %s7059_s12 = sld [smem:[%s7680_s0 + %s6848_s15]]  }
  0x57   :  { %s7064_s27 = sld [smem:[%s7680_s0 + %s6849_s22]]  }
  0x58   :  { %s7069_s4 = sld [smem:[%s7680_s0 + %s6850_s28]]  }
  0x59   :  { %s7074_s13 = sld [smem:[%s7680_s0 + %s6851_s7]]  }
  0x5c   :  { %7752 = sst [smem:[#allocation41_spill]] %s7059_s12 }
  0x5e   :  { %7753 = sst [smem:[#allocation42_spill]] %s7069_s4 }
  0x5f   :  { %90 = vsyncpa [#allocation3], 0 }
  0x60   :  { %92 = vsyncpa [#allocation3 + $0x1], 0  ;;  %s7076_s15 = smov 0   ;;  %s7078_s16 = smov 0  }
  0x61   :  { %s7080_s18 = smov 0   ;;  %s7082_s22 = smov 0  }
  0x62 LB: > { %s7754_s24 = sld [smem:[#allocation14_spill]]  ;;  %s7755_s20 = sld [smem:[#allocation17_spill]]  ;;  %s6796_s15 = sphi %s7076_s15, %s7794_s15   ;;  %s6808_s22 = sphi %s7082_s22, %s7797_s22   ;;  %s6804_s18 = sphi %s7080_s18, %s7796_s18   ;;  %s6800_s16 = sphi %s7078_s16, %s7795_s16  }
  0x63   : > { %s7756_s14 = sld [smem:[#allocation12_spill]]  ;;  %s7757_s8 = sld [smem:[#allocation11_spill]] }
  0x64   : > { %s7758_s6 = sld [smem:[#allocation15_spill]]  ;;  %s7097_s0 = sadd.s32 4294967295, %s6808_s22  }
  0x65   : > { %s5501_s23 = sadd.s32 4294967294, %s6808_s22   ;;  %s7101_s26 = sadd.s32 1, %s6808_s22  }
  0x66   : > { %s1002_s28 = sadd.s32 1, %s6804_s18  ;;  %s999_s1 = ssub.s32 %s6808_s22, %s7101_s26 }
  0x67   : > { %p1012_p0 = scmp.ne.s32.totalorder %s6804_s18, %s6800_s16  ;;  %p1000_p1 = scmp.eq.s32.totalorder %s999_s1, 0 }
  0x68   : > { %p1013_p2 = scmp.eq.s32.totalorder %s7097_s0, 1  ;;  %p1018_p3 = scmp.ne.s32.totalorder %s6800_s16, %s6796_s15 }
  0x69   : > { %p1019_p4 = scmp.eq.s32.totalorder %s5501_s23, 1  ;;  %p5504_p7 = scmp.ge.s32.totalorder %s6808_s22, 1 }
  0x6a   : > { %s7112_s2 = scalar_select %p1000_p1, %s6804_s18, %s1002_s28  }
  0x6b   : > { %p7114_p5 = por %p1013_p2, %p1012_p0  ;;  %p7118_p6 = por %p1019_p4, %p1018_p3 }
  0x6c   : > { %p1177_p8 = scmp.lt.s32.totalorder %s6808_s22, 3 }
  0x6e   : > { %p1178_p9 = pnand %p5504_p7, %p1177_p8 }
  0x6f   : > { %s7761_s21 = sld [smem:[#allocation9_spill]] (!%p1178_p9)  ;;  %s7762_s17 = sld [smem:[#allocation8_spill]] (!%p1178_p9)  ;;  %vm1320_vm0 = vcmask (!%p1178_p9), 1043456   ;;  %vm1502_vm1 = vcmask (!%p1178_p9), 1042432   ;;  %vm1313_vm2 = vcmask (!%p1178_p9), 31744   ;;  %vm1495_vm3 = vcmask (!%p1178_p9), 23552  }
  0x70   : > { %1181 = sbr.rel (%p1178_p9) target bundleno = 7210 (0x1c2a), region = 188  ;;  %s7763_s5 = sld [smem:[#allocation5_spill]] (!%p1178_p9)  ;;  %v1401_v6 = vld [vmem:[%s6894_s29] sm:$0xff] (!%p1178_p9)  ;;  %v1402_v7 = vld [vmem:[%s6894_s29 + $0x8] sm:$0xff] (!%p1178_p9)  ;;  %vm1410_vm4 = vcmask (!%p1178_p9), 130048   ;;  %v1583_v24 = vld [vmem:[%s7757_s8 + $0x10] sm:$0xff] (!%p1178_p9) }
  0x71   : > { %s7764_s9 = sld [smem:[#allocation6_spill]] (!%p1178_p9)  ;;  %p1287_p10 = scmp.lt.s32.totalorder (!%p1178_p9), %s7097_s0, 1  ;;  %v6329_v8 = vpack.c.bf16 (!%p1178_p9), %v1402_v7, %v1401_v6  ;;  %v1585_v9 = vld [vmem:[%s7756_s14] sm:$0xff] (!%p1178_p9)  ;;  %v1586_v10 = vld [vmem:[%s7756_s14 + $0x8] sm:$0xff] (!%p1178_p9)  ;;  %v1584_v25 = vld [vmem:[%s7757_s8 + $0x18] sm:$0xff] (!%p1178_p9)  ;;  %vm1668_vm5 = vcmask (!%p1178_p9), 261120  }
  0x72   : > { %v6333_v11 = vpack.c.bf16 (!%p1178_p9), %v1586_v10, %v1585_v9  ;;  %v5510_v12 = vld [vmem:[%s6889_s25] ss:$0 sm:$0xff] (!%p1178_p9)  ;;  %v1582_v18 = vld [vmem:[%s7757_s8 + $0x8] sm:$0xff] (!%p1178_p9)  ;;  %s7765_s3 = sld [smem:[#allocation10_spill]] (!%p1178_p9)  ;;  %s7766_s19 = sld [smem:[#allocation13_spill]] (!%p1178_p9)  ;;  %v6341_v26 = vpack.c.bf16 (!%p1178_p9), %v1584_v25, %v1583_v24  ;;  %v1850_v46 = vld [vmem:[%s7758_s6 + $0x10] sm:$0xff] (!%p1178_p9) }
  0x73   : > { %6330 = vmatprep.subr.bf16.mxu1 (!%p1178_p9), %v6329_v8  ;;  %v1581_v17 = vld [vmem:[%s7757_s8] sm:$0xff] (!%p1178_p9)  ;;  %v1849_v42 = vld [vmem:[%s7758_s6 + $0x8] sm:$0xff] (!%p1178_p9)  ;;  %v1851_v47 = vld [vmem:[%s7758_s6 + $0x18] sm:$0xff] (!%p1178_p9)  ;;  %v6852_v7 = vmov (!%p1178_p9), 0.0|0.0   ;;  %vm6853_vm6 = vmmov (!%p1178_p9), 0   ;;  %s7776_s8 = sld [smem:[#allocation28_spill]] (!%p1178_p9) }
  0x74   : > { %6332 = vmatpush3.bf16.msra.mxu1 (!%p1178_p9), %v6329_v8  ;;  %v6337_v21 = vpack.c.bf16 (!%p1178_p9), %v1582_v18, %v1581_v17  ;;  %v1761_v34 = vld [vmem:[%s7754_s24] sm:$0xff] (!%p1178_p9)  ;;  %v1762_v48 = vld [vmem:[%s7754_s24 + $0x8] sm:$0xff] (!%p1178_p9)  ;;  %v6353_v49 = vpack.c.bf16 (!%p1178_p9), %v1851_v47, %v1850_v46  ;;  %v1846_v56 = vld [vmem:[%s6924_s30 + $0x10] sm:$0xff] (!%p1178_p9)  ;;  %v6854_v8 = vmov (!%p1178_p9), 0.0   ;;  %s7780_s14 = sld [smem:[#allocation30_spill]] (!%p1178_p9)  ;;  %vm3147_vm7 = vcmask (!%p1178_p9), 27648  }
  0x75   : > { %v1305_v0 = vld [vmem:[%s7761_s21] sm:$0xf] (!%p1178_p9)  ;;  %6334 = vmatprep.subr.bf16.mxu1 (!%p1178_p9), %v6333_v11  ;;  %v1845_v51 = vld [vmem:[%s6924_s30 + $0x8] sm:$0xff] (!%p1178_p9)  ;;  %v1847_v57 = vld [vmem:[%s6924_s30 + $0x18] sm:$0xff] (!%p1178_p9)  ;;  %s7784_s21 = sld [smem:[#allocation33_spill]] (!%p1178_p9)  ;;  %s7786_s24 = sld [smem:[#allocation36_spill]] (!%p1178_p9) }
  0x76   : > { %5977 = vmatprep.subr.msk.mxu0 (!%p1178_p9), %vm1320_vm0, %v1305_v0  ;;  %v1494_v1 = vld [vmem:[%s7762_s17] sm:$0x7] (!%p1178_p9)  ;;  %v2026_v54 = vld [vmem:[%s7755_s20 + $0x8] sm:$0xff] (!%p1178_p9)  ;;  %v6361_v60 = vpack.c.bf16 (!%p1178_p9), %v1847_v57, %v1846_v56  ;;  %v2027_v61 = vld [vmem:[%s7755_s20 + $0x10] sm:$0xff] (!%p1178_p9)  ;;  %s7781_s17 = sld [smem:[#allocation34_spill]] (!%p1178_p9)  ;;  %vm4658_vm8 = vcmask (!%p1178_p9), 257024  }
  0x77   : > { %5978 = vmatpush3.msk.msra.mxu0 %vm1320_vm0, %v1305_v0  ;;  %s7130_s11 = scalar_select %p1287_p10, %s7097_s0, 1  ;;  %v1848_v41 = vld [vmem:[%s7758_s6] sm:$0xff]  ;;  %v2028_v62 = vld [vmem:[%s7755_s20 + $0x18] sm:$0xff] }
  0x78   : > { %5989 = vmatprep.subr.msk.mxu0 %vm1502_vm1, %v1494_v1  ;;  %v5514_v27 = vld [vmem:[%s7765_s3] ss:$0 sm:$0xff]  ;;  %v6349_v45 = vpack.c.bf16 %v1849_v42, %v1848_v41  ;;  %v6369_v63 = vpack.c.bf16 %v2028_v62, %v2027_v61  ;;  %s7773_s3 = sld [smem:[#allocation21_spill]]  ;;  %s7775_s6 = sld [smem:[#allocation23_spill]] }
  0x79   : > { %s5670_s23 = sshll.u32 %s7130_s11, 4  ;;  %v5524_v35 = vld [vmem:[%s7766_s19] ss:$0 sm:$0xff]  ;;  %s7782_s19 = sld [smem:[#allocation31_spill]] }
  0x7a   : > { %s1291_s28 = scalar_lea.vmem %s7763_s5, %s5670_s23  ;;  %s1296_s1 = scalar_lea.vmem %s7764_s9, %s5670_s23  ;;  %v1844_v50 = vld [vmem:[%s6924_s30] sm:$0xff] }
  0x7b   : > { %v1301_v2 = vld [vmem:[%s1291_s28] sm:$0xff]  ;;  %v1302_v3 = vld [vmem:[%s1291_s28 + $0x8] sm:$0xff]  ;;  %v6357_v52 = vpack.c.bf16 %v1845_v51, %v1844_v50  ;;  %s7767_s23 = sld [smem:[#allocation16_spill]]  ;;  %s7768_s28 = sld [smem:[#allocation18_spill]] }
  0x7c   : > { %5979 = vmatprep.mubr.msk.f32.mxu0 %vm1313_vm2, %v1301_v2  ;;  %v1304_v4 = vld [vmem:[%s1296_s1 + $0x8] sm:$0xff]  ;;  %v1303_v5 = vld [vmem:[%s1296_s1] sm:$0xff]  ;;  %s7769_s1 = sld [smem:[#allocation20_spill]]  ;;  %s7774_s5 = sld [smem:[#allocation26_spill]] }
  0x7d   : > { %5980 = vmatmul.mubr.msk.f32.vlgmr.msra.gmra.mrb[0].mxu0 %vm1313_vm2, %v1302_v3  ;;  %v2025_v53 = vld [vmem:[%s7755_s20] sm:$0xff]  ;;  %s7778_s9 = sld [smem:[#allocation25_spill]]  ;;  %s7783_s20 = sld [smem:[#allocation32_spill]] }
  0x7e   : > { %5990 = vmatpush3.msk.msra.mxu0 %vm1502_vm1, %v1494_v1  ;;  %5991 = vmatprep.mubr.msk.f32.mxu0 %vm1495_vm3, %v1303_v5  ;;  %v6365_v55 = vpack.c.bf16 %v2026_v54, %v2025_v53  ;;  %s7792_s12 = sld [smem:[#allocation41_spill]]  ;;  %s7793_s4 = sld [smem:[#allocation42_spill]] }
  0x81   : > { %5992 = vmatmul.mubr.msk.f32.vlgmr.msra.gmra.mrb[2].mxu0 %vm1495_vm3, %v1304_v4  ;;  %v5531_v0 = vld [vmem:[%s7767_s23] ss:$0 sm:$0xff]  ;;  %s7770_s23 = sld [smem:[#allocation19_spill]] }
  0x82   : > { %6016 = vmatprep.mubr.msk.f32.mxu0 %vm1410_vm4, %v1761_v34  ;;  %v5532_v9 = vld [vmem:[%s7768_s28] ss:$0 sm:$0xff]  ;;  %v5539_v17 = vld [vmem:[%s7769_s1 + $0x28] sm:$0xff]  ;;  %v5540_v25 = vld [vmem:[%s7769_s1 + $0x30] sm:$0xff]  ;;  %s7771_s28 = sld [smem:[#allocation22_spill]] }
  0x83   : > { %v2193_v18 = vld [vmem:[%s7769_s1] sm:$0xff]  ;;  %v5549_v41 = vld [vmem:[%s7769_s1 + $0x58] sm:$0xff]  ;;  %v5555_v46 = vld [vmem:[%s7769_s1 + $0x70] sm:$0xff] }
  0x84   : > { %v5553_v42 = vld [vmem:[%s7769_s1 + $0x60] sm:$0xff]  ;;  %v5556_v47 = vld [vmem:[%s7769_s1 + $0x78] sm:$0xff] }
  0x88   : > { %v2742_v61 = vld [vmem:[%s7771_s28 + $0x10] sm:$0xff]  ;;  %v2743_v62 = vld [vmem:[%s7771_s28 + $0x18] sm:$0xff] }
 0x150   : > { %v5981_v13 = vpop.f32.mrb[0].mxu0 }
 0x151   : > { %v1396_v14 = vadd.f32 %v5981_v13, %v5510_v12  ;;  %v1390_v15 = vpop.f32.mrb[1].mxu0 }
 0x152   : > { %v1391_v16 = vadd.f32 %v5510_v12, %v1390_v15 }
 0x153   : > { %v1400_v20 = vmax.f32 %v1396_v14, 0.0 }
 0x154   : > { %v1399_v19 = vmax.f32 %v1391_v16, 0.0  ;;  %v5993_v22 = vpop.f32.mrb[2].mxu0  ;;  %v5538_v16 = vld [vmem:[%s7769_s1 + $0x20] sm:$0xff] }
 0x155   : > { %v1572_v23 = vpop.f32.mrb[3].mxu0 }
 0x156   : > { %5986 = vmatprep.mubr.msk.f32.mxu1 %vm1410_vm4, %v1399_v19  ;;  %v2194_v19 = vld [vmem:[%s7769_s1 + $0x8] sm:$0xff] }
 0x157   : > { %5987 = vmatmul.mubr.msk.f32.vlgmr.msra.gmra.mrb[0].mxu1 %vm1410_vm4, %v1400_v20  ;;  %v6386_v24 = vpack.c.bf16 %v2194_v19, %v2193_v18 }
 0x158   : > { %6336 = vmatpush3.bf16.msra.mxu1 %v6333_v11  ;;  %5998 = vmatprep.mubr.msk.f32.mxu1 %vm1410_vm4, %v1572_v23  ;;  %v6380_v23 = vpack.c.bf16 %v5539_v17, %v5538_v16 }
 0x159   : > { %6338 = vmatprep.subr.bf16.mxu1 %v6337_v21 }
 0x15b   : > { %5999 = vmatmul.mubr.msk.f32.vlgmr.msra.gmra.mrb[2].mxu1 %vm1410_vm4, %v5993_v22  ;;  %v5536_v22 = vld [vmem:[%s7770_s23 + $0x4] sm:$0xf] }
 0x15c   : > { %6340 = vmatpush3.bf16.msra.mxu1 %v6337_v21  ;;  %v2119_v21 = vld [vmem:[%s7770_s23] sm:$0xf] }
 0x15d   : > { %6342 = vmatprep.subr.bf16.mxu1 %v6341_v26 }
 0x160   : > { %6344 = vmatpush3.bf16.msra.mxu1 %v6341_v26  ;;  %v5541_v26 = vld [vmem:[%s7769_s1 + $0x38] sm:$0xff] }
 0x161   : > { %6366 = vmatprep.subr.bf16.mxu1 %v6365_v55 }
 0x22a   : > { %v5988_v28 = vpop.f32.mrb[0].mxu1 }
 0x22b   : > { %v1489_v29 = vadd.f32 %v5988_v28, %v5514_v27  ;;  %v1483_v30 = vpop.f32.mrb[1].mxu1  ;;  %v2196_v28 = vld [vmem:[%s7769_s1 + $0x18] sm:$0xff] }
 0x22c   : > { %v1484_v31 = vadd.f32 %v5514_v27, %v1483_v30  ;;  %v2195_v27 = vld [vmem:[%s7769_s1 + $0x10] sm:$0xff] }
 0x22d   : > { %v1493_v33 = vmax.f32 %v1489_v29, 0.0  ;;  %v6383_v29 = vpack.c.bf16 %v5541_v26, %v5540_v25  ;;  %v6389_v30 = vpack.c.bf16 %v2196_v28, %v2195_v27  ;;  %v2991_v25 = vld [vmem:[%s7776_s8 + $0x8] sm:$0xff] }
 0x22e   : > { %v1492_v32 = vmax.f32 %v1484_v31, 0.0  ;;  %v5546_v31 = vld [vmem:[%s7769_s1 + $0x40] sm:$0xff] }
 0x230   : > { %6009 = vmatprep.mubr.msk.f32.mxu1 %vm1668_vm5, %v1492_v32  ;;  %v5547_v32 = vld [vmem:[%s7769_s1 + $0x48] sm:$0xff] }
 0x231   : > { %6010 = vmatmul.mubr.msk.f32.vlgmr.msra.gmra.mrb[2].mxu1 %vm1668_vm5, %v1493_v33  ;;  %v6395_v33 = vpack.c.bf16 %v5547_v32, %v5546_v31  ;;  %v2992_v31 = vld [vmem:[%s7776_s8 + $0x10] sm:$0xff]  ;;  %v2993_v32 = vld [vmem:[%s7776_s8 + $0x18] sm:$0xff] }
 0x232   : > { %6368 = vmatpush3.bf16.msra.mxu1 %v6365_v55 }
 0x233   : > { %6370 = vmatprep.subr.bf16.mxu1 %v6369_v63 }
 0x236   : > { %6372 = vmatpush3.bf16.msra.mxu1 %v6369_v63  ;;  %v6413_v63 = vpack.c.bf16 %v2743_v62, %v2742_v61  ;;  %v3334_v62 = vld [vmem:[%s7781_s17] sm:$0xff] }
 0x237   : > { %6373 = vmatprep.subr.bf16.mxu1 %v6852_v7 }
 0x304   : > { %v6011_v36 = vpop.f32.mrb[2].mxu1 }
 0x305   : > { %v1758_v37 = vadd.f32 %v6011_v36, %v5524_v35  ;;  %v1741_v38 = vpop.f32.mrb[3].mxu1 }
 0x306   : > { %v1757_v39 = vadd.f32 %v5524_v35, %v1741_v38  ;;  %v5544_v38 = vld [vmem:[%s7770_s23 + $0x8] sm:$0xf] }
 0x307   : > { %v1760_v40 = vmax.f32 %v1758_v37, 0.0 }
 0x308   : > { %v1759_v43 = vmax.f32 %v1757_v39, 0.0  ;;  %v5551_v39 = vld [vmem:[%s7770_s23 + $0xc] sm:$0xf]  ;;  %s7785_s23 = sld [smem:[#allocation35_spill]] }
 0x30a   : > { %v6345_v44 = vpack.c.bf16 %v1760_v40, %v1759_v43 }
 0x30c   : > { %6346 = vmatprep.subr.bf16.mxu0 %v6345_v44 }
 0x30d   : > { %6348 = vmatpush3.bf16.msra.mxu0 %v6345_v44  ;;  %v5554_v44 = vld [vmem:[%s7769_s1 + $0x68] sm:$0xff] }
 0x30e   : > { %6350 = vmatprep.subr.bf16.mxu0 %v6349_v45 }
 0x310   : > { %6017 = vmatmul.mubr.msk.f32.vlgmr.msra.gmra.mrb[4].mxu0 %vm1410_vm4, %v1762_v48  ;;  %v6407_v48 = vpack.c.bf16 %v5556_v47, %v5555_v46 }
 0x311   : > { %6352 = vmatpush3.bf16.msra.mxu0 %v6349_v45  ;;  %v6404_v45 = vpack.c.bf16 %v5554_v44, %v5553_v42 }
 0x312   : > { %6354 = vmatprep.subr.bf16.mxu0 %v6353_v49 }
 0x315   : > { %6356 = vmatpush3.bf16.msra.mxu0 %v6353_v49 }
 0x316   : > { %6358 = vmatprep.subr.bf16.mxu0 %v6357_v52 }
 0x3e3   : > { %v6018_v58 = vpop.f32.mrb[4].mxu0 }
 0x3e4   : > { %v1835_v59 = vpop.f32.mrb[5].mxu0 }
 0x3e5   : > { %6027 = vmatprep.mubr.msk.f32.mxu0 %vm1668_vm5, %v1835_v59  ;;  %v2741_v59 = vld [vmem:[%s7771_s28 + $0x8] sm:$0xff] }
 0x3e6   : > { %6028 = vmatmul.mubr.msk.f32.vlgmr.msra.gmra.mrb[6].mxu0 %vm1668_vm5, %v6018_v58  ;;  %v2740_v58 = vld [vmem:[%s7771_s28] sm:$0xff] }
 0x3e7   : > { %6360 = vmatpush3.bf16.msra.mxu0 %v6357_v52  ;;  %6038 = vmatprep.mubr.msk.f32.mxu0 %vm1668_vm5, %v1759_v43 }
 0x3e8   : > { %6362 = vmatprep.subr.bf16.mxu0 %v6361_v60 }
 0x3eb   : > { %6364 = vmatpush3.bf16.msra.mxu0 %v6361_v60  ;;  %v6410_v60 = vpack.c.bf16 %v2741_v59, %v2740_v58 }
 0x3ec   : > { %6376 = vmatprep.subr.bf16.mxu0 %v6852_v7 }
 0x3ee   : > { %6039 = vmatmul.mubr.msk.f32.vlgmr.msra.gmra.mrb[6].mxu0 %vm1668_vm5, %v1760_v40  ;;  %v5548_v40 = vld [vmem:[%s7769_s1 + $0x50] sm:$0xff]  ;;  %s7772_s1 = sld [smem:[#allocation24_spill]] }
 0x3ef   : > { %6063 = vmatprep.mubr.msk.f32.mxu0 %vm6853_vm6, %v6854_v8  ;;  %v6398_v43 = vpack.c.bf16 %v5549_v41, %v5548_v40 }
 0x3f4   : > { %v2827_v17 = vld [vmem:[%s7772_s1 + $0x10] sm:$0xff]  ;;  %v2828_v18 = vld [vmem:[%s7772_s1 + $0x18] sm:$0xff] }
 0x3f5   : > { %v6419_v19 = vpack.c.bf16 %v2828_v18, %v2827_v17  ;;  %v5585_v18 = vld [vmem:[%s7774_s5 + $0x20] sm:$0xff] }
 0x4c1   : > { %v6040_v1 = vpop.f32.mrb[6].mxu0 }
 0x4c2   : > { %v2022_v2 = vadd.f32 %v6040_v1, %v5531_v0  ;;  %v2005_v3 = vpop.f32.mrb[7].mxu0  ;;  %v2826_v1 = vld [vmem:[%s7772_s1 + $0x8] sm:$0xff] }
 0x4c3   : > { %v2021_v4 = vadd.f32 %v5531_v0, %v2005_v3  ;;  %v2825_v0 = vld [vmem:[%s7772_s1] sm:$0xff] }
 0x4c4   : > { %v2024_v6 = vmax.f32 %v2022_v2, 0.0  ;;  %v6416_v2 = vpack.c.bf16 %v2826_v1, %v2825_v0  ;;  %v3336_v1 = vld [vmem:[%s7781_s17 + $0x10] sm:$0xff] }
 0x4c5   : > { %v2023_v5 = vmax.f32 %v2021_v4, 0.0 }
 0x4c7   : > { %6049 = vmatprep.mubr.msk.f32.mxu1 %vm1668_vm5, %v2023_v5 }
 0x4c8   : > { %6050 = vmatmul.mubr.msk.f32.vlgmr.msra.gmra.mrb[4].mxu1 %vm1668_vm5, %v2024_v6 }
 0x4c9   : > { %6056 = vmatprep.mubr.msk.f32.mxu1 %vm6853_vm6, %v6854_v8 }
 0x59b   : > { %v6051_v10 = vpop.f32.mrb[4].mxu1 }
 0x59c   : > { %v2114_v11 = vadd.f32 %v6051_v10, %v5532_v9  ;;  %v2108_v12 = vpop.f32.mrb[5].mxu1 }
 0x59d   : > { %v2109_v13 = vadd.f32 %v5532_v9, %v2108_v12  ;;  %v5558_v9 = vld [vmem:[%s7773_s3] ss:$0 sm:$0xff]  ;;  %s7777_s3 = sld [smem:[#allocation27_spill]] }
 0x59e   : > { %v2118_v14 = vmax.f32 %v2114_v11, 0.0  ;;  %v2909_v12 = vld [vmem:[%s7774_s5] sm:$0xff] }
 0x59f   : > { %v2117_v15 = vmax.f32 %v2109_v13, 0.0  ;;  %v2910_v13 = vld [vmem:[%s7774_s5 + $0x8] sm:$0xff] }
 0x5a1   : > { %v6374_v20 = vpack.c.bf16 %v2118_v14, %v2117_v15  ;;  %v6422_v15 = vpack.c.bf16 %v2910_v13, %v2909_v12 }
 0x5a3   : > { %6375 = vmatpush3.bf16.msra.mxu1 %v6374_v20  ;;  %6378 = vmatpush3.bf16.msra.mxu0 %v6374_v20 }
 0x5a4   : > { %6379 = vmatprep.subr.bf16.mxu1 %v6852_v7  ;;  %6385 = vmatprep.subr.bf16.mxu0 %v6852_v7 }
 0x5a6   : > { %6057 = vmatmul.mubr.msk.f32.vlgmr.msra.gmra.mrb[6].mxu1 %vm1410_vm4, %v2119_v21  ;;  %6064 = vmatmul.mubr.msk.f32.vlgmr.msra.gmra.mrb[8].mxu0 %vm1410_vm4, %v5536_v22  ;;  %v2912_v21 = vld [vmem:[%s7774_s5 + $0x18] sm:$0xff] }
 0x5a7   : > { %6381 = vmatpush3.bf16.msra.mxu1 %v6380_v23  ;;  %6387 = vmatpush3.bf16.msra.mxu0 %v6386_v24  ;;  %v5559_v23 = vld [vmem:[%s7775_s6] ss:$0 sm:$0xff]  ;;  %s7779_s6 = sld [smem:[#allocation29_spill]] }
 0x5a8   : > { %6382 = vmatprep.subr.bf16.mxu1 %v6852_v7  ;;  %6388 = vmatprep.subr.bf16.mxu0 %v6852_v7  ;;  %v2990_v24 = vld [vmem:[%s7776_s8] sm:$0xff] }
 0x5a9   : > { %6074 = vmatprep.mubr.msk.f32.mxu1 %vm6853_vm6, %v6854_v8  ;;  %6085 = vmatprep.mubr.msk.f32.mxu0 %vm6853_vm6, %v6854_v8 }
 0x5ab   : > { %6384 = vmatpush3.bf16.msra.mxu1 %v6383_v29  ;;  %6390 = vmatpush3.bf16.msra.mxu0 %v6389_v30  ;;  %v6428_v29 = vpack.c.bf16 %v2991_v25, %v2990_v24  ;;  %v5587_v24 = vld [vmem:[%s7774_s5 + $0x30] sm:$0xff]  ;;  %v5588_v25 = vld [vmem:[%s7774_s5 + $0x38] sm:$0xff] }
 0x5ac   : > { %6391 = vmatprep.subr.bf16.mxu1 %v6852_v7  ;;  %6394 = vmatprep.subr.bf16.mxu0 %v6852_v7 }
 0x5ad   : > { %v5565_v42 = vld [vmem:[%s7779_s6] ss:$0 sm:$0xff] }
 0x679   : > { %v2189_v34 = vpop.f32.mrb[6].mxu1  ;;  %v2268_v35 = vpop.f32.mrb[8].mxu0 }
 0x67a   : > { %v6065_v36 = vpop.f32.mrb[9].mxu0  ;;  %6075 = vmatmul.mubr.msk.f32.vlgmr.msra.gmra.mrb[8].mxu1 %vm1668_vm5, %v2268_v35  ;;  %6086 = vmatmul.mubr.msk.f32.vlgmr.msra.gmra.mrb[10].mxu0 %vm1668_vm5, %v2189_v34  ;;  %v6058_v37 = vpop.f32.mrb[7].mxu1  ;;  %v5563_v34 = vld [vmem:[%s7777_s3] ss:$0 sm:$0xff] }
 0x67b   : > { %6393 = vmatpush3.bf16.msra.mxu1 %v6374_v20  ;;  %6092 = vmatprep.mubr.msk.f32.mxu1 %vm6853_vm6, %v6854_v8  ;;  %v5561_v37 = vld [vmem:[%s7778_s9] ss:$0 sm:$0xff] }
 0x67c   : > { %6400 = vmatprep.subr.bf16.mxu1 %v6852_v7  ;;  %6396 = vmatpush3.bf16.msra.mxu0 %v6395_v33  ;;  %v6431_v33 = vpack.c.bf16 %v2993_v32, %v2992_v31  ;;  %v5592_v32 = vld [vmem:[%s7776_s8 + $0x20] sm:$0xff] }
 0x67d   : > { %6397 = vmatprep.subr.bf16.mxu0 %v6852_v7  ;;  %6103 = vmatprep.mubr.msk.f32.mxu0 %vm6853_vm6, %v6854_v8 }
 0x67e   : > { %6093 = vmatmul.mubr.msk.f32.vlgmr.msra.gmra.mrb[10].mxu1 %vm1410_vm4, %v5544_v38 }
 0x67f   : > { %6402 = vmatpush3.bf16.msra.mxu1 %v6374_v20  ;;  %6110 = vmatprep.mubr.msk.f32.mxu1 %vm6853_vm6, %v6854_v8  ;;  %v2911_v20 = vld [vmem:[%s7774_s5 + $0x10] sm:$0xff] }
 0x680   : > { %6403 = vmatprep.subr.bf16.mxu1 %v6852_v7  ;;  %6399 = vmatpush3.bf16.msra.mxu0 %v6398_v43  ;;  %v6425_v22 = vpack.c.bf16 %v2912_v21, %v2911_v20  ;;  %v5580_v21 = vld [vmem:[%s7772_s1 + $0x30] sm:$0xff] }
 0x681   : > { %6409 = vmatprep.subr.bf16.mxu0 %v6852_v7 }
 0x682   : > { %6111 = vmatmul.mubr.msk.f32.vlgmr.msra.gmra.mrb[12].mxu1 %vm1410_vm4, %v5551_v39 }
 0x683   : > { %6121 = vmatprep.mubr.msk.f32.mxu1 %vm6853_vm6, %v6854_v8  ;;  %6405 = vmatpush3.bf16.msra.mxu1 %v6404_v45 }
 0x684   : > { %6406 = vmatprep.subr.bf16.mxu1 %v6852_v7 }
 0x687   : > { %6408 = vmatpush3.bf16.msra.mxu1 %v6407_v48 }
 0x688   : > { %6415 = vmatprep.subr.bf16.mxu1 %v6852_v7 }
 0x74d   : > { %v2346_v49 = vpop.f32.mrb[8].mxu1  ;;  %v2419_v50 = vpop.f32.mrb[10].mxu0 }
 0x74e   : > { %v2420_v51 = vadd.f32 %v2419_v50, %v2346_v49  ;;  %v6076_v52 = vpop.f32.mrb[9].mxu1  ;;  %v6087_v53 = vpop.f32.mrb[11].mxu0 }
 0x751   : > { %v2494_v54 = vpop.f32.mrb[10].mxu1 }
 0x752   : > { %v6094_v55 = vpop.f32.mrb[11].mxu1  ;;  %6104 = vmatmul.mubr.msk.f32.vlgmr.msra.gmra.mrb[12].mxu0 %vm1668_vm5, %v2494_v54  ;;  %v3235_v54 = vld [vmem:[%s7780_s14] sm:$0xff] }
 0x753   : > { %6132 = vmatprep.mubr.msk.f32.mxu0 %vm6853_vm6, %v6854_v8  ;;  %6411 = vmatpush3.bf16.msra.mxu0 %v6410_v60  ;;  %v3236_v55 = vld [vmem:[%s7780_s14 + $0x8] sm:$0xff] }
 0x754   : > { %6412 = vmatprep.subr.bf16.mxu0 %v6852_v7 }
 0x755   : > { %v2648_v56 = vpop.f32.mrb[12].mxu1 }
 0x756   : > { %v6112_v57 = vpop.f32.mrb[13].mxu1  ;;  %6122 = vmatmul.mubr.msk.f32.vlgmr.msra.gmra.mrb[14].mxu1 %vm1668_vm5, %v2648_v56  ;;  %v6434_v56 = vpack.c.bf16 %v3236_v55, %v3235_v54 }
 0x757   : > { %6143 = vmatprep.mubr.msk.f32.mxu1 %vm6853_vm6, %v6854_v8  ;;  %6414 = vmatpush3.bf16.msra.mxu0 %v6413_v63  ;;  %v3335_v63 = vld [vmem:[%s7781_s17 + $0x8] sm:$0xff] }
 0x758   : > { %6421 = vmatprep.subr.bf16.mxu0 %v6852_v7  ;;  %6417 = vmatpush3.bf16.msra.mxu1 %v6416_v2  ;;  %v6437_v0 = vpack.c.bf16 %v3335_v63, %v3334_v62  ;;  %v3337_v2 = vld [vmem:[%s7781_s17 + $0x18] sm:$0xff] }
 0x759   : > { %6418 = vmatprep.subr.bf16.mxu1 %v6852_v7 }
 0x75c   : > { %6420 = vmatpush3.bf16.msra.mxu1 %v6419_v19  ;;  %v5586_v19 = vld [vmem:[%s7774_s5 + $0x28] sm:$0xff] }
 0x75d   : > { %6427 = vmatprep.subr.bf16.mxu1 %v6852_v7  ;;  %v6449_v20 = vpack.c.bf16 %v5586_v19, %v5585_v18 }
 0x825   : > { %v2572_v3 = vpop.f32.mrb[12].mxu0 }
 0x826   : > { %v2576_v4 = vadd.f32 %v2572_v3, %v2420_v51  ;;  %v6105_v5 = vpop.f32.mrb[13].mxu0  ;;  %v6440_v3 = vpack.c.bf16 %v3337_v2, %v3336_v1 }
 0x827   : > { %v5579_v5 = vld [vmem:[%s7772_s1 + $0x28] sm:$0xff] }
 0x829   : > { %v2726_v6 = vpop.f32.mrb[14].mxu1 }
 0x82a   : > { %v2730_v10 = vadd.f32 %v2726_v6, %v2576_v4  ;;  %v6123_v11 = vpop.f32.mrb[15].mxu1  ;;  %v5578_v4 = vld [vmem:[%s7772_s1 + $0x20] sm:$0xff] }
 0x82b   : > { %v6443_v6 = vpack.c.bf16 %v5579_v5, %v5578_v4  ;;  %v5573_v11 = vld [vmem:[%s7783_s20] ss:$0 sm:$0xff]  ;;  %v5613_v5 = vld [vmem:[%s7781_s17 + $0x28] sm:$0xff] }
 0x82c   : > { %v2738_v14 = vadd.f32 %v5558_v9, %v2730_v10  ;;  %v5571_v9 = vld [vmem:[%s7782_s19] ss:$0 sm:$0xff] }
 0x82d   : > { %v5612_v4 = vld [vmem:[%s7781_s17 + $0x20] sm:$0xff] }
 0x82e   : > { %v2739_v16 = vmax.f32 %v2738_v14, 0.0  ;;  %v5574_v14 = vld [vmem:[%s7784_s21] ss:$0 sm:$0xff] }
 0x830   : > { %6133 = vmatmul.mubr.msk.f32.vlgmr.msra.gmra.mrb[14].mxu0 %vm1668_vm5, %v2739_v16 }
 0x831   : > { %6423 = vmatpush3.bf16.msra.mxu0 %v6422_v15  ;;  %6154 = vmatprep.mubr.msk.f32.mxu0 %vm6853_vm6, %v6854_v8 }
 0x832   : > { %6424 = vmatprep.subr.bf16.mxu0 %v6852_v7 }
 0x835   : > { %6426 = vmatpush3.bf16.msra.mxu0 %v6425_v22  ;;  %v5581_v22 = vld [vmem:[%s7772_s1 + $0x38] sm:$0xff] }
 0x836   : > { %6168 = vmatprep.subr.mxu0 %v6854_v8 }
 0x903   : > { %v2820_v26 = vpop.f32.mrb[14].mxu0 }
 0x904   : > { %v2821_v27 = vadd.f32 %v5559_v23, %v2820_v26  ;;  %v6134_v28 = vpop.f32.mrb[15].mxu0  ;;  %v6446_v23 = vpack.c.bf16 %v5581_v22, %v5580_v21  ;;  %v6452_v26 = vpack.c.bf16 %v5588_v25, %v5587_v24  ;;  %v5628_v24 = vld [vmem:[%s7774_s5 + $0x40] sm:$0xff]  ;;  %v5629_v25 = vld [vmem:[%s7774_s5 + $0x48] sm:$0xff] }
 0x906   : > { %v7265_v30 = vmax.f32 %v2821_v27, 0.0  ;;  %v5576_v27 = vld [vmem:[%s7785_s23] ss:$0 sm:$0xff] }
 0x908   : > { %6144 = vmatmul.mubr.msk.f32.vlgmr.msra.gmra.mrb[16].mxu1 %vm1668_vm5, %v7265_v30  ;;  %6155 = vmatmul.mubr.msk.f32.vlgmr.msra.gmra.mrb[16].mxu0 %vm1668_vm5, %v7265_v30 }
 0x909   : > { %6429 = vmatpush3.bf16.msra.mxu1 %v6428_v29  ;;  %6165 = vmatprep.mubr.msk.f32.mxu1 %vm6853_vm6, %v6854_v8  ;;  %v5577_v29 = vld [vmem:[%s7786_s24] ss:$0 sm:$0xff] }
 0x90a   : > { %6430 = vmatprep.subr.bf16.mxu1 %v6852_v7  ;;  %6170 = vmatprep.mubr.msk.f32.mxu0 %vm6853_vm6, %v6854_v8 }
 0x90d   : > { %6432 = vmatpush3.bf16.msra.mxu1 %v6431_v33  ;;  %v5593_v33 = vld [vmem:[%s7776_s8 + $0x28] sm:$0xff] }
 0x90e   : > { %6433 = vmatprep.subr.bf16.mxu1 %v6852_v7 }
 0x910   : > { %6166 = vmatmul.mubr.msk.f32.vlgmr.msra.gmra.mrb[18].mxu1 %vm1668_vm5, %v7265_v30 }
 0x911   : > { %6182 = vmatprep.mubr.msk.f32.mxu1 %vm6853_vm6, %v6854_v8  ;;  %6435 = vmatpush3.bf16.msra.mxu1 %v6434_v56 }
 0x912   : > { %6442 = vmatprep.subr.bf16.mxu1 %v6852_v7 }
 0x9db   : > { %v2905_v35 = vpop.f32.mrb[16].mxu1  ;;  %v2986_v36 = vpop.f32.mrb[16].mxu0 }
 0x9dc   : > { %v2987_v38 = vadd.f32 %v5563_v34, %v2986_v36  ;;  %v6145_v39 = vpop.f32.mrb[17].mxu1  ;;  %v6156_v40 = vpop.f32.mrb[17].mxu0  ;;  %v2906_v41 = vadd.f32 %v5561_v37, %v2905_v35  ;;  %v6455_v35 = vpack.c.bf16 %v5593_v33, %v5592_v32  ;;  %v5594_v37 = vld [vmem:[%s7776_s8 + $0x30] sm:$0xff]  ;;  %v5618_v33 = vld [vmem:[%s7785_s23 + $0x1] ss:$0 sm:$0xff] }
 0x9dd   : > { %v5590_v40 = vld [vmem:[%s7777_s3 + $0x1] ss:$0 sm:$0xff] }
 0x9de   : > { %6169 = vmatpush3.xpose.msk.msra.mxu0 %vm1410_vm4, %v2987_v38  ;;  %v5595_v38 = vld [vmem:[%s7776_s8 + $0x38] sm:$0xff] }
 0x9df   : > { %6173 = vmatprep.subr.mxu0 %v6854_v8  ;;  %v6458_v39 = vpack.c.bf16 %v5595_v38, %v5594_v37  ;;  %v5635_v38 = vld [vmem:[%s7776_s8 + $0x40] sm:$0xff] }
 0x9e1   : > { %6171 = vmatmul.mubr.msk.f32.vlgmr.msra.gmra.mrb[18].mxu0 %vm1410_vm4, %v2906_v41 }
 0x9e2   : > { %6175 = vmatprep.mubr.msk.f32.mxu0 %vm6853_vm6, %v6854_v8 }
 0x9e3   : > { %v3067_v43 = vpop.f32.mrb[18].mxu1 }
 0x9e4   : > { %v3068_v44 = vadd.f32 %v5565_v42, %v3067_v43  ;;  %v6167_v45 = vpop.f32.mrb[19].mxu1  ;;  %v5583_v43 = vld [vmem:[%s7778_s9 + $0x1] ss:$0 sm:$0xff] }
 0x9e6   : > { %6174 = vmatpush3.msk.msra.mxu0 %vm1320_vm0, %v3068_v44 }
 0x9e7   : > { %6436 = vmatprep.subr.bf16.mxu0 %v6852_v7 }
 0xab4   : > { %v3143_v46 = vpop.f32.mrb[18].mxu0 }
 0xab5   : > { %v6172_v47 = vpop.f32.mrb[19].mxu0  ;;  %v3148_v48 = vsel %vm3147_vm7, %v3143_v46, -inf }
 0xab6   : > { %3149 = vmax.xlane.f32.xlu0 %v3148_v48  ;;  %v5597_v48 = vld [vmem:[%s7779_s6 + $0x1] ss:$0 sm:$0xff] }
 0xb43   : > { %v3150_v49 = vpop.xlane.xlu0 %3149 }
 0xb44   : > { %v3151_v50 = vsub.f32 %v3143_v46, %v3150_v49 }
 0xb46   : > { %v3152_v51 = vmul.f32 1.442695, %v3151_v50 }
 0xb48   : > { %6734 = vpow2.f32 %v3152_v51 }
 0xb52   : > { %v6735_v52 = vpop.eup %6734 }
 0xb53   : > { %v3154_v53 = vsel %vm3147_vm7, %v6735_v52, 0.0 }
 0xb54   : > { %3155 = vadd.xlane.f32.xlu0 %v3154_v53 }
 0xbe1   : > { %v3156_v57 = vpop.xlane.xlu0 %3155 }
 0xbe2   : > { %6736 = vrcp.f32 %v3156_v57 }
 0xbec   : > { %v6737_v58 = vpop.eup %6736 }
 0xbed   : > { %v3158_v59 = vmul.f32 %v6737_v58, %v6735_v52 }
 0xbef   : > { %6176 = vmatmul.mubr.msk.f32.vlgmr.msra.gmra.mrb[20].mxu0 %vm1313_vm2, %v3158_v59 }
 0xbf0   : > { %6193 = vmatprep.mubr.msk.f32.mxu0 %vm6853_vm6, %v6854_v8  ;;  %6438 = vmatpush3.bf16.msra.mxu0 %v6437_v0 }
 0xbf1   : > { %6439 = vmatprep.subr.bf16.mxu0 %v6852_v7 }
 0xbf4   : > { %6441 = vmatpush3.bf16.msra.mxu0 %v6440_v3 }
 0xbf5   : > { %6448 = vmatprep.subr.bf16.mxu0 %v6852_v7 }
 0xcc2   : > { %v3231_v60 = vpop.f32.mrb[20].mxu0 }
 0xcc3   : > { %v6177_v61 = vpop.f32.mrb[21].mxu0  ;;  %6183 = vmatmul.mubr.msk.f32.vlgmr.msra.gmra.mrb[20].mxu1 %vm1410_vm4, %v3231_v60  ;;  %v5603_v60 = vld [vmem:[%s7780_s14 + $0x10] sm:$0xff] }
 0xcc4   : > { %6204 = vmatprep.mubr.msk.f32.mxu1 %vm6853_vm6, %v6854_v8  ;;  %6444 = vmatpush3.bf16.msra.mxu1 %v6443_v6  ;;  %v5604_v61 = vld [vmem:[%s7780_s14 + $0x18] sm:$0xff]  ;;  %v6464_v6 = vpack.c.bf16 %v5613_v5, %v5612_v4 }
 0xcc5   : > { %6445 = vmatprep.subr.bf16.mxu1 %v6852_v7  ;;  %v6461_v62 = vpack.c.bf16 %v5604_v61, %v5603_v60 }
 0xcc8   : > { %6447 = vmatpush3.bf16.msra.mxu1 %v6446_v23 }
 0xcc9   : > { %6454 = vmatprep.subr.bf16.mxu1 %v6852_v7 }
 0xd96   : > { %v3313_v10 = vpop.f32.mrb[20].mxu1 }
 0xd97   : > { %v3314_v12 = vadd.f32 %v5571_v9, %v3313_v10  ;;  %v6184_v13 = vpop.f32.mrb[21].mxu1  ;;  %v5614_v9 = vld [vmem:[%s7781_s17 + $0x30] sm:$0xff]  ;;  %v5615_v10 = vld [vmem:[%s7781_s17 + $0x38] sm:$0xff] }
 0xd98   : > { %v5622_v13 = vld [vmem:[%s7772_s1 + $0x48] sm:$0xff] }
 0xd99   : > { %v3324_v15 = vmul.f32 %v5573_v11, %v3314_v12  ;;  %v6467_v11 = vpack.c.bf16 %v5615_v10, %v5614_v9  ;;  %v5621_v12 = vld [vmem:[%s7772_s1 + $0x40] sm:$0xff] }
 0xd9b   : > { %v3332_v16 = vadd.f32 %v5574_v14, %v3324_v15  ;;  %v6470_v14 = vpack.c.bf16 %v5622_v13, %v5621_v12  ;;  %v5606_v15 = vld [vmem:[%s7782_s19 + $0x1] ss:$0 sm:$0xff]  ;;  %v5656_v13 = vld [vmem:[%s7781_s17 + $0x48] sm:$0xff] }
 0xd9c   : > { %v5655_v12 = vld [vmem:[%s7781_s17 + $0x40] sm:$0xff] }
 0xd9d   : > { %v3333_v17 = vadd.f32 %v3332_v16, %v7265_v30 }
 0xd9f   : > { %6194 = vmatmul.mubr.msk.f32.vlgmr.msra.gmra.mrb[22].mxu0 %vm1668_vm5, %v3333_v17  ;;  %v5609_v17 = vld [vmem:[%s7783_s20 + $0x1] ss:$0 sm:$0xff] }
 0xda0   : > { %6215 = vmatprep.mubr.msk.f32.mxu0 %vm6853_vm6, %v6854_v8  ;;  %6450 = vmatpush3.bf16.msra.mxu0 %v6449_v20  ;;  %v5611_v20 = vld [vmem:[%s7784_s21 + $0x1] ss:$0 sm:$0xff] }
 0xda1   : > { %6451 = vmatprep.subr.bf16.mxu0 %v6852_v7 }
 0xda4   : > { %6453 = vmatpush3.bf16.msra.mxu0 %v6452_v26  ;;  %v6476_v26 = vpack.c.bf16 %v5629_v25, %v5628_v24 }
 0xda5   : > { %6229 = vmatprep.subr.mxu0 %v6854_v8 }
 0xe72   : > { %v3407_v28 = vpop.f32.mrb[22].mxu0 }
 0xe73   : > { %v3418_v30 = vmul.f32 %v5576_v27, %v3407_v28  ;;  %v6195_v31 = vpop.f32.mrb[23].mxu0  ;;  %v5623_v27 = vld [vmem:[%s7772_s1 + $0x50] sm:$0xff]  ;;  %v5624_v28 = vld [vmem:[%s7772_s1 + $0x58] sm:$0xff]  ;;  %s7787_s1 = sld [smem:[#allocation37_spill]] }
 0xe74   : > { %v5631_v31 = vld [vmem:[%s7774_s5 + $0x58] sm:$0xff] }
 0xe75   : > { %v3426_v34 = vadd.f32 %v5577_v29, %v3418_v30  ;;  %v6473_v29 = vpack.c.bf16 %v5624_v28, %v5623_v27  ;;  %v5630_v30 = vld [vmem:[%s7774_s5 + $0x50] sm:$0xff]  ;;  %s7789_s5 = sld [smem:[#allocation38_spill]] }
 0xe76   : > { %v6479_v32 = vpack.c.bf16 %v5631_v31, %v5630_v30 }
 0xe77   : > { %v7333_v36 = vmax.f32 %v3426_v34, 0.0 }
 0xe79   : > { %6205 = vmatmul.mubr.msk.f32.vlgmr.msra.gmra.mrb[22].mxu1 %vm1668_vm5, %v7333_v36  ;;  %6216 = vmatmul.mubr.msk.f32.vlgmr.msra.gmra.mrb[24].mxu0 %vm1668_vm5, %v7333_v36  ;;  %v4669_v28 = vld [vmem:[%s7787_s1] sm:$0xff]  ;;  %v4687_v30 = vld [vmem:[%s7787_s1 + $0x90] sm:$0xff]  ;;  %v4688_v31 = vld [vmem:[%s7787_s1 + $0x98] sm:$0xff] }
 0xe7a   : > { %6456 = vmatpush3.bf16.msra.mxu1 %v6455_v35  ;;  %6226 = vmatprep.mubr.msk.f32.mxu1 %vm6853_vm6, %v6854_v8  ;;  %v5620_v35 = vld [vmem:[%s7786_s24 + $0x1] ss:$0 sm:$0xff] }
 0xe7b   : > { %6457 = vmatprep.subr.bf16.mxu1 %v6852_v7  ;;  %6231 = vmatprep.mubr.msk.f32.mxu0 %vm6853_vm6, %v6854_v8 }
 0xe7e   : > { %6459 = vmatpush3.bf16.msra.mxu1 %v6458_v39  ;;  %v5636_v39 = vld [vmem:[%s7776_s8 + $0x48] sm:$0xff] }
 0xe7f   : > { %6234 = vmatprep.subr.mxu1 %v6854_v8 }
 0xe81   : > { %6227 = vmatmul.mubr.msk.f32.vlgmr.msra.gmra.mrb[24].mxu1 %vm1668_vm5, %v7333_v36 }
 0xe82   : > { %6236 = vmatprep.mubr.msk.f32.mxu1 %vm6853_vm6, %v6854_v8 }
 0xf4c   : > { %v3510_v41 = vpop.f32.mrb[22].mxu1  ;;  %v3593_v42 = vpop.f32.mrb[24].mxu0 }
 0xf4d   : > { %v3594_v44 = vadd.f32 %v5590_v40, %v3593_v42  ;;  %v6206_v45 = vpop.f32.mrb[23].mxu1  ;;  %v6217_v46 = vpop.f32.mrb[25].mxu0  ;;  %v3511_v47 = vadd.f32 %v5583_v43, %v3510_v41  ;;  %v6482_v41 = vpack.c.bf16 %v5636_v39, %v5635_v38  ;;  %v5637_v43 = vld [vmem:[%s7776_s8 + $0x50] sm:$0xff]  ;;  %v4689_v38 = vld [vmem:[%s7787_s1 + $0xa0] sm:$0xff]  ;;  %v4690_v39 = vld [vmem:[%s7787_s1 + $0xa8] sm:$0xff] }
 0xf4e   : > { %v5633_v46 = vld [vmem:[%s7777_s3 + $0x2] ss:$0 sm:$0xff]  ;;  %s7788_s3 = sld [smem:[#allocation7_spill]] }
 0xf4f   : > { %6230 = vmatpush3.xpose.msk.msra.mxu0 %vm1410_vm4, %v3594_v44  ;;  %v5638_v44 = vld [vmem:[%s7776_s8 + $0x58] sm:$0xff] }
 0xf50   : > { %6460 = vmatprep.subr.bf16.mxu0 %v6852_v7  ;;  %v6485_v45 = vpack.c.bf16 %v5638_v44, %v5637_v43  ;;  %v4673_v43 = vld [vmem:[%s7787_s1 + $0x20] sm:$0xff]  ;;  %v4674_v44 = vld [vmem:[%s7787_s1 + $0x28] sm:$0xff] }
 0xf52   : > { %6232 = vmatmul.mubr.msk.f32.vlgmr.msra.gmra.mrb[26].mxu0 %vm1410_vm4, %v3511_v47 }
 0xf53   : > { %6243 = vmatprep.mubr.msk.f32.mxu0 %vm6853_vm6, %v6854_v8  ;;  %6462 = vmatpush3.bf16.msra.mxu0 %v6461_v62 }
 0xf54   : > { %v3676_v49 = vpop.f32.mrb[24].mxu1  ;;  %6469 = vmatprep.subr.bf16.mxu0 %v6852_v7 }
 0xf55   : > { %v3677_v50 = vadd.f32 %v5597_v48, %v3676_v49  ;;  %v6228_v51 = vpop.f32.mrb[25].mxu1  ;;  %v5626_v49 = vld [vmem:[%s7778_s9 + $0x2] ss:$0 sm:$0xff]  ;;  %s6855_s9 = smov [#allocation2]  }
 0xf57   : > { %6235 = vmatpush3.msk.msra.mxu1 %vm1320_vm0, %v3677_v50 }
 0xf58   : > { %6463 = vmatprep.subr.bf16.mxu1 %v6852_v7 }
0x1025   : > { %v3752_v52 = vpop.f32.mrb[26].mxu0 }
0x1026   : > { %v6233_v53 = vpop.f32.mrb[27].mxu0  ;;  %v3756_v54 = vsel %vm3147_vm7, %v3752_v52, -inf }
0x1027   : > { %3757 = vmax.xlane.f32.xlu1 %v3756_v54  ;;  %v5640_v54 = vld [vmem:[%s7779_s6 + $0x2] ss:$0 sm:$0xff]  ;;  %s5509_s6 = sshll.u32 %s7130_s11, 2  ;;  %s7791_s11 = sld [smem:[#allocation39_spill]] }
0x1028   : > { %s1300_s8 = scalar_lea.vmem %s7788_s3, %s5509_s6  ;;  %s1285_s3 = sand.u32 1, %s6800_s16  }
0x1029   : > { %s5667_s6 = sshll.u32 %s7097_s0, 4  ;;  %s6750_s0 = sshll.u32 %s6855_s9, 4  ;;  %s6751_s0 = int_to_ptr.vmem [resolvable:$false] %s6750_s0 }
0x10b4   : > { %v3758_v55 = vpop.xlane.xlu1 %3757 }
0x10b5   : > { %v3759_v56 = vsub.f32 %v3752_v52, %v3758_v55 }
0x10b7   : > { %v3760_v57 = vmul.f32 1.442695, %v3759_v56 }
0x10b9   : > { %6738 = vpow2.f32 %v3760_v57 }
0x10c3   : > { %v6739_v58 = vpop.eup %6738 }
0x10c4   : > { %v3762_v59 = vsel %vm3147_vm7, %v6739_v58, 0.0 }
0x10c5   : > { %3763 = vadd.xlane.f32.xlu1 %v3762_v59 }
0x1152   : > { %v3764_v63 = vpop.xlane.xlu1 %3763 }
0x1153   : > { %6740 = vrcp.f32 %v3764_v63 }
0x115d   : > { %v6741_v0 = vpop.eup %6740 }
0x115e   : > { %v3766_v1 = vmul.f32 %v6741_v0, %v6739_v58 }
0x1160   : > { %6237 = vmatmul.mubr.msk.f32.vlgmr.msra.gmra.mrb[26].mxu1 %vm1313_vm2, %v3766_v1 }
0x1161   : > { %6254 = vmatprep.mubr.msk.f32.mxu1 %vm6853_vm6, %v6854_v8  ;;  %6465 = vmatpush3.bf16.msra.mxu1 %v6464_v6 }
0x1162   : > { %6466 = vmatprep.subr.bf16.mxu1 %v6852_v7 }
0x1165   : > { %6468 = vmatpush3.bf16.msra.mxu1 %v6467_v11 }
0x1166   : > { %6475 = vmatprep.subr.bf16.mxu1 %v6852_v7 }
0x1233   : > { %v3839_v2 = vpop.f32.mrb[26].mxu1 }
0x1234   : > { %v6238_v3 = vpop.f32.mrb[27].mxu1  ;;  %6244 = vmatmul.mubr.msk.f32.vlgmr.msra.gmra.mrb[28].mxu0 %vm1410_vm4, %v3839_v2  ;;  %v5646_v2 = vld [vmem:[%s7780_s14 + $0x20] sm:$0xff] }
0x1235   : > { %6265 = vmatprep.mubr.msk.f32.mxu0 %vm6853_vm6, %v6854_v8  ;;  %6471 = vmatpush3.bf16.msra.mxu0 %v6470_v14  ;;  %v5647_v3 = vld [vmem:[%s7780_s14 + $0x28] sm:$0xff]  ;;  %v6491_v14 = vpack.c.bf16 %v5656_v13, %v5655_v12  ;;  %v4700_v12 = vld [vmem:[%s7787_s1 + $0xf8] sm:$0xff] }
0x1236   : > { %6472 = vmatprep.subr.bf16.mxu0 %v6852_v7  ;;  %v6488_v4 = vpack.c.bf16 %v5647_v3, %v5646_v2  ;;  %v4681_v2 = vld [vmem:[%s7787_s1 + $0x60] sm:$0xff]  ;;  %v4682_v3 = vld [vmem:[%s7787_s1 + $0x68] sm:$0xff] }
0x1239   : > { %6474 = vmatpush3.bf16.msra.mxu0 %v6473_v29  ;;  %v4670_v29 = vld [vmem:[%s7787_s1 + $0x8] sm:$0xff] }
0x123a   : > { %6481 = vmatprep.subr.bf16.mxu0 %v6852_v7 }
0x1307   : > { %v3923_v16 = vpop.f32.mrb[28].mxu0 }
0x1308   : > { %v3924_v18 = vadd.f32 %v5606_v15, %v3923_v16  ;;  %v6245_v19 = vpop.f32.mrb[29].mxu0  ;;  %v5657_v15 = vld [vmem:[%s7781_s17 + $0x50] sm:$0xff]  ;;  %v5658_v16 = vld [vmem:[%s7781_s17 + $0x58] sm:$0xff] }
0x1309   : > { %v4686_v19 = vld [vmem:[%s7787_s1 + $0x88] sm:$0xff] }
0x130a   : > { %v3935_v21 = vmul.f32 %v5609_v17, %v3924_v18  ;;  %v6494_v17 = vpack.c.bf16 %v5658_v16, %v5657_v15  ;;  %v4685_v18 = vld [vmem:[%s7787_s1 + $0x80] sm:$0xff]  ;;  %v4683_v16 = vld [vmem:[%s7787_s1 + $0x70] sm:$0xff] }
0x130c   : > { %v3944_v22 = vadd.f32 %v5611_v20, %v3935_v21  ;;  %v6502_v20 = vpack.c.bf16 %v4686_v19, %v4685_v18  ;;  %v5649_v21 = vld [vmem:[%s7782_s19 + $0x2] ss:$0 sm:$0xff] }
0x130e   : > { %v3945_v23 = vadd.f32 %v3944_v22, %v7333_v36 }
0x1310   : > { %6255 = vmatmul.mubr.msk.f32.vlgmr.msra.gmra.mrb[28].mxu1 %vm1668_vm5, %v3945_v23  ;;  %v5652_v23 = vld [vmem:[%s7783_s20 + $0x2] ss:$0 sm:$0xff] }
0x1311   : > { %6276 = vmatprep.mubr.msk.f32.mxu1 %vm6853_vm6, %v6854_v8  ;;  %6477 = vmatpush3.bf16.msra.mxu1 %v6476_v26  ;;  %v5654_v26 = vld [vmem:[%s7784_s21 + $0x2] ss:$0 sm:$0xff] }
0x1312   : > { %6478 = vmatprep.subr.bf16.mxu1 %v6852_v7 }
0x1315   : > { %6480 = vmatpush3.bf16.msra.mxu1 %v6479_v32 }
0x1316   : > { %6290 = vmatprep.subr.mxu1 %v6854_v8 }
0x13e3   : > { %v4020_v34 = vpop.f32.mrb[28].mxu1 }
0x13e4   : > { %v4032_v36 = vmul.f32 %v5618_v33, %v4020_v34  ;;  %v6256_v37 = vpop.f32.mrb[29].mxu1  ;;  %v6504_v33 = vpack.c.bf16 %v4670_v29, %v4669_v28  ;;  %v5661_v28 = vld [vmem:[%s7785_s23 + $0x2] ss:$0 sm:$0xff] }
0x13e5   : > { %v4672_v37 = vld [vmem:[%s7787_s1 + $0x18] sm:$0xff] }
0x13e6   : > { %v4041_v40 = vadd.f32 %v5620_v35, %v4032_v36  ;;  %v6506_v35 = vpack.c.bf16 %v4688_v31, %v4687_v30  ;;  %v4671_v36 = vld [vmem:[%s7787_s1 + $0x10] sm:$0xff]  ;;  %v5663_v30 = vld [vmem:[%s7786_s24 + $0x2] ss:$0 sm:$0xff] }
0x13e8   : > { %v7401_v42 = vmax.f32 %v4041_v40, 0.0  ;;  %v6508_v40 = vpack.c.bf16 %v4672_v37, %v4671_v36 }
0x13ea   : > { %6266 = vmatmul.mubr.msk.f32.vlgmr.msra.gmra.mrb[30].mxu0 %vm1668_vm5, %v7401_v42  ;;  %6277 = vmatmul.mubr.msk.f32.vlgmr.msra.gmra.mrb[30].mxu1 %vm1668_vm5, %v7401_v42 }
0x13eb   : > { %6483 = vmatpush3.bf16.msra.mxu0 %v6482_v41  ;;  %6287 = vmatprep.mubr.msk.f32.mxu0 %vm6853_vm6, %v6854_v8  ;;  %v6510_v41 = vpack.c.bf16 %v4690_v39, %v4689_v38 }
0x13ec   : > { %6484 = vmatprep.subr.bf16.mxu0 %v6852_v7  ;;  %6292 = vmatprep.mubr.msk.f32.mxu1 %vm6853_vm6, %v6854_v8 }
0x13ef   : > { %6486 = vmatpush3.bf16.msra.mxu0 %v6485_v45  ;;  %v4691_v45 = vld [vmem:[%s7787_s1 + $0xb0] sm:$0xff] }
0x13f0   : > { %6295 = vmatprep.subr.mxu0 %v6854_v8 }
0x13f2   : > { %6288 = vmatmul.mubr.msk.f32.vlgmr.msra.gmra.mrb[32].mxu0 %vm1668_vm5, %v7401_v42 }
0x13f3   : > { %6297 = vmatprep.mubr.msk.f32.mxu0 %vm6853_vm6, %v6854_v8 }
0x14bd   : > { %v4125_v47 = vpop.f32.mrb[30].mxu0  ;;  %v4208_v48 = vpop.f32.mrb[30].mxu1 }
0x14be   : > { %v4209_v50 = vadd.f32 %v5633_v46, %v4208_v48  ;;  %v6267_v51 = vpop.f32.mrb[31].mxu0  ;;  %v6278_v52 = vpop.f32.mrb[31].mxu1  ;;  %v4126_v53 = vadd.f32 %v5626_v49, %v4125_v47  ;;  %v6512_v46 = vpack.c.bf16 %v4674_v44, %v4673_v43  ;;  %v4675_v48 = vld [vmem:[%s7787_s1 + $0x30] sm:$0xff]  ;;  %v4676_v49 = vld [vmem:[%s7787_s1 + $0x38] sm:$0xff]  ;;  %v4701_v43 = vld [vmem:[%s7787_s1 + $0x100] sm:$0xff] }
0x14bf   : > { %v4693_v51 = vld [vmem:[%s7787_s1 + $0xc0] sm:$0xff]  ;;  %v4694_v52 = vld [vmem:[%s7787_s1 + $0xc8] sm:$0xff] }
0x14c0   : > { %6291 = vmatpush3.xpose.msk.msra.mxu1 %vm1410_vm4, %v4209_v50  ;;  %v6516_v50 = vpack.c.bf16 %v4676_v49, %v4675_v48  ;;  %v4702_v44 = vld [vmem:[%s7787_s1 + $0x108] sm:$0xff] }
0x14c1   : > { %6487 = vmatprep.subr.bf16.mxu1 %v6852_v7 }
0x14c3   : > { %6293 = vmatmul.mubr.msk.f32.vlgmr.msra.gmra.mrb[32].mxu1 %vm1410_vm4, %v4126_v53  ;;  %v6518_v53 = vpack.c.bf16 %v4694_v52, %v4693_v51  ;;  %v4703_v51 = vld [vmem:[%s7787_s1 + $0x110] sm:$0xff]  ;;  %v4704_v52 = vld [vmem:[%s7787_s1 + $0x118] sm:$0xff] }
0x14c4   : > { %6304 = vmatprep.mubr.msk.f32.mxu1 %vm6853_vm6, %v6854_v8  ;;  %6489 = vmatpush3.bf16.msra.mxu1 %v6488_v4  ;;  %v6528_v4 = vpack.c.bf16 %v4682_v3, %v4681_v2  ;;  %v4726_v2 = vld [vmem:[%s7787_s1 + $0x1c8] sm:$0xff] }
0x14c5   : > { %v4291_v55 = vpop.f32.mrb[32].mxu0  ;;  %6496 = vmatprep.subr.bf16.mxu1 %v6852_v7 }
0x14c6   : > { %v4292_v56 = vadd.f32 %v5640_v54, %v4291_v55  ;;  %v6289_v57 = vpop.f32.mrb[33].mxu0  ;;  %v4677_v54 = vld [vmem:[%s7787_s1 + $0x40] sm:$0xff]  ;;  %v4678_v55 = vld [vmem:[%s7787_s1 + $0x48] sm:$0xff] }
0x14c7   : > { %v4695_v57 = vld [vmem:[%s7787_s1 + $0xd0] sm:$0xff] }
0x14c8   : > { %6296 = vmatpush3.msk.msra.mxu0 %vm1320_vm0, %v4292_v56  ;;  %v6520_v56 = vpack.c.bf16 %v4678_v55, %v4677_v54  ;;  %v4722_v54 = vld [vmem:[%s7787_s1 + $0x1a8] sm:$0xff]  ;;  %v6540_v55 = vpack.c.bf16 %v4704_v52, %v4703_v51 }
0x14c9   : > { %6490 = vmatprep.subr.bf16.mxu0 %v6852_v7 }
0x1596   : > { %v4367_v58 = vpop.f32.mrb[32].mxu1 }
0x1597   : > { %v6294_v59 = vpop.f32.mrb[33].mxu1  ;;  %v4371_v60 = vsel %vm3147_vm7, %v4367_v58, -inf }
0x1598   : > { %4372 = vmax.xlane.f32.xlu0 %v4371_v60  ;;  %v4679_v60 = vld [vmem:[%s7787_s1 + $0x50] sm:$0xff] }
0x1625   : > { %v4373_v61 = vpop.xlane.xlu0 %4372 }
0x1626   : > { %v4374_v62 = vsub.f32 %v4367_v58, %v4373_v61  ;;  %v4696_v58 = vld [vmem:[%s7787_s1 + $0xd8] sm:$0xff] }
0x1627   : > { %v6522_v59 = vpack.c.bf16 %v4696_v58, %v4695_v57  ;;  %v4680_v61 = vld [vmem:[%s7787_s1 + $0x58] sm:$0xff]  ;;  %v4705_v57 = vld [vmem:[%s7787_s1 + $0x120] sm:$0xff]  ;;  %v4706_v58 = vld [vmem:[%s7787_s1 + $0x128] sm:$0xff] }
0x1628   : > { %v4375_v63 = vmul.f32 1.442695, %v4374_v62  ;;  %v6524_v62 = vpack.c.bf16 %v4680_v61, %v4679_v60  ;;  %v4724_v60 = vld [vmem:[%s7787_s1 + $0x1b8] sm:$0xff]  ;;  %v6544_v61 = vpack.c.bf16 %v4706_v58, %v4705_v57 }
0x162a   : > { %6742 = vpow2.f32 %v4375_v63  ;;  %v4697_v63 = vld [vmem:[%s7787_s1 + $0xe0] sm:$0xff] }
0x1634   : > { %v6743_v0 = vpop.eup %6742 }
0x1635   : > { %v4377_v1 = vsel %vm3147_vm7, %v6743_v0, 0.0 }
0x1636   : > { %4378 = vadd.xlane.f32.xlu1 %v4377_v1 }
0x16c3   : > { %v4379_v5 = vpop.xlane.xlu1 %4378 }
0x16c4   : > { %6744 = vrcp.f32 %v4379_v5  ;;  %v4811_v5 = vlaneseq }
0x16c6   : > { %v7484_v13 = vshrl.u32 %v4811_v5, 7  ;;  %v4709_v5 = vld [vmem:[%s7787_s1 + $0x140] sm:$0xff] }
0x16c8   : > { %v4817_v19 = vsub.s32 1, %v7484_v13 }
0x16ce   : > { %v6745_v6 = vpop.eup %6744 }
0x16cf   : > { %v4381_v9 = vmul.f32 %v6745_v6, %v6743_v0  ;;  %v4698_v0 = vld [vmem:[%s7787_s1 + $0xe8] sm:$0xff]  ;;  %v4733_v6 = vld [vmem:[%s7789_s5] sm:$0xff] }
0x16d0   : > { %v6526_v1 = vpack.c.bf16 %v4698_v0, %v4697_v63  ;;  %v4707_v63 = vld [vmem:[%s7787_s1 + $0x130] sm:$0xff]  ;;  %v4708_v0 = vld [vmem:[%s7787_s1 + $0x138] sm:$0xff] }
0x16d1   : > { %6298 = vmatmul.mubr.msk.f32.vlgmr.msra.gmra.mrb[34].mxu0 %vm1313_vm2, %v4381_v9  ;;  %v4734_v9 = vld [vmem:[%s7789_s5 + $0x8] sm:$0xff]  ;;  %v6548_v3 = vpack.c.bf16 %v4708_v0, %v4707_v63 }
0x16d2   : > { %6315 = vmatprep.mubr.msk.f32.mxu0 %vm6853_vm6, %v6854_v8  ;;  %6492 = vmatpush3.bf16.msra.mxu0 %v6491_v14  ;;  %v7486_v14 = vld [vmem:[%s1300_s8] sm:$0xf]  ;;  %s7790_s8 = sld [smem:[#allocation40_spill]]  ;;  %v5210_v63 = vld [vmem:[%s7064_s27 + $0x188] sm:$0xff] }
0x16d3   : > { %6493 = vmatprep.subr.bf16.mxu0 %v6852_v7 }
0x16d6   : > { %6495 = vmatpush3.bf16.msra.mxu0 %v6494_v17  ;;  %v4684_v17 = vld [vmem:[%s7787_s1 + $0x78] sm:$0xff] }
0x16d7   : > { %6503 = vmatprep.subr.bf16.mxu0 %v6502_v20  ;;  %v6532_v18 = vpack.c.bf16 %v4684_v17, %v4683_v16  ;;  %v4735_v20 = vld [vmem:[%s7789_s5 + $0x10] sm:$0xff]  ;;  %v4712_v16 = vld [vmem:[%s7787_s1 + $0x158] sm:$0xff]  ;;  %v4729_v17 = vld [vmem:[%s7787_s1 + $0x1e0] sm:$0xff] }
0x16d8   : > { %v4989_v51 = vld [vmem:[%s7790_s8 + $0x78] sm:$0xff]  ;;  %v4982_v52 = vld [vmem:[%s7790_s8 + $0x40] sm:$0xff] }
0x17a4   : > { %v4454_v10 = vpop.f32.mrb[34].mxu0 }
0x17a5   : > { %v6299_v11 = vpop.f32.mrb[35].mxu0  ;;  %6305 = vmatmul.mubr.msk.f32.vlgmr.msra.gmra.mrb[34].mxu1 %vm1410_vm4, %v4454_v10  ;;  %v6497_v10 = vpack.c.bf16 %v4734_v9, %v4733_v6  ;;  %v4710_v6 = vld [vmem:[%s7787_s1 + $0x148] sm:$0xff]  ;;  %v4727_v9 = vld [vmem:[%s7787_s1 + $0x1d0] sm:$0xff] }
0x17a6   : > { %6326 = vmatprep.mubr.msk.f32.mxu1 %vm6853_vm6, %v6854_v8  ;;  %v4699_v11 = vld [vmem:[%s7787_s1 + $0xf0] sm:$0xff] }
0x17a7   : > { %v6530_v15 = vpack.c.bf16 %v4700_v12, %v4699_v11  ;;  %6498 = vmatpush3.bf16.msra.mxu1 %v6497_v10  ;;  %v4728_v10 = vld [vmem:[%s7787_s1 + $0x1d8] sm:$0xff]  ;;  %v6552_v11 = vpack.c.bf16 %v4710_v6, %v4709_v5 }
0x17a8   : > { %6499 = vmatprep.subr.bf16.mxu1 %v6852_v7  ;;  %v4718_v7 = vld [vmem:[%s7787_s1 + $0x188] sm:$0xff]  ;;  %v6554_v12 = vpack.c.bf16 %v4728_v10, %v4727_v9  ;;  %v4971_v9 = vld [vmem:[%s7791_s11] sm:$0x1]  ;;  %s1286_s11 = scalar_lea.vmem [#allocation2], %s1285_s3 }
0x17a9   : > { %v5161_v10 = vld [vmem:[%s7064_s27] sm:$0xff] }
0x1878   : > { %v4538_v22 = vpop.f32.mrb[34].mxu1 }
0x1879   : > { %v4539_v24 = vadd.f32 %v5649_v21, %v4538_v22  ;;  %v6306_v25 = vpop.f32.mrb[35].mxu1  ;;  %v4736_v21 = vld [vmem:[%s7789_s5 + $0x18] sm:$0xff]  ;;  %v4813_v22 = vsub.s32 0, %v7484_v13  ;;  %s7642_s5 = scalar_lea.hbm %s7074_s13, %s5667_s6 }
0x187b   : > { %v4550_v27 = vmul.f32 %v5652_v23, %v4539_v24  ;;  %v6500_v23 = vpack.c.bf16 %v4736_v21, %v4735_v20  ;;  %v4818_v24 = vrot.slane %v7486_v14, %v4817_v19  ;;  %v4814_v25 = vrot.slane %v7486_v14, %v4813_v22 }
0x187d   : > { %v4559_v32 = vadd.f32 %v5654_v26, %v4550_v27  ;;  %6501 = vmatpush3.bf16.msra.mxu1 %v6500_v23  ;;  %v4717_v26 = vld [vmem:[%s7787_s1 + $0x180] sm:$0xff] }
0x187e   : > { %v6534_v27 = vpack.c.bf16 %v4718_v7, %v4717_v26  ;;  %v4713_v23 = vld [vmem:[%s7787_s1 + $0x160] sm:$0xff]  ;;  %v4732_v26 = vld [vmem:[%s7787_s1 + $0x1f8] sm:$0xff] }
0x187f   : > { %v4560_v34 = vadd.f32 %v4559_v32, %v7401_v42  ;;  %v4692_v42 = vld [vmem:[%s7787_s1 + $0xb8] sm:$0xff] }
0x1880   : > { %v6514_v47 = vpack.c.bf16 %v4692_v42, %v4691_v45  ;;  %6535 = vmatprep.subr.bf16.mxu1 %v6534_v27  ;;  %v4719_v45 = vld [vmem:[%s7787_s1 + $0x190] sm:$0xff]  ;;  %v4720_v42 = vld [vmem:[%s7787_s1 + $0x198] sm:$0xff] }
0x1881   : > { %6316 = vmatmul.mubr.msk.f32.vlgmr.msra.gmra.mrb[36].mxu0 %vm1668_vm5, %v4560_v34 }
0x1882   : > { %6505 = vmatpush3.bf16.msra.mxu0 %v6504_v33  ;;  %4895 = vmatprep.mubr.f32.mxu0 %v4818_v24  ;;  %v4714_v24 = vld [vmem:[%s7787_s1 + $0x168] sm:$0xff] }
0x1883   : > { %6507 = vmatprep.subr.bf16.mxu0 %v6506_v35  ;;  %v6560_v7 = vpack.c.bf16 %v4714_v24, %v4713_v23 }
0x1886   : > { %6509 = vmatpush3.bf16.msra.mxu0 %v6508_v40  ;;  %v4825_v40 = vsub.s32 3, %v7484_v13 }
0x1887   : > { %6511 = vmatprep.subr.bf16.mxu0 %v6510_v41 }
0x1888   : > { %v4826_v48 = vrot.slane %v7486_v14, %v4825_v40 }
0x188a   : > { %6513 = vmatpush3.bf16.msra.mxu0 %v6512_v46 }
0x188b   : > { %6515 = vmatprep.subr.bf16.mxu0 %v6514_v47  ;;  %v6536_v47 = vpack.c.bf16 %v4702_v44, %v4701_v43  ;;  %v4974_v43 = vld [vmem:[%s7790_s8] sm:$0xff] }
0x188e   : > { %6517 = vmatpush3.bf16.msra.mxu0 %v6516_v50  ;;  %v6538_v50 = vpack.c.bf16 %v4720_v42, %v4719_v45  ;;  %v4980_v42 = vld [vmem:[%s7790_s8 + $0x30] sm:$0xff] }
0x188f   : > { %6519 = vmatprep.subr.bf16.mxu0 %v6518_v53  ;;  %v4721_v53 = vld [vmem:[%s7787_s1 + $0x1a0] sm:$0xff] }
0x1892   : > { %6521 = vmatpush3.bf16.msra.mxu0 %v6520_v56  ;;  %v6542_v56 = vpack.c.bf16 %v4722_v54, %v4721_v53  ;;  %v4986_v54 = vld [vmem:[%s7790_s8 + $0x60] sm:$0xff] }
0x1893   : > { %6523 = vmatprep.subr.bf16.mxu0 %v6522_v59  ;;  %v4723_v59 = vld [vmem:[%s7787_s1 + $0x1b0] sm:$0xff]  ;;  %v6572_v57 = vpack.c.bf16 %v4986_v54, %v4982_v52 }
0x1894   : > { %v5199_v54 = vld [vmem:[%s7064_s27 + $0x130] sm:$0xff] }
0x1896   : > { %6525 = vmatpush3.bf16.msra.mxu0 %v6524_v62  ;;  %v6546_v62 = vpack.c.bf16 %v4724_v60, %v4723_v59  ;;  %v5177_v59 = vld [vmem:[%s7064_s27 + $0x80] sm:$0xff]  ;;  %v5178_v60 = vld [vmem:[%s7064_s27 + $0x88] sm:$0xff] }
0x1897   : > { %6527 = vmatprep.subr.bf16.mxu0 %v6526_v1  ;;  %v4725_v1 = vld [vmem:[%s7787_s1 + $0x1c0] sm:$0xff] }
0x189a   : > { %6529 = vmatpush3.bf16.msra.mxu0 %v6528_v4  ;;  %v6550_v4 = vpack.c.bf16 %v4726_v2, %v4725_v1 }
0x189b   : > { %6531 = vmatprep.subr.bf16.mxu0 %v6530_v15  ;;  %v4711_v15 = vld [vmem:[%s7787_s1 + $0x150] sm:$0xff] }
0x189c   : > { %v6556_v20 = vpack.c.bf16 %v4712_v16, %v4711_v15  ;;  %v5193_v15 = vld [vmem:[%s7064_s27 + $0x100] sm:$0xff]  ;;  %v5194_v16 = vld [vmem:[%s7064_s27 + $0x108] sm:$0xff] }
0x189e   : > { %6533 = vmatpush3.bf16.msra.mxu0 %v6532_v18  ;;  %v4730_v18 = vld [vmem:[%s7787_s1 + $0x1e8] sm:$0xff] }
0x189f   : > { %v6558_v21 = vpack.c.bf16 %v4730_v18, %v4729_v17  ;;  %v5179_v17 = vld [vmem:[%s7064_s27 + $0x90] sm:$0xff]  ;;  %v5180_v18 = vld [vmem:[%s7064_s27 + $0x98] sm:$0xff] }
0x18a1   : > { %4896 = vmatmul.mubr.f32.vlgmr.msra.gmra.mrb[38].mxu0 %v4814_v25  ;;  %v4731_v25 = vld [vmem:[%s7787_s1 + $0x1f0] sm:$0xff] }
0x18a2   : > { %5079 = vmatprep.mubr.f32.mxu0 %v6854_v8  ;;  %v6562_v27 = vpack.c.bf16 %v4732_v26, %v4731_v25  ;;  %v6616_v25 = vpack.c.bf16 %v5194_v16, %v5193_v15  ;;  %v5163_v26 = vld [vmem:[%s7064_s27 + $0x10] sm:$0xff]  ;;  %v5172_v15 = vld [vmem:[%s7064_s27 + $0x58] sm:$0xff] }
0x1954   : > { %v4635_v29 = vpop.f32.mrb[36].mxu0 }
0x1955   : > { %v4647_v31 = vmul.f32 %v5661_v28, %v4635_v29  ;;  %v6317_v32 = vpop.f32.mrb[37].mxu0  ;;  %v4715_v28 = vld [vmem:[%s7787_s1 + $0x170] sm:$0xff]  ;;  %v4716_v29 = vld [vmem:[%s7787_s1 + $0x178] sm:$0xff]  ;;  %s5380_s1 = sshll.u32 %s1286_s11, 4  ;;  %s7644_s1 = int_to_ptr.vmem [resolvable:$true] %s5380_s1 }
0x1956   : > { %p6753_p0 = scmp.lt.s32.totalorder %s7644_s1, %s6751_s0 }
0x1957   : > { %v4656_v33 = vadd.f32 %v5663_v30, %v4647_v31  ;;  %v4821_v30 = vsub.s32 2, %v7484_v13  ;;  %v6564_v31 = vpack.c.bf16 %v4716_v29, %v4715_v28  ;;  %v6586_v28 = vpack.c.bf16 %v5180_v18, %v5179_v17  ;;  %v5203_v18 = vld [vmem:[%s7064_s27 + $0x150] sm:$0xff] }
0x1959   : > { %v4657_v34 = vmax.f32 %v4656_v33, 0.0  ;;  %v4822_v32 = vrot.slane %v7486_v14, %v4821_v30  ;;  %v4978_v14 = vld [vmem:[%s7790_s8 + $0x20] sm:$0xff] }
0x195a   : > { %v6568_v45 = vpack.c.bf16 %v4978_v14, %v4974_v43 }
0x195b   : > { %v4659_v35 = vsel %vm4658_vm8, %v4657_v34, 0.0 }
0x195c   : > { %v4660_v36 = vrot.slane %v4659_v35, 4 }
0x195e   : > { %v4661_v37 = vadd.f32 %v4660_v36, %v4659_v35  ;;  %v4975_v36 = vld [vmem:[%s7790_s8 + $0x8] sm:$0xff] }
0x1960   : > { %v4662_v38 = vrot.slane %v4661_v37, 2 }
0x1962   : > { %v4663_v39 = vadd.f32 %v4662_v38, %v4661_v37  ;;  %v4979_v37 = vld [vmem:[%s7790_s8 + $0x28] sm:$0xff]  ;;  %v4977_v38 = vld [vmem:[%s7790_s8 + $0x18] sm:$0xff] }
0x1964   : > { %v4664_v41 = vrot.slane %v4663_v39, 1 }
0x1966   : > { %v4665_v46 = vadd.f32 %v4664_v41, %v4663_v39  ;;  %v6566_v39 = vpack.c.bf16 %v4979_v37, %v4975_v36  ;;  %v4981_v41 = vld [vmem:[%s7790_s8 + $0x38] sm:$0xff]  ;;  %v5214_v36 = vld [vmem:[%s7064_s27 + $0x1a8] sm:$0xff] }
0x1967   : > { %v6574_v44 = vpack.c.bf16 %v4981_v41, %v4977_v38  ;;  %v5166_v41 = vld [vmem:[%s7064_s27 + $0x28] sm:$0xff] }
0x1968   : > { %v4667_v49 = vmul.f32 0.25, %v4665_v46  ;;  %6567 = vmatprep.subr.bf16.mxu0 %v6566_v39  ;;  %v5165_v39 = vld [vmem:[%s7064_s27 + $0x20] sm:$0xff] }
0x1969   : > { %6569 = vmatpush1.bf16.msra.mxu0 %v6568_v45  ;;  %v5198_v45 = vld [vmem:[%s7064_s27 + $0x128] sm:$0xff] }
0x196a   : > { %6327 = vmatmul.mubr.msk.f32.vlgmr.msra.gmra.mrb[36].mxu1 %vm1668_vm5, %v4667_v49  ;;  %v4985_v49 = vld [vmem:[%s7790_s8 + $0x58] sm:$0xff] }
0x196b   : > { %6537 = vmatpush3.bf16.msra.mxu1 %v6536_v47  ;;  %4965 = vmatprep.mubr.f32.mxu1 %v4826_v48  ;;  %v4983_v47 = vld [vmem:[%s7790_s8 + $0x48] sm:$0xff]  ;;  %v6578_v53 = vpack.c.bf16 %v4989_v51, %v4985_v49  ;;  %v5168_v51 = vld [vmem:[%s7064_s27 + $0x38] sm:$0xff] }
0x196c   : > { %6539 = vmatprep.subr.bf16.mxu1 %v6538_v50  ;;  %v4987_v48 = vld [vmem:[%s7790_s8 + $0x68] sm:$0xff] }
0x196d   : > { %v6570_v50 = vpack.c.bf16 %v4987_v48, %v4983_v47  ;;  %v5216_v47 = vld [vmem:[%s7064_s27 + $0x1b8] sm:$0xff]  ;;  %v6592_v48 = vpack.c.bf16 %v5166_v41, %v5165_v39 }
0x196e   : > { %v5224_v41 = vld [vmem:[%s7064_s27 + $0x1f8] sm:$0xff] }
0x196f   : > { %6541 = vmatpush3.bf16.msra.mxu1 %v6540_v55  ;;  %v4984_v55 = vld [vmem:[%s7790_s8 + $0x50] sm:$0xff]  ;;  %6571 = vmatprep.subr.bf16.mxu0 %v6570_v50 }
0x1970   : > { %6543 = vmatprep.subr.bf16.mxu1 %v6542_v56  ;;  %v4988_v56 = vld [vmem:[%s7790_s8 + $0x70] sm:$0xff]  ;;  %6573 = vmatpush1.bf16.msra.mxu0 %v6572_v57  ;;  %v5186_v57 = vld [vmem:[%s7064_s27 + $0xc8] sm:$0xff] }
0x1971   : > { %v6580_v58 = vpack.c.bf16 %v4988_v56, %v4984_v55  ;;  %v5167_v50 = vld [vmem:[%s7064_s27 + $0x30] sm:$0xff]  ;;  %v5200_v55 = vld [vmem:[%s7064_s27 + $0x138] sm:$0xff]  ;;  %v5185_v56 = vld [vmem:[%s7064_s27 + $0xc0] sm:$0xff] }
0x1973   : > { %6545 = vmatpush3.bf16.msra.mxu1 %v6544_v61  ;;  %v5209_v61 = vld [vmem:[%s7064_s27 + $0x180] sm:$0xff] }
0x1974   : > { %6547 = vmatprep.subr.bf16.mxu1 %v6546_v62  ;;  %v5869_v33 = vpop.f32.mrb[38].mxu0  ;;  %v6582_v62 = vpack.c.bf16 %v5178_v60, %v5177_v59  ;;  %v6614_v0 = vpack.c.bf16 %v5210_v63, %v5209_v61  ;;  %v5218_v59 = vld [vmem:[%s7064_s27 + $0x1c8] sm:$0xff]  ;;  %v6596_v60 = vpack.c.bf16 %v5168_v51, %v5167_v50  ;;  %v6628_v61 = vpack.c.bf16 %v5200_v55, %v5199_v54 }
0x1975   : > { %v5870_v34 = vpop.f32.mrb[39].mxu0  ;;  %v5170_v63 = vld [vmem:[%s7064_s27 + $0x48] sm:$0xff] }
0x1976   : > { %v5871_v35 = vadd.f32 %v5870_v34, %v5869_v33  ;;  %6583 = vmatprep.subr.bf16.mxu0 %v6582_v62  ;;  %v5181_v33 = vld [vmem:[%s7064_s27 + $0xa0] sm:$0xff]  ;;  %v5182_v34 = vld [vmem:[%s7064_s27 + $0xa8] sm:$0xff] }
0x1977   : > { %6549 = vmatpush3.bf16.msra.mxu1 %v6548_v3  ;;  %v6590_v43 = vpack.c.bf16 %v5182_v34, %v5181_v33  ;;  %v5169_v62 = vld [vmem:[%s7064_s27 + $0x40] sm:$0xff]  ;;  %v5206_v34 = vld [vmem:[%s7064_s27 + $0x168] sm:$0xff] }
0x1978   : > { %6551 = vmatprep.subr.bf16.mxu1 %v6550_v4 }
0x197b   : > { %6553 = vmatpush3.bf16.msra.mxu1 %v6552_v11  ;;  %v5162_v11 = vld [vmem:[%s7064_s27 + $0x8] sm:$0xff] }
0x197c   : > { %6555 = vmatprep.subr.bf16.mxu1 %v6554_v12  ;;  %v6584_v24 = vpack.c.bf16 %v5162_v11, %v5161_v10  ;;  %v6600_v10 = vpack.c.bf16 %v5170_v63, %v5169_v62 }
0x197f   : > { %6557 = vmatpush3.bf16.msra.mxu1 %v6556_v20  ;;  %v5211_v20 = vld [vmem:[%s7064_s27 + $0x190] sm:$0xff] }
0x1980   : > { %6559 = vmatprep.subr.bf16.mxu1 %v6558_v21  ;;  %v5212_v21 = vld [vmem:[%s7064_s27 + $0x198] sm:$0xff] }
0x1981   : > { %v6618_v29 = vpack.c.bf16 %v5212_v21, %v5211_v20  ;;  %v5204_v20 = vld [vmem:[%s7064_s27 + $0x158] sm:$0xff]  ;;  %v5189_v21 = vld [vmem:[%s7064_s27 + $0xe0] sm:$0xff] }
0x1983   : > { %6561 = vmatpush3.bf16.msra.mxu1 %v6560_v7  ;;  %v5164_v7 = vld [vmem:[%s7064_s27 + $0x18] sm:$0xff] }
0x1984   : > { %6563 = vmatprep.subr.bf16.mxu1 %v6562_v27  ;;  %v6588_v37 = vpack.c.bf16 %v5164_v7, %v5163_v26  ;;  %v6636_v7 = vpack.c.bf16 %v5204_v20, %v5203_v18 }
0x1987   : > { %6565 = vmatpush3.bf16.msra.mxu1 %v6564_v31  ;;  %v5195_v31 = vld [vmem:[%s7064_s27 + $0x110] sm:$0xff] }
0x1988   : > { %6575 = vmatprep.subr.bf16.mxu1 %v6574_v44  ;;  %v5197_v44 = vld [vmem:[%s7064_s27 + $0x120] sm:$0xff] }
0x1989   : > { %v6624_v49 = vpack.c.bf16 %v5198_v45, %v5197_v44 }
0x198a   : > { %4966 = vmatmul.mubr.f32.vlgmr.msra.gmra.mrb[38].mxu1 %v4822_v32  ;;  %v5196_v32 = vld [vmem:[%s7064_s27 + $0x118] sm:$0xff] }
0x198b   : > { %5150 = vmatprep.mubr.f32.mxu1 %v6854_v8  ;;  %v4976_v8 = vld [vmem:[%s7790_s8 + $0x10] sm:$0xff]  ;;  %v6620_v38 = vpack.c.bf16 %v5196_v32, %v5195_v31  ;;  %v5174_v31 = vld [vmem:[%s7064_s27 + $0x68] sm:$0xff]  ;;  %v5205_v32 = vld [vmem:[%s7064_s27 + $0x160] sm:$0xff]  ;;  %s5368_s8 = scalar_lea.sflag [#allocation3], %s1285_s3 }
0x198c   : > { %v6576_v46 = vpack.c.bf16 %v4980_v42, %v4976_v8  ;;  %v5183_v8 = vld [vmem:[%s7064_s27 + $0xb0] sm:$0xff]  ;;  %v5184_v42 = vld [vmem:[%s7064_s27 + $0xb8] sm:$0xff] }
0x198d   : > { %v6594_v52 = vpack.c.bf16 %v5184_v42, %v5183_v8  ;;  %v5207_v8 = vld [vmem:[%s7064_s27 + $0x170] sm:$0xff]  ;;  %v5208_v42 = vld [vmem:[%s7064_s27 + $0x178] sm:$0xff] }
0x198e   : > { %6577 = vmatpush1.bf16.msra.mxu1 %v6576_v46  ;;  %v5215_v46 = vld [vmem:[%s7064_s27 + $0x1b0] sm:$0xff] }
0x198f   : > { %6579 = vmatprep.subr.bf16.mxu1 %v6578_v53  ;;  %v6626_v53 = vpack.c.bf16 %v5216_v47, %v5215_v46  ;;  %v6644_v46 = vpack.c.bf16 %v5208_v42, %v5207_v8  ;;  %v4990_v47 = vld [vmem:[%s7792_s12] sm:$0xf]  ;;  %s6752_s12 = scalar_lea.vmem %s6751_s0, 32 }
0x1990   : > { %v4999_v50 = vrot.slane %v4990_v47, %v4817_v19  ;;  %v5007_v51 = vrot.slane %v4990_v47, %v4825_v40  ;;  %v5225_v40 = vld [vmem:[%s7793_s4] sm:$0x1]  ;;  %s6746_s4 = scalar_lea.vmem %s7644_s1, 16 }
0x1991   : > { %p6747_p11 = scmp.ne.s32.totalorder %s7644_s1, %s6746_s4  ;;  %p6754_p1 = scmp.lt.s32.totalorder %s6752_s12, %s6746_s4 }
0x1992   : > { %6581 = vmatpush1.bf16.msra.mxu1 %v6580_v58  ;;  %v5217_v58 = vld [vmem:[%s7064_s27 + $0x1c0] sm:$0xff] }
0x1993   : > { %6615 = vmatprep.subr.bf16.mxu1 %v6614_v0  ;;  %v6598_v0 = vpack.c.bf16 %v5186_v57, %v5185_v56  ;;  %p6748_p12 = pnand %p6747_p11, %p7114_p5  ;;  %p6755_p2 = por %p6754_p1, %p6753_p0 }
0x1995   : > { %p6749_p13 = pneg %p6748_p12 }
0x1997   : > { %p6756_p3 = pnand %p6755_p2, %p6749_p13 }
0x1a3d   : > { %v4806_v1 = vpop.f32.mrb[36].mxu1 }
0x1a3e   : > { %v4898_v2 = vadd.f32 %v5871_v35, %v4806_v1  ;;  %v6328_v3 = vpop.f32.mrb[37].mxu1  ;;  %v5213_v35 = vld [vmem:[%s7064_s27 + $0x1a0] sm:$0xff]  ;;  %v6630_v1 = vpack.c.bf16 %v5218_v59, %v5217_v58 }
0x1a3f   : > { %v6622_v14 = vpack.c.bf16 %v5214_v36, %v5213_v35  ;;  %v5202_v3 = vld [vmem:[%s7064_s27 + $0x148] sm:$0xff]  ;;  %v6640_v35 = vpack.c.bf16 %v5206_v34, %v5205_v32  ;;  %v5191_v36 = vld [vmem:[%s7064_s27 + $0xf0] sm:$0xff] }
0x1a5d   : > { %v5904_v4 = vpop.f32.mrb[38].mxu1 }
0x1a5e   : > { %v5905_v5 = vpop.f32.mrb[39].mxu1 }
0x1a5f   : > { %v5906_v6 = vadd.f32 %v5905_v5, %v5904_v4  ;;  %v5187_v4 = vld [vmem:[%s7064_s27 + $0xd0] sm:$0xff]  ;;  %v5188_v5 = vld [vmem:[%s7064_s27 + $0xd8] sm:$0xff] }
0x1a60   : > { %v6602_v16 = vpack.c.bf16 %v5188_v5, %v5187_v4 }
0x1a61   : > { %v4968_v12 = vadd.f32 %v5906_v6, %v4898_v2  ;;  %v5201_v2 = vld [vmem:[%s7064_s27 + $0x140] sm:$0xff]  ;;  %v5219_v6 = vld [vmem:[%s7064_s27 + $0x1d0] sm:$0xff] }
0x1a62   : > { %v6632_v11 = vpack.c.bf16 %v5202_v3, %v5201_v2 }
0x1a63   : > { %v4972_v23 = vadd.f32 %v4971_v9, %v4968_v12  ;;  %v5220_v9 = vld [vmem:[%s7064_s27 + $0x1d8] sm:$0xff]  ;;  %v5171_v12 = vld [vmem:[%s7064_s27 + $0x50] sm:$0xff] }
0x1a64   : > { %v6634_v17 = vpack.c.bf16 %v5220_v9, %v5219_v6  ;;  %v6604_v26 = vpack.c.bf16 %v5172_v15, %v5171_v12 }
0x1a65   : > { %v4973_v27 = vmax.f32 %v4972_v23, 0.0  ;;  %v5190_v23 = vld [vmem:[%s7064_s27 + $0xe8] sm:$0xff] }
0x1a67   : > { %5665 = vmatmul.mubr.msk.f32.vlgmr.msra.gmra.mrb[40].mxu0 %vm1668_vm5, %v4973_v27  ;;  %5666 = vmatmul.mubr.msk.f32.vlgmr.msra.gmra.mrb[40].mxu1 %vm1668_vm5, %v4973_v27  ;;  %v6606_v27 = vpack.c.bf16 %v5190_v23, %v5189_v21 }
0x1a68   : > { %6585 = vmatpush3.bf16.msra.mxu0 %v6584_v24  ;;  %6617 = vmatpush3.bf16.msra.mxu1 %v6616_v25  ;;  %v5221_v24 = vld [vmem:[%s7064_s27 + $0x1e0] sm:$0xff]  ;;  %v5222_v25 = vld [vmem:[%s7064_s27 + $0x1e8] sm:$0xff] }
0x1a69   : > { %6587 = vmatprep.subr.bf16.mxu0 %v6586_v28  ;;  %6619 = vmatprep.subr.bf16.mxu1 %v6618_v29  ;;  %v6638_v28 = vpack.c.bf16 %v5222_v25, %v5221_v24  ;;  %v5173_v29 = vld [vmem:[%s7064_s27 + $0x60] sm:$0xff] }
0x1a6a   : > { %v6608_v33 = vpack.c.bf16 %v5174_v31, %v5173_v29 }
0x1a6c   : > { %6589 = vmatpush3.bf16.msra.mxu0 %v6588_v37  ;;  %6621 = vmatpush3.bf16.msra.mxu1 %v6620_v38  ;;  %v5192_v37 = vld [vmem:[%s7064_s27 + $0xf8] sm:$0xff]  ;;  %v5223_v38 = vld [vmem:[%s7064_s27 + $0x1f0] sm:$0xff] }
0x1a6d   : > { %6591 = vmatprep.subr.bf16.mxu0 %v6590_v43  ;;  %6623 = vmatprep.subr.bf16.mxu1 %v6622_v14  ;;  %v6610_v39 = vpack.c.bf16 %v5192_v37, %v5191_v36  ;;  %v5175_v43 = vld [vmem:[%s7064_s27 + $0x70] sm:$0xff]  ;;  %v5176_v14 = vld [vmem:[%s7064_s27 + $0x78] sm:$0xff]  ;;  %v6642_v44 = vpack.c.bf16 %v5224_v41, %v5223_v38 }
0x1a6e   : > { %v6612_v45 = vpack.c.bf16 %v5176_v14, %v5175_v43 }
0x1a70   : > { %6593 = vmatpush3.bf16.msra.mxu0 %v6592_v48  ;;  %6625 = vmatpush3.bf16.msra.mxu1 %v6624_v49  ;;  %v4995_v48 = vrot.slane %v4990_v47, %v4813_v22  ;;  %v5003_v49 = vrot.slane %v4990_v47, %v4821_v30 }
0x1a71   : > { %6595 = vmatprep.subr.bf16.mxu0 %v6594_v52  ;;  %6627 = vmatprep.subr.bf16.mxu1 %v6626_v53 }
0x1a74   : > { %6597 = vmatpush3.bf16.msra.mxu0 %v6596_v60  ;;  %6629 = vmatpush3.bf16.msra.mxu1 %v6628_v61 }
0x1a75   : > { %6599 = vmatprep.subr.bf16.mxu0 %v6598_v0  ;;  %6631 = vmatprep.subr.bf16.mxu1 %v6630_v1 }
0x1a78   : > { %6601 = vmatpush3.bf16.msra.mxu0 %v6600_v10  ;;  %6633 = vmatpush3.bf16.msra.mxu1 %v6632_v11 }
0x1a79   : > { %6603 = vmatprep.subr.bf16.mxu0 %v6602_v16  ;;  %6635 = vmatprep.subr.bf16.mxu1 %v6634_v17 }
0x1a7c   : > { %6605 = vmatpush3.bf16.msra.mxu0 %v6604_v26  ;;  %6637 = vmatpush3.bf16.msra.mxu1 %v6636_v7 }
0x1a7d   : > { %6607 = vmatprep.subr.bf16.mxu0 %v6606_v27  ;;  %6639 = vmatprep.subr.bf16.mxu1 %v6638_v28 }
0x1a80   : > { %6609 = vmatpush3.bf16.msra.mxu0 %v6608_v33  ;;  %6641 = vmatpush3.bf16.msra.mxu1 %v6640_v35 }
0x1a81   : > { %6611 = vmatprep.subr.bf16.mxu0 %v6610_v39  ;;  %6643 = vmatprep.subr.bf16.mxu1 %v6642_v44 }
0x1a84   : > { %6613 = vmatpush3.bf16.msra.mxu0 %v6612_v45  ;;  %6645 = vmatpush3.bf16.msra.mxu1 %v6644_v46 }
0x1b3a   : > { %v5081_v52 = vpop.f32.mrb[40].mxu0  ;;  %v5152_v53 = vpop.f32.mrb[40].mxu1 }
0x1b3b   : > { %v5082_v54 = vadd.f32 %v5081_v52, %v4995_v48  ;;  %v5153_v55 = vadd.f32 %v5152_v53, %v5003_v49  ;;  %v5083_v56 = vpop.f32.mrb[41].mxu0  ;;  %v5154_v57 = vpop.f32.mrb[41].mxu1 }
0x1b3c   : > { %v5084_v58 = vadd.f32 %v5083_v56, %v4999_v50  ;;  %v5155_v59 = vadd.f32 %v5154_v57, %v5007_v51 }
0x1b3d   : > { %v5157_v30 = vmax.f32 %v5082_v54, 0.0  ;;  %v5159_v61 = vmax.f32 %v5153_v55, 0.0 }
0x1b3e   : > { %v5158_v22 = vmax.f32 %v5084_v58, 0.0  ;;  %v5160_v60 = vmax.f32 %v5155_v59, 0.0 }
0x1b40   : > { %5290 = vmatprep.mubr.f32.mxu0 %v5158_v22  ;;  %5360 = vmatprep.mubr.f32.mxu1 %v5160_v60 }
0x1b41   : > { %5291 = vmatmul.mubr.f32.vlgmr.msra.gmra.mrb[42].mxu0 %v5157_v30  ;;  %5361 = vmatmul.mubr.f32.vlgmr.msra.gmra.mrb[42].mxu1 %v5159_v61 }
0x1c14   : > { %v5939_v13 = vpop.f32.mrb[42].mxu0  ;;  %v5974_v19 = vpop.f32.mrb[42].mxu1 }
0x1c15   : > { %v5940_v62 = vpop.f32.mrb[43].mxu0  ;;  %v5975_v63 = vpop.f32.mrb[43].mxu1 }
0x1c16   : > { %v5941_v0 = vadd.f32 %v5940_v62, %v5939_v13  ;;  %v5976_v1 = vadd.f32 %v5975_v63, %v5974_v19 }
0x1c18   : > { %v5293_v2 = vadd.f32 %v5941_v0, %v5225_v40 }
0x1c1a   : > { %v5363_v3 = vadd.f32 %v5976_v1, %v5293_v2 }
0x1c1c   : > { %5366 = vst [vmem:[%s1286_s11] sm:$0x1] %v5363_v3 }
0x1c1d   : > { %6759 = shalt.err (!%p6756_p3)
}
0x1c1e   : > { %s6760_s3 = scalar_lea.hbm %s7642_s5, 16  ;;  %s6764_s9 = scalar_lea.hbm %s7074_s13, 32 }
0x1c1f   : > { %p6761_p4 = scmp.ne.s32.totalorder %s7642_s5, %s6760_s3  ;;  %p6765_p9 = scmp.lt.u32.totalorder %s7642_s5, %s7074_s13 }
0x1c20   : > { %p6766_p10 = scmp.lt.u32.totalorder %s6764_s9, %s6760_s3  ;;  %p6768_p12 = scmp.lt.u32.totalorder %s6760_s3, %s7642_s5 }
0x1c21   : > { %p6762_p7 = pnand %p6761_p4, %p7114_p5 }
0x1c22   : > { %p6767_p11 = por %p6766_p10, %p6765_p9 }
0x1c23   : > { %p6763_p8 = pneg %p6762_p7 }
0x1c24   : > { %p6769_p0 = por %p6768_p12, %p6767_p11 }
0x1c26   : > { %p6770_p13 = pnand %p6769_p0, %p6763_p8 }
0x1c28   : > { %6773 = shalt.err (!%p6770_p13)
}
0x1c29   : > { %6650 = dma.vmem_to_hbm [thread:$0]  (%p7114_p5), %s7644_s1, 16, %s7642_s5, %s5368_s8  }
0x1c2a PF: > { %p6656_p1 = scmp.ge.s32.totalorder %s6808_s22, 2  ;;  %s5392_s12 = sand.u32 1, %s6796_s15  }
0x1c2b   : > { %s5393_s4 = scalar_lea.sflag [#allocation3], %s5392_s12 }
0x1c2c   : > { %p6653_p2 = pnand %p6656_p1, %p7118_p6 }
0x1c2e   : > { %6791 = dma.done.wait (!%p6653_p2), %s5393_s4, 16  }
0x1c2f   : > { %6793 = vsyncadd (!%p6653_p2), %s5393_s4, 4294967280  ;;  %p95_p3 = scmp.ge.s32.totalorder %s7101_s26, 4   ;;  %s7794_s15 = smov %s6800_s16 }
0x1c30   : > { %s7795_s16 = smov %s6804_s18  ;;  %s7796_s18 = smov %s7112_s2 }
0x1c31   : > { %s7797_s22 = smov %s7101_s26  ;;  %97 = sbr.rel (!%p95_p3) target bundleno = 98 (0x62), region = 303 }
0x1c38   :  { %5397 = vsyncpa [#allocation3], 1 }
0x1c39   :  { %5399 = vsyncpa [#allocation3 + $0x1], 1 }

</bundles_post_ra>
